<compile_context>
chip_gen: v7x
topology: tpu7x:2x2x1
jax: 0.10.0
libtpu: 0.0.40
codegen_flags: <defaults>
</compile_context>

<pallas_src>
import functools
import numpy as np
import jax
import jax.numpy as jnp
from jax.experimental import pallas as pl
from jax.experimental.pallas import tpu as pltpu


# ----------------------------------------------------------------------------
# Parameter construction (host-side numpy, mirrors the torch init_* loops 1:1)
# ----------------------------------------------------------------------------
def _fc1_params(C, H, W):
    size_in = 4 + C
    size_out = 2 * H + 2 * W + C
    w = np.zeros((size_out, size_in), np.float32)
    b = np.zeros((size_out,), np.float32)
    bs = (size_out - C) // 4
    for i in range(4):
        if i in (0, 2):
            for j in range(bs):
                w[i * bs + j, i] = 1.0
                b[i * bs + j] = -(j + 1)
        else:
            for j in range(bs):
                w[i * bs + j, i - 1] = -1.0
                w[i * bs + j, i] = -1.0
                b[i * bs + j] = j + 2
    for c in range(C):
        w[-1 - c, -1 - c] = 1.0
    return w, b


def _fc2_params(size_in, C):
    size_out = (size_in - 1) // 2 + C
    w = np.zeros((size_out, size_in), np.float32)
    b = np.ones((size_out,), np.float32)
    bs = (size_out - C) // 2
    for i in range(2):
        for j in range(bs):
            w[i * bs + j, 2 * i * bs + j] = -1.0
            w[i * bs + j, 2 * i * bs + bs + j] = -1.0
    for c in range(C):
        w[-1 - c, -1 - c] = 1.0
        b[-1 - c] = 0.0
    return w, b


def _fc3_params(size_in, C, H, W):
    size_out = H * W + H * W * C
    w = np.zeros((size_out, size_in), np.float32)
    b = np.zeros((size_out,), np.float32)
    input_block_size = (size_in - C) // 2
    bs = size_out // (1 + C)
    for i in range(1 + C):
        for j in range(bs):
            r, col = j // W, j % W
            w[i * bs + j, r] = 1.0
            w[i * bs + j, input_block_size + col] = 1.0
            if i >= 1:
                w[i * bs + j, -i] = 1.0
    b[0:bs] = -1.0
    b[bs:] = -2.0
    return w, b


def _fc4_dense_params(image):
    """Dense fc4 (ONLY for the independent reference check, never used by the kernel)."""
    C, H, W = image.shape
    HW = H * W
    size_out = C * HW
    img_flat = image.reshape(-1).astype(np.float32)
    w = np.zeros((size_out, (1 + C) * HW), np.float32)
    for c in range(C):
        for i in range(HW):
            w[c * HW + i, i] = -img_flat[c * HW + i]
            w[c * HW + i, (c + 1) * HW + i] = 1.0
    b = np.ones((size_out,), np.float32) * img_flat
    return w, b


def _round_up(n, m):
    return ((n + m - 1) // m) * m


# ----------------------------------------------------------------------------
# Fused Pallas kernel: fc1 -> fc2 -> structured fc3 -> structured fc4
# ----------------------------------------------------------------------------
def _occlusion_kernel(x_ref, w1t_ref, b1_ref, w2t_ref, b2_ref, g3_ref, img_ref,
                      o_ref, *, C, HW, S2, bias0, bias_rest):
    # Weights are exactly 0/+-1 -> HIGHEST (multi-pass) keeps activations exactly f32,
    # and the dots are tiny ((TB,128)x(128,<=256)) now that the dense fc3 matmul is gone.
    hp = jax.lax.Precision.HIGHEST
    h1 = jnp.maximum(
        jnp.dot(x_ref[...], w1t_ref[...], preferred_element_type=jnp.float32,
                precision=hp) + b1_ref[...], 0.0)                      # (TB, P1)
    h2 = jnp.maximum(
        jnp.dot(h1, w2t_ref[...], preferred_element_type=jnp.float32,
                precision=hp) + b2_ref[...], 0.0)                      # (TB, P2)

    # fc3 "base" term: base[b, r*W + c] = h2[b, r] + h2[b, ibs + c]   (0/1 matrix G)
    base = jnp.dot(h2, g3_ref[...], preferred_element_type=jnp.float32,
                   precision=hp)                                       # (TB, HW)

    # fc3 block 0 + fc4 occlusion factor:  occl = 1 - relu(base + bias0)
    occl = 1.0 - jnp.maximum(base + bias0, 0.0)                        # (TB, HW)

    # Per channel: h3_{c+1} = relu(base + h2[:, S2-1-c] + bias_rest)
    #              y[:, c*HW:(c+1)*HW] = img_c * occl + h3_{c+1}
    for c in range(C):
        chan = h2[:, S2 - 1 - c:S2 - c]                                # (TB, 1) lane bcast
        h3_c = jnp.maximum(base + chan + bias_rest, 0.0)               # (TB, HW)
        sl = slice(c * HW, (c + 1) * HW)
        o_ref[:, sl] = img_ref[:, sl] * occl + h3_c                    # lane-dense store


# ----------------------------------------------------------------------------
# Builder: host-side weight prep + jitted batched forward
# ----------------------------------------------------------------------------
def build_occlusion_layer(image, *, batch_tile=128):
    image = np.asarray(image, np.float32)
    C, H, W = image.shape
    HW = H * W

    w1, b1 = _fc1_params(C, H, W)
    w2, b2 = _fc2_params(w1.shape[0], C)
    w3, b3 = _fc3_params(w2.shape[0], C, H, W)
    S1, S2 = w1.shape[0], w2.shape[0]

    # ---- verify the fc3 factorization the kernel relies on (host-side, cheap) ----
    assert np.all(b3[:HW] == b3[0]) and np.all(b3[HW:] == b3[HW])
    for i in range(1, C + 1):
        delta = np.zeros((S2,), np.float32)
        delta[S2 - i] = 1.0
        assert np.array_equal(w3[i * HW:(i + 1) * HW], w3[:HW] + delta)
    bias0 = float(b3[0])
    bias_rest = float(b3[HW])

    P0 = _round_up(4 + C, 128)   # padded input dim
    P1 = _round_up(S1, 128)      # padded fc1 out dim
    P2 = _round_up(S2, 128)      # padded fc2 out dim

    def pad_t(w, b, kp, npad):
        wt = np.zeros((kp, npad), np.float32)
        wt[:w.shape[1], :w.shape[0]] = w.T
        bp = np.zeros((1, npad), np.float32)
        bp[0, :b.shape[0]] = b
        return jnp.asarray(wt), jnp.asarray(bp)

    w1t, b1p = pad_t(w1, b1, P0, P1)
    w2t, b2p = pad_t(w2, b2, P1, P2)
    g3 = np.zeros((P2, HW), np.float32)
    g3[:S2, :] = w3[:HW, :].T          # fc3 block-0 weights only (shared "base" matrix)
    g3 = jnp.asarray(g3)
    img_row = jnp.asarray(image.reshape(1, C * HW))

    kernel = functools.partial(_occlusion_kernel, C=C, HW=HW, S2=S2,
                               bias0=bias0, bias_rest=bias_rest)

    @jax.jit
    def forward(xb):
        xb = jnp.asarray(xb, jnp.float32)
        assert xb.ndim == 2 and xb.shape[1] == 4 + C
        B = xb.shape[0]
        tb = batch_tile if B >= batch_tile else _round_up(B, 8)
        Bp = _round_up(B, tb)
        x_pad = jnp.zeros((Bp, P0), jnp.float32).at[:B, :4 + C].set(xb)

        flops = Bp * 2 * (P0 * P1 + P1 * P2 + P2 * HW) + Bp * C * HW * 4
        bytes_accessed = 4 * (x_pad.size + w1t.size + b1p.size + w2t.size
                              + b2p.size + g3.size + img_row.size + Bp * C * HW)

        out = pl.pallas_call(
            kernel,
            out_shape=jax.ShapeDtypeStruct((Bp, C * HW), jnp.float32),
            grid_spec=pltpu.PrefetchScalarGridSpec(
                num_scalar_prefetch=0,
                grid=(Bp // tb,),
                in_specs=[
                    pl.BlockSpec((tb, P0), lambda i: (i, 0)),      # batch-tiled input
                    pl.BlockSpec(w1t.shape, lambda i: (0, 0)),     # weights: resident
                    pl.BlockSpec(b1p.shape, lambda i: (0, 0)),
                    pl.BlockSpec(w2t.shape, lambda i: (0, 0)),
                    pl.BlockSpec(b2p.shape, lambda i: (0, 0)),
                    pl.BlockSpec(g3.shape, lambda i: (0, 0)),
                    pl.BlockSpec(img_row.shape, lambda i: (0, 0)),
                ],
                out_specs=pl.BlockSpec((tb, C * HW), lambda i: (i, 0)),
            ),
            compiler_params=pltpu.CompilerParams(
                dimension_semantics=("parallel",)),                # v7x: both TCs split B
            cost_estimate=pl.CostEstimate(flops=flops, transcendentals=0,
                                          bytes_accessed=bytes_accessed),
        )(x_pad, w1t, b1p, w2t, b2p, g3, img_row)
        return out[:B]

    return forward


if __name__ == "__main__":
    key = jax.random.PRNGKey(0)
    k_img, k_x = jax.random.split(key)

    C, H, W = 4, 16, 16
    B = 256
    image = np.asarray(jax.random.uniform(k_img, (C, H, W), dtype=jnp.float32))
    xb = np.asarray(jax.random.normal(k_x, (B, 4 + C), dtype=jnp.float32))

    forward = build_occlusion_layer(image)
    y = jax.block_until_ready(forward(jnp.asarray(xb)))              # (B, C*H*W)
    y_small = jax.block_until_ready(forward(jnp.asarray(xb[:5])))    # exercises pad path

    # ---- independent dense float64 reference (mirrors the torch module exactly) ----
    w1, b1 = _fc1_params(C, H, W)
    w2, b2 = _fc2_params(w1.shape[0], C)
    w3, b3 = _fc3_params(w2.shape[0], C, H, W)
    w4, b4 = _fc4_dense_params(image)         # dense W4 built ONLY for this check
    xd = xb.astype(np.float64)
    h = np.maximum(xd @ w1.T.astype(np.float64) + b1, 0.0)
    h = np.maximum(h @ w2.T.astype(np.float64) + b2, 0.0)
    h = np.maximum(h @ w3.T.astype(np.float64) + b3, 0.0)
    y_ref = h @ w4.T.astype(np.float64) + b4  # is_cnn=True: no final relu

    assert y.shape == (B, C * H * W)
    assert np.allclose(np.asarray(y, np.float64), y_ref, rtol=1e-5, atol=1e-4), \
        "mismatch vs reference (batched)"
    assert np.allclose(np.asarray(y_small, np.float64), y_ref[:5], rtol=1e-5, atol=1e-4), \
        "mismatch vs reference (small batch / pad path)"

    print("KERNEL_OK")
</pallas_src>

<mosaic_0001>
module attributes {stable_mosaic.version = 11 : i64} {
  func.func @_occlusion_kernel(%arg0: i32, %arg1: memref<128x128xf32, #tpu.memory_space<vmem>>, %arg2: memref<128x128xf32, #tpu.memory_space<vmem>>, %arg3: memref<1x128xf32, #tpu.memory_space<vmem>>, %arg4: memref<128x128xf32, #tpu.memory_space<vmem>>, %arg5: memref<1x128xf32, #tpu.memory_space<vmem>>, %arg6: memref<128x256xf32, #tpu.memory_space<vmem>>, %arg7: memref<1x1024xf32, #tpu.memory_space<vmem>>, %arg8: memref<128x1024xf32, #tpu.memory_space<vmem>>) attributes {dimension_semantics = [#tpu.dimension_semantics<parallel>], iteration_bounds = array<i64: 2>, scalar_prefetch = 0 : i64, scratch_operands = 0 : i64, tpu.core_type = #tpu.core_type<tc>, window_params = [{transform_indices = @transform_0, window_bounds = array<i64: 128, 128>}, {pipeline_mode = #tpu.pipeline_mode<synchronous>, transform_indices = @transform_1, window_bounds = array<i64: 128, 128>}, {pipeline_mode = #tpu.pipeline_mode<synchronous>, transform_indices = @transform_2, window_bounds = array<i64: 1, 128>}, {pipeline_mode = #tpu.pipeline_mode<synchronous>, transform_indices = @transform_3, window_bounds = array<i64: 128, 128>}, {pipeline_mode = #tpu.pipeline_mode<synchronous>, transform_indices = @transform_4, window_bounds = array<i64: 1, 128>}, {pipeline_mode = #tpu.pipeline_mode<synchronous>, transform_indices = @transform_5, window_bounds = array<i64: 128, 256>}, {pipeline_mode = #tpu.pipeline_mode<synchronous>, transform_indices = @transform_6, window_bounds = array<i64: 1, 1024>}, {transform_indices = @transform_7, window_bounds = array<i64: 128, 1024>}]} {
    %c0 = arith.constant 0 : index
    %c0_0 = arith.constant 0 : index
    %0 = vector.load %arg1[%c0, %c0_0] : memref<128x128xf32, #tpu.memory_space<vmem>>, vector<128x128xf32>
    %c0_1 = arith.constant 0 : index
    %c0_2 = arith.constant 0 : index
    %1 = vector.load %arg2[%c0_1, %c0_2] : memref<128x128xf32, #tpu.memory_space<vmem>>, vector<128x128xf32>
    %cst = arith.constant dense<0.000000e+00> : vector<128x128xf32>
    %2 = tpu.matmul %0, %1, %cst {dimension_numbers = #tpu.dot_dimension_numbers<[1], [0], [0], [1], [0, 0, 1, 1], [], []>, precision = #tpu.contract_precision<fp32>} : vector<128x128xf32>, vector<128x128xf32>, vector<128x128xf32> -> vector<128x128xf32>
    %c0_3 = arith.constant 0 : index
    %c0_4 = arith.constant 0 : index
    %3 = vector.load %arg3[%c0_3, %c0_4] : memref<1x128xf32, #tpu.memory_space<vmem>>, vector<1x128xf32>
    %4 = vector.broadcast %3 : vector<1x128xf32> to vector<128x128xf32>
    %5 = arith.addf %2, %4 : vector<128x128xf32>
    %cst_5 = arith.constant 0.000000e+00 : f32
    %6 = vector.broadcast %cst_5 : f32 to vector<128x128xf32>
    %7 = arith.maximumf %5, %6 : vector<128x128xf32>
    %c0_6 = arith.constant 0 : index
    %c0_7 = arith.constant 0 : index
    %8 = vector.load %arg4[%c0_6, %c0_7] : memref<128x128xf32, #tpu.memory_space<vmem>>, vector<128x128xf32>
    %cst_8 = arith.constant dense<0.000000e+00> : vector<128x128xf32>
    %9 = tpu.matmul %7, %8, %cst_8 {dimension_numbers = #tpu.dot_dimension_numbers<[1], [0], [0], [1], [0, 0, 1, 1], [], []>, precision = #tpu.contract_precision<fp32>} : vector<128x128xf32>, vector<128x128xf32>, vector<128x128xf32> -> vector<128x128xf32>
    %c0_9 = arith.constant 0 : index
    %c0_10 = arith.constant 0 : index
    %10 = vector.load %arg5[%c0_9, %c0_10] : memref<1x128xf32, #tpu.memory_space<vmem>>, vector<1x128xf32>
    %11 = vector.broadcast %10 : vector<1x128xf32> to vector<128x128xf32>
    %12 = arith.addf %9, %11 : vector<128x128xf32>
    %cst_11 = arith.constant 0.000000e+00 : f32
    %13 = vector.broadcast %cst_11 : f32 to vector<128x128xf32>
    %14 = arith.maximumf %12, %13 : vector<128x128xf32>
    %c0_12 = arith.constant 0 : index
    %c0_13 = arith.constant 0 : index
    %15 = vector.load %arg6[%c0_12, %c0_13] : memref<128x256xf32, #tpu.memory_space<vmem>>, vector<128x256xf32>
    %cst_14 = arith.constant dense<0.000000e+00> : vector<128x256xf32>
    %16 = tpu.matmul %14, %15, %cst_14 {dimension_numbers = #tpu.dot_dimension_numbers<[1], [0], [0], [1], [0, 0, 1, 1], [], []>, precision = #tpu.contract_precision<fp32>} : vector<128x128xf32>, vector<128x256xf32>, vector<128x256xf32> -> vector<128x256xf32>
    %cst_15 = arith.constant -1.000000e+00 : f32
    %17 = vector.broadcast %cst_15 : f32 to vector<128x256xf32>
    %18 = arith.addf %16, %17 : vector<128x256xf32>
    %cst_16 = arith.constant 0.000000e+00 : f32
    %19 = vector.broadcast %cst_16 : f32 to vector<128x256xf32>
    %20 = arith.maximumf %18, %19 : vector<128x256xf32>
    %cst_17 = arith.constant 1.000000e+00 : f32
    %21 = vector.broadcast %cst_17 : f32 to vector<128x256xf32>
    %22 = arith.subf %21, %20 : vector<128x256xf32>
    %23 = vector.extract_strided_slice %14 {offsets = [0, 36], sizes = [128, 1], strides = [1, 1]} : vector<128x128xf32> to vector<128x1xf32>
    %24 = vector.broadcast %23 : vector<128x1xf32> to vector<128x256xf32>
    %25 = arith.addf %16, %24 : vector<128x256xf32>
    %cst_18 = arith.constant -2.000000e+00 : f32
    %26 = vector.broadcast %cst_18 : f32 to vector<128x256xf32>
    %27 = arith.addf %25, %26 : vector<128x256xf32>
    %cst_19 = arith.constant 0.000000e+00 : f32
    %28 = vector.broadcast %cst_19 : f32 to vector<128x256xf32>
    %29 = arith.maximumf %27, %28 : vector<128x256xf32>
    %c0_20 = arith.constant 0 : index
    %c0_21 = arith.constant 0 : index
    %30 = vector.load %arg7[%c0_20, %c0_21] : memref<1x1024xf32, #tpu.memory_space<vmem>>, vector<1x256xf32>
    %31 = vector.broadcast %30 : vector<1x256xf32> to vector<128x256xf32>
    %32 = arith.mulf %31, %22 : vector<128x256xf32>
    %33 = arith.addf %32, %29 : vector<128x256xf32>
    %c0_22 = arith.constant 0 : index
    %c0_23 = arith.constant 0 : index
    %34 = vector.load %arg8[%c0_22, %c0_23] : memref<128x1024xf32, #tpu.memory_space<vmem>>, vector<128x256xf32>
    tpu.vector_store %arg8[%c0_22, %c0_23], %33 {strides = array<i32>} : memref<128x1024xf32, #tpu.memory_space<vmem>>, vector<128x256xf32>,
    %35 = vector.extract_strided_slice %14 {offsets = [0, 35], sizes = [128, 1], strides = [1, 1]} : vector<128x128xf32> to vector<128x1xf32>
    %36 = vector.broadcast %35 : vector<128x1xf32> to vector<128x256xf32>
    %37 = arith.addf %16, %36 : vector<128x256xf32>
    %cst_24 = arith.constant -2.000000e+00 : f32
    %38 = vector.broadcast %cst_24 : f32 to vector<128x256xf32>
    %39 = arith.addf %37, %38 : vector<128x256xf32>
    %cst_25 = arith.constant 0.000000e+00 : f32
    %40 = vector.broadcast %cst_25 : f32 to vector<128x256xf32>
    %41 = arith.maximumf %39, %40 : vector<128x256xf32>
    %c0_26 = arith.constant 0 : index
    %c256 = arith.constant 256 : index
    %42 = vector.load %arg7[%c0_26, %c256] : memref<1x1024xf32, #tpu.memory_space<vmem>>, vector<1x256xf32>
    %43 = vector.broadcast %42 : vector<1x256xf32> to vector<128x256xf32>
    %44 = arith.mulf %43, %22 : vector<128x256xf32>
    %45 = arith.addf %44, %41 : vector<128x256xf32>
    %c0_27 = arith.constant 0 : index
    %c256_28 = arith.constant 256 : index
    %46 = vector.load %arg8[%c0_27, %c256_28] : memref<128x1024xf32, #tpu.memory_space<vmem>>, vector<128x256xf32>
    tpu.vector_store %arg8[%c0_27, %c256_28], %45 {strides = array<i32>} : memref<128x1024xf32, #tpu.memory_space<vmem>>, vector<128x256xf32>,
    %47 = vector.extract_strided_slice %14 {offsets = [0, 34], sizes = [128, 1], strides = [1, 1]} : vector<128x128xf32> to vector<128x1xf32>
    %48 = vector.broadcast %47 : vector<128x1xf32> to vector<128x256xf32>
    %49 = arith.addf %16, %48 : vector<128x256xf32>
    %cst_29 = arith.constant -2.000000e+00 : f32
    %50 = vector.broadcast %cst_29 : f32 to vector<128x256xf32>
    %51 = arith.addf %49, %50 : vector<128x256xf32>
    %cst_30 = arith.constant 0.000000e+00 : f32
    %52 = vector.broadcast %cst_30 : f32 to vector<128x256xf32>
    %53 = arith.maximumf %51, %52 : vector<128x256xf32>
    %c0_31 = arith.constant 0 : index
    %c512 = arith.constant 512 : index
    %54 = vector.load %arg7[%c0_31, %c512] : memref<1x1024xf32, #tpu.memory_space<vmem>>, vector<1x256xf32>
    %55 = vector.broadcast %54 : vector<1x256xf32> to vector<128x256xf32>
    %56 = arith.mulf %55, %22 : vector<128x256xf32>
    %57 = arith.addf %56, %53 : vector<128x256xf32>
    %c0_32 = arith.constant 0 : index
    %c512_33 = arith.constant 512 : index
    %58 = vector.load %arg8[%c0_32, %c512_33] : memref<128x1024xf32, #tpu.memory_space<vmem>>, vector<128x256xf32>
    tpu.vector_store %arg8[%c0_32, %c512_33], %57 {strides = array<i32>} : memref<128x1024xf32, #tpu.memory_space<vmem>>, vector<128x256xf32>,
    %59 = vector.extract_strided_slice %14 {offsets = [0, 33], sizes = [128, 1], strides = [1, 1]} : vector<128x128xf32> to vector<128x1xf32>
    %60 = vector.broadcast %59 : vector<128x1xf32> to vector<128x256xf32>
    %61 = arith.addf %16, %60 : vector<128x256xf32>
    %cst_34 = arith.constant -2.000000e+00 : f32
    %62 = vector.broadcast %cst_34 : f32 to vector<128x256xf32>
    %63 = arith.addf %61, %62 : vector<128x256xf32>
    %cst_35 = arith.constant 0.000000e+00 : f32
    %64 = vector.broadcast %cst_35 : f32 to vector<128x256xf32>
    %65 = arith.maximumf %63, %64 : vector<128x256xf32>
    %c0_36 = arith.constant 0 : index
    %c768 = arith.constant 768 : index
    %66 = vector.load %arg7[%c0_36, %c768] : memref<1x1024xf32, #tpu.memory_space<vmem>>, vector<1x256xf32>
    %67 = vector.broadcast %66 : vector<1x256xf32> to vector<128x256xf32>
    %68 = arith.mulf %67, %22 : vector<128x256xf32>
    %69 = arith.addf %68, %65 : vector<128x256xf32>
    %c0_37 = arith.constant 0 : index
    %c768_38 = arith.constant 768 : index
    %70 = vector.load %arg8[%c0_37, %c768_38] : memref<128x1024xf32, #tpu.memory_space<vmem>>, vector<128x256xf32>
    tpu.vector_store %arg8[%c0_37, %c768_38], %69 {strides = array<i32>} : memref<128x1024xf32, #tpu.memory_space<vmem>>, vector<128x256xf32>,
    return
  }
  func.func @transform_0(%arg0: i32) -> (i32, i32) {
    %c0_i32 = arith.constant 0 : i32
    %c0_i32_0 = arith.constant 0 : i32
    return %arg0, %c0_i32 : i32, i32
  }
  func.func @transform_1(%arg0: i32) -> (i32, i32) {
    %c0_i32 = arith.constant 0 : i32
    %c0_i32_0 = arith.constant 0 : i32
    %c0_i32_1 = arith.constant 0 : i32
    return %c0_i32, %c0_i32_0 : i32, i32
  }
  func.func @transform_2(%arg0: i32) -> (i32, i32) {
    %c0_i32 = arith.constant 0 : i32
    %c0_i32_0 = arith.constant 0 : i32
    %c0_i32_1 = arith.constant 0 : i32
    return %c0_i32, %c0_i32_0 : i32, i32
  }
  func.func @transform_3(%arg0: i32) -> (i32, i32) {
    %c0_i32 = arith.constant 0 : i32
    %c0_i32_0 = arith.constant 0 : i32
    %c0_i32_1 = arith.constant 0 : i32
    return %c0_i32, %c0_i32_0 : i32, i32
  }
  func.func @transform_4(%arg0: i32) -> (i32, i32) {
    %c0_i32 = arith.constant 0 : i32
    %c0_i32_0 = arith.constant 0 : i32
    %c0_i32_1 = arith.constant 0 : i32
    return %c0_i32, %c0_i32_0 : i32, i32
  }
  func.func @transform_5(%arg0: i32) -> (i32, i32) {
    %c0_i32 = arith.constant 0 : i32
    %c0_i32_0 = arith.constant 0 : i32
    %c0_i32_1 = arith.constant 0 : i32
    return %c0_i32, %c0_i32_0 : i32, i32
  }
  func.func @transform_6(%arg0: i32) -> (i32, i32) {
    %c0_i32 = arith.constant 0 : i32
    %c0_i32_0 = arith.constant 0 : i32
    %c0_i32_1 = arith.constant 0 : i32
    return %c0_i32, %c0_i32_0 : i32, i32
  }
  func.func @transform_7(%arg0: i32) -> (i32, i32) {
    %c0_i32 = arith.constant 0 : i32
    %c0_i32_0 = arith.constant 0 : i32
    return %arg0, %c0_i32 : i32, i32
  }
}

</mosaic_0001>

<bundles_post_ra>
// kernel: forward.1
= control target key start
LH: loop header
LB: loop body
LE: loop exit
PB: predicated region body
PF: predicated region fallthrough
CT: control target
= control target key end

     0   :  { %12 = vsyncpa [#allocation3], 0  ;;  %s11034_s0 = inlined_call_operand.vmem [shape: f32[256,128], index: 0, kind: input, shape index: {}]   ;;  %s11035_s1 = inlined_call_operand.vmem [shape: f32[128,128], index: 1, kind: input, shape index: {}]   ;;  %s11036_s2 = inlined_call_operand.vmem [shape: f32[1,128], index: 2, kind: input, shape index: {}]   ;;  %s11037_s3 = inlined_call_operand.vmem [shape: f32[128,128], index: 3, kind: input, shape index: {}]   ;;  %s11038_s4 = inlined_call_operand.vmem [shape: f32[1,128], index: 4, kind: input, shape index: {}]   ;;  %s11039_s5 = inlined_call_operand.vmem [shape: f32[128,256], index: 5, kind: input, shape index: {}]   ;;  %s11040_s6 = inlined_call_operand.vmem [shape: f32[1,1024], index: 6, kind: input, shape index: {}]   ;;  %s11041_s7 = inlined_call_operand.hbm [shape: f32[256,1024], index: 7, kind: output, shape index: {}]  }
   0x1   :  { %14 = vsyncpa [#allocation3 + $0x1], 0  ;;  %s8052_s24 = smov 0   ;;  %s8054_s25 = smov 0  }
   0x2   :  { %s8056_s26 = smov 0   ;;  %s8058_s27 = smov 0  }
   0x3 LB: > { %s8073_s28 = sadd.s32 4294967295, %s8002_s27   ;;  %s5829_s29 = sadd.s32 4294967294, %s8002_s27   ;;  %s8002_s27 = sphi %s8058_s27, %s11642_s27   ;;  %s7998_s26 = sphi %s8056_s26, %s11641_s26   ;;  %s7994_s25 = sphi %s8054_s25, %s11640_s25   ;;  %s7990_s24 = sphi %s8052_s24, %s11639_s24  }
   0x4   : > { %s8077_s30 = sadd.s32 1, %s8002_s27   ;;  %s179_s8 = sadd.s32 1, %s7998_s26 }
   0x5   : > { %s176_s9 = ssub.s32 %s8002_s27, %s8077_s30  ;;  %p189_p0 = scmp.ne.s32.totalorder %s7998_s26, %s7994_s25 }
   0x6   : > { %p177_p1 = scmp.eq.s32.totalorder %s176_s9, 0  ;;  %p190_p2 = scmp.eq.s32.totalorder %s8073_s28, 1 }
   0x7   : > { %p195_p3 = scmp.ne.s32.totalorder %s7994_s25, %s7990_s24  ;;  %p196_p4 = scmp.eq.s32.totalorder %s5829_s29, 1 }
   0x8   : > { %s8088_s10 = scalar_select %p177_p1, %s7998_s26, %s179_s8  }
   0x9   : > { %p8090_p5 = por %p190_p2, %p189_p0  ;;  %p8094_p6 = por %p196_p4, %p195_p3 }
   0xa   : > { %p5832_p7 = scmp.ge.s32.totalorder %s8002_s27, 1  ;;  %p241_p8 = scmp.lt.s32.totalorder %s8002_s27, 3 }
   0xc   : > { %p242_p9 = pnand %p5832_p7, %p241_p8 }
   0xe   : > { %245 = sbr.rel (%p242_p9) target bundleno = 1405 (0x57d), region = 48 }
  0x15   : > { %v296_v0 = vld [vmem:[%s11035_s1] sm:$0xff]  ;;  %v297_v1 = vld [vmem:[%s11035_s1 + $0x8] sm:$0xff]  ;;  %v298_v2 = vld [vmem:[%s11035_s1 + $0x10] sm:$0xff]  ;;  %s5834_s19 = sshll.u32 %s8073_s28, 4  ;;  %s270_s18 = sand.u32 1, %s7994_s25  }
  0x16   : > { %v320_v3 = vand.u32 4294901760, %v296_v0  ;;  %v323_v4 = vand.u32 4294901760, %v297_v1  ;;  %v299_v5 = vld [vmem:[%s11035_s1 + $0x18] sm:$0xff]  ;;  %v326_v6 = vand.u32 4294901760, %v298_v2  ;;  %v8116_v7 = vld [vmem:[%s11035_s1 + $0x20] sm:$0xff]  ;;  %v8121_v8 = vld [vmem:[%s11035_s1 + $0x28] sm:$0xff] }
  0x17   : > { %v329_v9 = vand.u32 4294901760, %v299_v5  ;;  %v332_v11 = vand.u32 4294901760, %v8116_v7  ;;  %v335_v12 = vand.u32 4294901760, %v8121_v8  ;;  %v8132_v14 = vld [vmem:[%s11035_s1 + $0x30] sm:$0xff]  ;;  %v8137_v15 = vld [vmem:[%s11035_s1 + $0x38] sm:$0xff]  ;;  %p274_p10 = scmp.lt.s32.totalorder %s5834_s19, 31 }
  0x18   : > { %v8123_v10 = vpack.c.bf16 %v323_v4, %v320_v3  ;;  %v338_v17 = vand.u32 4294901760, %v8132_v14  ;;  %v341_v18 = vand.u32 4294901760, %v8137_v15  ;;  %v8153_v19 = vld [vmem:[%s11035_s1 + $0x40] sm:$0xff]  ;;  %v8155_v20 = vsub.f32 %v296_v0, %v320_v3  ;;  %v8160_v21 = vld [vmem:[%s11035_s1 + $0x48] sm:$0xff]  ;;  %v8185_v29 = vld [vmem:[%s11035_s1 + $0x50] sm:$0xff]  ;;  %s10341_s20 = sshll.u32 %s270_s18, 10 }
  0x19   : > { %v8127_v13 = vpack.c.bf16 %v329_v9, %v326_v6  ;;  %s11644_s19 = smov (!%p274_p10, %s5834_s19), 31  ;;  %v8146_v16 = vpack.c.bf16 %v335_v12, %v332_v11  ;;  %v8162_v22 = vsub.f32 %v297_v1, %v323_v4  ;;  %v344_v23 = vand.u32 4294901760, %v8153_v19  ;;  %v8193_v32 = vld [vmem:[%s11035_s1 + $0x58] sm:$0xff]  ;;  %v8213_v41 = vld [vmem:[%s11035_s1 + $0x60] sm:$0xff]  ;;  %v8226_v44 = vld [vmem:[%s11035_s1 + $0x68] sm:$0xff]  ;;  %s5845_s22 = sshll.u32 %s8073_s28, 14 }
  0x1a   : > { %11273 = vst [vmem:[#allocation5_spill] sm:$0xff] %v8123_v10  ;;  %6903 = vmatprep.subr.bf16.mxu0 %v8123_v10  ;;  %s5835_s21 = sshll.u32 %s11644_s19, 3  ;;  %v8179_v27 = vpack.c.bf16 %v341_v18, %v338_v17  ;;  %v347_v28 = vand.u32 4294901760, %v8160_v21  ;;  %v11046_v31 = vand.u32 4294901760, %v8155_v20  ;;  %v8196_v34 = vsub.f32 %v298_v2, %v326_v6  ;;  %v8231_v45 = vld [vmem:[%s11035_s1 + $0x70] sm:$0xff]  ;;  %v8241_v49 = vld [vmem:[%s11035_s1 + $0x78] sm:$0xff]  ;;  %s10984_s8 = scalar_lea.hbm %s11041_s7, %s5845_s22 }
  0x1b   : > { %11274 = vst [vmem:[#allocation6_spill] sm:$0xff] %v8127_v13  ;;  %6905 = vmatpush3.bf16.msra.mxu0 %v8123_v10  ;;  %11275 = vst [vmem:[#allocation7_spill] sm:$0xff] %v8146_v16  ;;  %s8167_s29 = scalar_lea.vmem %s11034_s0, %s5835_s21  ;;  %v11045_v33 = vand.u32 4294901760, %v8162_v22  ;;  %v8198_v35 = vsub.f32 %v299_v5, %v329_v9  ;;  %v11055_v40 = vand.u32 4294901760, %v8185_v29  ;;  %v11054_v43 = vand.u32 4294901760, %v8193_v32  ;;  %s10356_s21 = scalar_lea.vmem [#allocation2], %s10341_s20 }
  0x1c   : > { %6907 = vmatprep.subr.bf16.mxu0 %v8127_v13  ;;  %v280_v24 = vld [vmem:[%s8167_s29] sm:$0xff]  ;;  %v281_v25 = vld [vmem:[%s8167_s29 + $0x8] sm:$0xff]  ;;  %v282_v26 = vld [vmem:[%s8167_s29 + $0x10] sm:$0xff]  ;;  %11276 = vst [vmem:[#allocation8_spill] sm:$0xff] %v8179_v27  ;;  %v8220_v42 = vpack.c.bf16 %v347_v28, %v344_v23  ;;  %v564_v47 = vsub.f32 %v8155_v20, %v11046_v31  ;;  %v11044_v52 = vand.u32 4294901760, %v8196_v34  ;;  %v11053_v54 = vand.u32 4294901760, %v8213_v41 }
  0x1d   : > { %v8187_v30 = vand.u32 4294901760, %v280_v24  ;;  %v8203_v37 = vand.u32 4294901760, %v281_v25  ;;  %v8205_v38 = vand.u32 4294901760, %v282_v26  ;;  %v283_v39 = vld [vmem:[%s8167_s29 + $0x18] sm:$0xff]  ;;  %v284_v48 = vld [vmem:[%s8167_s29 + $0x20] sm:$0xff]  ;;  %v571_v50 = vsub.f32 %v8162_v22, %v11045_v33  ;;  %v285_v61 = vld [vmem:[%s8167_s29 + $0x28] sm:$0xff] }
  0x1e   : > { %11278 = vst [vmem:[#allocation10_spill] sm:$0xff] %v8220_v42  ;;  %v8246_v51 = vand.u32 4294901760, %v283_v39  ;;  %v11043_v53 = vand.u32 4294901760, %v8198_v35  ;;  %v11052_v58 = vand.u32 4294901760, %v8226_v44  ;;  %v11051_v59 = vand.u32 4294901760, %v8231_v45  ;;  %v289_v33 = vld [vmem:[%s8167_s29 + $0x48] sm:$0xff] }
  0x1f   : > { %6909 = vmatpush3.bf16.msra.mxu0 %v8127_v13  ;;  %v8201_v36 = vsub.f32 %v280_v24, %v8187_v30  ;;  %v8255_v56 = vsub.f32 %v281_v25, %v8203_v37  ;;  %v8258_v57 = vsub.f32 %v282_v26, %v8205_v38  ;;  %v8263_v60 = vand.u32 4294901760, %v284_v48  ;;  %s5767_s23 = sshll.u32 %s10356_s21, 4  ;;  %s10993_s28 = scalar_lea.sflag [#allocation3], %s270_s18  ;;  %s10986_s23 = int_to_ptr.vmem [resolvable:$true] %s5767_s23 }
  0x20   : > { %6911 = vmatprep.subr.bf16.mxu0 %v8146_v16  ;;  %v8269_v62 = vsub.f32 %v8116_v7, %v332_v11  ;;  %v8276_v63 = vpack.c.bf16 %v11054_v43, %v11055_v40  ;;  %v11050_v0 = vand.u32 4294901760, %v8241_v49  ;;  %v565_v2 = vand.u32 4294901760, %v564_v47  ;;  %s7940_s9 = scalar_lea.vmem %s10986_s23, 16384  ;;  %s8009_s13 = smov [#allocation2]  }
  0x21   : > { %11277 = vst [vmem:[#allocation9_spill] sm:$0xff] %v8201_v36  ;;  %v11042_v46 = vand.u32 4294901760, %v8201_v36  ;;  %11279 = vst [vmem:[#allocation11_spill] sm:$0xff] %v8255_v56  ;;  %v572_v3 = vand.u32 4294901760, %v571_v50  ;;  %v8280_v4 = vsub.f32 %v283_v39, %v8246_v51  ;;  %v578_v5 = vsub.f32 %v8196_v34, %v11044_v52  ;;  %v286_v39 = vld [vmem:[%s8167_s29 + $0x30] sm:$0xff]  ;;  %v287_v50 = vld [vmem:[%s8167_s29 + $0x38] sm:$0xff]  ;;  %p7941_p11 = scmp.ne.s32.totalorder %s10986_s23, %s7940_s9 }
  0x22   : > { %11280 = vst [vmem:[#allocation12_spill] sm:$0xff] %v8258_v57  ;;  %11281 = vst [vmem:[#allocation13_spill] sm:$0xff] %v8276_v63  ;;  %v585_v6 = vsub.f32 %v8198_v35, %v11043_v53  ;;  %v11048_v7 = vand.u32 4294901760, %v8255_v56  ;;  %v11047_v9 = vand.u32 4294901760, %v8258_v57  ;;  %v8290_v11 = vand.u32 4294901760, %v285_v61  ;;  %v288_v52 = vld [vmem:[%s8167_s29 + $0x40] sm:$0xff] }
  0x23   : > { %6913 = vmatpush3.bf16.msra.mxu0 %v8146_v16  ;;  %v403_v55 = vsub.f32 %v8201_v36, %v11042_v46  ;;  %11282 = vst [vmem:[#allocation14_spill] sm:$0xff] %v8280_v4  ;;  %v8294_v24 = vsub.f32 %v284_v48, %v8263_v60  ;;  %v11049_v25 = vand.u32 4294901760, %v8269_v62  ;;  %v8300_v26 = vsub.f32 %v8121_v8, %v335_v12  ;;  %v292_v16 = vld [vmem:[%s8167_s29 + $0x60] sm:$0xff]  ;;  %p7942_p12 = pnand %p7941_p11, %p8090_p5  ;;  %s7944_s14 = sshll.u32 %s8009_s13, 4  ;;  %s7945_s14 = int_to_ptr.vmem [resolvable:$false] %s7944_s14 }
  0x24   : > { %6915 = vmatprep.subr.bf16.mxu0 %v8179_v27  ;;  %v8308_v47 = vpack.c.bf16 %v11052_v58, %v11053_v54  ;;  %v8314_v48 = vpack.c.bf16 %v11050_v0, %v11051_v59  ;;  %v8320_v8 = vsub.f32 %v8132_v14, %v338_v17  ;;  %v8325_v12 = vsub.f32 %v8137_v15, %v341_v18  ;;  %s7946_s15 = scalar_lea.vmem %s7945_s14, 32768  ;;  %p7947_p0 = scmp.lt.s32.totalorder %s10986_s23, %s7945_s14 }
  0x25   : > { %v404_v1 = vand.u32 4294901760, %v403_v55  ;;  %11283 = vst [vmem:[#allocation15_spill] sm:$0xff] %v8294_v24  ;;  %v8327_v55 = vpack.c.bf16 %v572_v3, %v565_v2  ;;  %v579_v46 = vand.u32 4294901760, %v578_v5  ;;  %v586_v53 = vand.u32 4294901760, %v585_v6  ;;  %p7943_p13 = pneg %p7942_p12  ;;  %p7948_p1 = scmp.lt.s32.totalorder %s7946_s15, %s7940_s9 }
  0x26   : > { %11284 = vst [vmem:[#allocation16_spill] sm:$0xff] %v8308_v47  ;;  %11285 = vst [vmem:[#allocation17_spill] sm:$0xff] %v8314_v48  ;;  %v413_v31 = vsub.f32 %v8255_v56, %v11048_v7  ;;  %v423_v14 = vsub.f32 %v8258_v57, %v11047_v9  ;;  %v8339_v17 = vsub.f32 %v285_v61, %v8290_v11  ;;  %v8341_v15 = vand.u32 4294901760, %v286_v39 }
  0x27   : > { %6917 = vmatpush3.bf16.msra.mxu0 %v8179_v27  ;;  %6262 = vmatprep.mubr.f32.mxu0 %v404_v1  ;;  %v11056_v1 = vand.u32 4294901760, %v8280_v4  ;;  %v11057_v18 = vand.u32 4294901760, %v8294_v24  ;;  %v592_v2 = vsub.f32 %v8269_v62, %v11049_v25  ;;  %v11058_v3 = vand.u32 4294901760, %v8300_v26  ;;  %p7949_p2 = por %p7948_p1, %p7947_p0 }
  0x28   : > { %6919 = vmatprep.subr.bf16.mxu0 %v8220_v42  ;;  %11286 = vst [vmem:[#allocation18_spill] sm:$0xff] %v8339_v17  ;;  %v8349_v5 = vand.u32 4294901760, %v287_v50  ;;  %v11059_v61 = vand.u32 4294901760, %v8320_v8  ;;  %v8354_v9 = vand.u32 4294901760, %v288_v52  ;;  %v8356_v7 = vand.u32 4294901760, %v289_v33 }
  0x29   : > { %v8361_v25 = vsub.f32 %v8280_v4, %v11056_v1  ;;  %v8363_v0 = vpack.c.bf16 %v586_v53, %v579_v46  ;;  %v8368_v59 = vsub.f32 %v8153_v19, %v344_v23  ;;  %v8373_v58 = vsub.f32 %v8160_v21, %v347_v28  ;;  %v290_v1 = vld [vmem:[%s8167_s29 + $0x50] sm:$0xff]  ;;  %v291_v46 = vld [vmem:[%s8167_s29 + $0x58] sm:$0xff]  ;;  %p7950_p3 = pnand %p7949_p2, %p7943_p13 }
  0x2a   : > { %v414_v54 = vand.u32 4294901760, %v413_v31  ;;  %v424_v43 = vand.u32 4294901760, %v423_v14  ;;  %v8377_v6 = vsub.f32 %v286_v39, %v8341_v15  ;;  %v443_v19 = vsub.f32 %v8294_v24, %v11057_v18 }
  0x2b   : > { %6921 = vmatpush3.bf16.msra.mxu0 %v8220_v42  ;;  %v593_v23 = vand.u32 4294901760, %v592_v2  ;;  %v599_v21 = vsub.f32 %v8300_v26, %v11058_v3  ;;  %v8389_v28 = vsub.f32 %v287_v50, %v8349_v5  ;;  %v606_v31 = vsub.f32 %v8320_v8, %v11059_v61 }
  0x2c   : > { %6923 = vmatprep.subr.bf16.mxu0 %v8276_v63  ;;  %11287 = vst [vmem:[#allocation19_spill] sm:$0xff] %v8377_v6  ;;  %v11289_v53 = vand.u32 4294901760, %v8325_v12  ;;  %v8399_v14 = vsub.f32 %v288_v52, %v8354_v9  ;;  %v8402_v2 = vsub.f32 %v289_v33, %v8356_v7  ;;  %v8406_v3 = vand.u32 4294901760, %v290_v1 }
  0x2d   : > { %11288 = vst [vmem:[#allocation20_spill] sm:$0xff] %v8389_v28  ;;  %v8408_v40 = vand.u32 4294901760, %v291_v46  ;;  %v434_v61 = vand.u32 4294901760, %v8361_v25  ;;  %v444_v18 = vand.u32 4294901760, %v443_v19  ;;  %v600_v50 = vand.u32 4294901760, %v599_v21 }
  0x2e   : > { %v613_v39 = vsub.f32 %v8325_v12, %v11289_v53  ;;  %11290 = vst [vmem:[#allocation21_spill] sm:$0xff] %v8399_v14  ;;  %11291 = vst [vmem:[#allocation22_spill] sm:$0xff] %v8402_v2  ;;  %v11294_v27 = vand.u32 4294901760, %v8193_v32  ;;  %v11295_v19 = vand.u32 4294901760, %v8368_v59  ;;  %v11296_v42 = vand.u32 4294901760, %v8373_v58 }
  0x2f   : > { %6925 = vmatpush3.bf16.msra.mxu0 %v8276_v63  ;;  %v11293_v63 = vand.u32 4294901760, %v8185_v29  ;;  %v11304_v24 = vand.u32 4294901760, %v8402_v2  ;;  %v11319_v36 = vand.u32 4294901760, %v8325_v12 }
  0x30   : > { %6927 = vmatprep.subr.bf16.mxu0 %v8308_v47  ;;  %v8425_v25 = vsub.f32 %v8193_v32, %v11294_v27  ;;  %v614_v52 = vand.u32 4294901760, %v613_v39  ;;  %v620_v21 = vsub.f32 %v8368_v59, %v11295_v19  ;;  %v8438_v27 = vsub.f32 %v290_v1, %v8406_v3 }
  0x31   : > { %v8418_v33 = vsub.f32 %v8185_v29, %v11293_v63  ;;  %v8441_v32 = vsub.f32 %v291_v46, %v8408_v40  ;;  %v11299_v39 = vand.u32 4294901760, %v8377_v6  ;;  %v8447_v19 = vand.u32 4294901760, %v292_v16 }
  0x32   : > { %11297 = vst [vmem:[#allocation23_spill] sm:$0xff] %v8438_v27  ;;  %v640_v1 = vand.u32 4294901760, %v8425_v25  ;;  %v11300_v46 = vand.u32 4294901760, %v8213_v41  ;;  %v11308_v57 = vand.u32 4294901760, %v8438_v27 }
  0x33   : > { %6929 = vmatpush3.bf16.msra.mxu0 %v8308_v47  ;;  %v11292_v47 = vand.u32 4294901760, %v8339_v17  ;;  %11298 = vst [vmem:[#allocation24_spill] sm:$0xff] %v8441_v32  ;;  %v463_v63 = vsub.f32 %v8377_v6, %v11299_v39  ;;  %v633_v29 = vand.u32 4294901760, %v8418_v33  ;;  %v11302_v6 = vand.u32 4294901760, %v8389_v28 }
  0x34   : > { %6931 = vmatprep.subr.bf16.mxu0 %v8314_v48  ;;  %v503_v56 = vsub.f32 %v8438_v27, %v11308_v57  ;;  %v11318_v27 = vand.u32 4294901760, %v8320_v8 }
  0x35   : > { %v453_v53 = vsub.f32 %v8339_v17, %v11292_v47  ;;  %v607_v47 = vand.u32 4294901760, %v606_v31  ;;  %v293_v17 = vld [vmem:[%s8167_s29 + $0x68] sm:$0xff] }
  0x37   : > { %6933 = vmatpush3.bf16.msra.mxu0 %v8314_v48  ;;  %v627_v48 = vsub.f32 %v8373_v58, %v11296_v42  ;;  %v454_v31 = vand.u32 4294901760, %v453_v53  ;;  %v6942_v42 = vpack.c.bf16 %v600_v50, %v593_v23  ;;  %v11301_v53 = vand.u32 4294901760, %v8226_v44 }
  0x38   : > { %6935 = vmatprep.subr.bf16.mxu0 %v8327_v55  ;;  %v11303_v23 = vand.u32 4294901760, %v8399_v14 }
  0x39   : > { %v8460_v39 = vsub.f32 %v8226_v44, %v11301_v53  ;;  %v621_v44 = vand.u32 4294901760, %v620_v21  ;;  %v628_v53 = vand.u32 4294901760, %v627_v48 }
  0x3a   : > { %6263 = vmatmul.mubr.f32.vlgmr.msra.gmra.mrb[0].mxu0 %v414_v54  ;;  %v8455_v54 = vsub.f32 %v8213_v41, %v11300_v46  ;;  %v483_v50 = vsub.f32 %v8399_v14, %v11303_v23  ;;  %v8472_v41 = vsub.f32 %v8402_v2, %v11304_v24  ;;  %v294_v46 = vld [vmem:[%s8167_s29 + $0x70] sm:$0xff]  ;;  %v8481_v23 = vand.u32 4294901760, %v293_v17 }
  0x3b   : > { %6937 = vmatpush3.bf16.msra.mxu0 %v8327_v55  ;;  %6265 = vmatprep.mubr.f32.mxu0 %v424_v43  ;;  %v473_v43 = vsub.f32 %v8389_v28, %v11302_v6  ;;  %v6946_v55 = vpack.c.bf16 %v614_v52, %v607_v47  ;;  %v464_v6 = vand.u32 4294901760, %v463_v63  ;;  %v634_v52 = vsub.f32 %v8418_v33, %v633_v29 }
  0x3c   : > { %6939 = vmatprep.subr.bf16.mxu0 %v8363_v0  ;;  %v8479_v47 = vsub.f32 %v292_v16, %v8447_v19  ;;  %v641_v24 = vsub.f32 %v8425_v25, %v640_v1  ;;  %v647_v48 = vand.u32 4294901760, %v8455_v54  ;;  %v654_v21 = vand.u32 4294901760, %v8460_v39 }
  0x3d   : > { %v8487_v4 = vand.u32 4294901760, %v294_v46  ;;  %v474_v63 = vand.u32 4294901760, %v473_v43  ;;  %v484_v13 = vand.u32 4294901760, %v483_v50  ;;  %v11306_v16 = vand.u32 4294901760, %v8231_v45 }
  0x3e   : > { %6266 = vmatmul.mubr.f32.gmra.mrb[2].mxu0 %v434_v61  ;;  %v295_v61 = vld [vmem:[%s8167_s29 + $0x78] sm:$0xff]  ;;  %v494_v14 = vand.u32 4294901760, %v8472_v41  ;;  %v6950_v28 = vpack.c.bf16 %v628_v53, %v621_v44  ;;  %v11309_v43 = vand.u32 4294901760, %v8441_v32  ;;  %v635_v10 = vand.u32 4294901760, %v634_v52 }
  0x3f   : > { %6941 = vmatpush3.bf16.msra.mxu0 %v8363_v0  ;;  %6268 = vmatprep.mubr.f32.mxu0 %v444_v18  ;;  %11305 = vst [vmem:[#allocation25_spill] sm:$0xff] %v8487_v4  ;;  %v8493_v2 = vsub.f32 %v8231_v45, %v11306_v16  ;;  %v11307_v0 = vand.u32 4294901760, %v8241_v49  ;;  %v8509_v16 = vsub.f32 %v293_v17, %v8481_v23  ;;  %v642_v41 = vand.u32 4294901760, %v641_v24 }
  0x40   : > { %6943 = vmatprep.subr.bf16.mxu0 %v6942_v42  ;;  %v513_v50 = vsub.f32 %v8441_v32, %v11309_v43  ;;  %v648_v44 = vsub.f32 %v8455_v54, %v647_v48  ;;  %v655_v57 = vsub.f32 %v8460_v39, %v654_v21  ;;  %v8516_v53 = vsub.f32 %v294_v46, %v8487_v4 }
  0x41   : > { %v8498_v18 = vsub.f32 %v8241_v49, %v11307_v0  ;;  %v8511_v49 = vand.u32 4294901760, %v295_v61  ;;  %v11310_v17 = vand.u32 4294901760, %v8155_v20  ;;  %v11311_v0 = vand.u32 4294901760, %v8162_v22 }
  0x42   : > { %6269 = vmatmul.mubr.f32.gmra.mrb[4].mxu0 %v454_v31  ;;  %v661_v31 = vand.u32 4294901760, %v8493_v2  ;;  %v11315_v46 = vand.u32 4294901760, %v8269_v62  ;;  %v11316_v45 = vand.u32 4294901760, %v8300_v26  ;;  %v8542_v4 = vpack.c.bf16 %v11319_v36, %v11318_v27 }
  0x43   : > { %6945 = vmatpush3.bf16.msra.mxu0 %v6942_v42  ;;  %6271 = vmatprep.mubr.f32.mxu0 %v464_v6  ;;  %v668_v52 = vand.u32 4294901760, %v8498_v18  ;;  %v8524_v43 = vpack.c.bf16 %v11311_v0, %v11310_v17  ;;  %v11313_v42 = vand.u32 4294901760, %v8196_v34  ;;  %v11314_v6 = vand.u32 4294901760, %v8198_v35 }
  0x44   : > { %6947 = vmatprep.subr.bf16.mxu0 %v6946_v55  ;;  %v8536_v32 = vpack.c.bf16 %v11316_v45, %v11315_v46  ;;  %11320 = vst [vmem:[#allocation28_spill] sm:$0xff] %v8542_v4  ;;  %v11321_v17 = vand.u32 4294901760, %v8368_v59  ;;  %v11322_v0 = vand.u32 4294901760, %v8373_v58  ;;  %v8554_v45 = vsub.f32 %v295_v61, %v8511_v49 }
  0x45   : > { %11312 = vst [vmem:[#allocation26_spill] sm:$0xff] %v8524_v43  ;;  %v8530_v24 = vpack.c.bf16 %v11314_v6, %v11313_v42  ;;  %v8550_v42 = vpack.c.bf16 %v640_v1, %v633_v29  ;;  %v532_v6 = vand.u32 4294901760, %v8509_v16  ;;  %v8556_v46 = vpack.c.bf16 %v654_v21, %v647_v48 }
  0x46   : > { %11317 = vst [vmem:[#allocation27_spill] sm:$0xff] %v8536_v32  ;;  %v8548_v43 = vpack.c.bf16 %v11322_v0, %v11321_v17  ;;  %6272 = vmatmul.mubr.f32.gmra.mrb[6].mxu0 %v474_v63  ;;  %v8558_v32 = vpack.c.bf16 %v668_v52, %v661_v31  ;;  %v504_v36 = vand.u32 4294901760, %v503_v56  ;;  %v6954_v27 = vpack.c.bf16 %v642_v41, %v635_v10 }
  0x47   : > { %6949 = vmatpush3.bf16.msra.mxu0 %v6946_v55  ;;  %6274 = vmatprep.mubr.f32.mxu0 %v484_v13  ;;  %v11323_v4 = vand.u32 4294901760, %v8479_v47  ;;  %v542_v29 = vand.u32 4294901760, %v8516_v53  ;;  %v649_v1 = vand.u32 4294901760, %v648_v44  ;;  %v656_v63 = vand.u32 4294901760, %v655_v57 }
  0x48   : > { %6951 = vmatprep.subr.bf16.mxu0 %v6950_v28  ;;  %v662_v61 = vsub.f32 %v8493_v2, %v661_v31  ;;  %v669_v48 = vsub.f32 %v8498_v18, %v668_v52  ;;  %v514_v21 = vand.u32 4294901760, %v513_v50  ;;  %v533_v13 = vsub.f32 %v8509_v16, %v532_v6 }
  0x49   : > { %v523_v17 = vsub.f32 %v8479_v47, %v11323_v4  ;;  %v11113_v10 = vand.u32 4294901760, %v8554_v45  ;;  %v543_v4 = vsub.f32 %v8516_v53, %v542_v29  ;;  %v6958_v55 = vpack.c.bf16 %v656_v63, %v649_v1  ;;  %v11327_v63 = vld [vmem:[#allocation11_spill] sm:$0xff] }
  0x4a   : > { %6275 = vmatmul.mubr.f32.gmra.mrb[8].mxu0 %v494_v14  ;;  %v663_v41 = vand.u32 4294901760, %v662_v61  ;;  %v670_v44 = vand.u32 4294901760, %v669_v48  ;;  %v534_v14 = vand.u32 4294901760, %v533_v13  ;;  %v6966_v52 = vpack.c.bf16 %v8162_v22, %v8155_v20  ;;  %v11328_v13 = vld [vmem:[#allocation12_spill] sm:$0xff] }
  0x4b   : > { %6953 = vmatpush3.bf16.msra.mxu0 %v6950_v28  ;;  %6277 = vmatprep.mubr.f32.mxu0 %v504_v36  ;;  %v524_v56 = vand.u32 4294901760, %v523_v17  ;;  %v553_v50 = vsub.f32 %v8554_v45, %v11113_v10  ;;  %v544_v57 = vand.u32 4294901760, %v543_v4  ;;  %v6970_v0 = vpack.c.bf16 %v8198_v35, %v8196_v34  ;;  %v8669_v4 = vld [vmem:[%s11037_s3 + $0x38] sm:$0xff] }
  0x4c   : > { %6955 = vmatprep.subr.bf16.mxu0 %v6954_v27  ;;  %v6962_v28 = vpack.c.bf16 %v670_v44, %v663_v41  ;;  %v6974_v36 = vpack.c.bf16 %v8300_v26, %v8269_v62  ;;  %v6978_v20 = vpack.c.bf16 %v8325_v12, %v8320_v8  ;;  %v6982_v22 = vpack.c.bf16 %v8373_v58, %v8368_v59  ;;  %v11324_v59 = vld [vmem:[#allocation25_spill] sm:$0xff]  ;;  %v8616_v26 = vld [vmem:[%s11037_s3 + $0x8] sm:$0xff]  ;;  %v8621_v8 = vld [vmem:[%s11037_s3 + $0x10] sm:$0xff] }
  0x4d   : > { %v554_v31 = vand.u32 4294901760, %v553_v50  ;;  %v6986_v34 = vpack.c.bf16 %v8425_v25, %v8418_v33  ;;  %v6990_v35 = vpack.c.bf16 %v8460_v39, %v8455_v54  ;;  %v6994_v58 = vpack.c.bf16 %v8498_v18, %v8493_v2  ;;  %v8611_v62 = vld [vmem:[%s11037_s3] sm:$0xff]  ;;  %v8629_v25 = vld [vmem:[%s11037_s3 + $0x18] sm:$0xff]  ;;  %v8640_v18 = vld [vmem:[%s11037_s3 + $0x28] sm:$0xff] }
  0x4e   : > { %6278 = vmatmul.mubr.f32.gmra.mrb[10].mxu0 %v514_v21  ;;  %v11325_v12 = vld [vmem:[#allocation9_spill] sm:$0xff]  ;;  %v11112_v2 = vand.u32 4294901760, %v8611_v62  ;;  %v11111_v33 = vand.u32 4294901760, %v8616_v26  ;;  %v11110_v54 = vand.u32 4294901760, %v8621_v8  ;;  %v11109_v17 = vand.u32 4294901760, %v8629_v25  ;;  %v11330_v41 = vld [vmem:[#allocation14_spill] sm:$0xff] }
  0x4f   : > { %6957 = vmatpush3.bf16.msra.mxu0 %v6954_v27  ;;  %6280 = vmatprep.mubr.f32.mxu0 %v524_v56  ;;  %v8635_v39 = vld [vmem:[%s11037_s3 + $0x20] sm:$0xff]  ;;  %v11107_v21 = vand.u32 4294901760, %v8640_v18  ;;  %v8664_v56 = vld [vmem:[%s11037_s3 + $0x30] sm:$0xff]  ;;  %v11105_v50 = vand.u32 4294901760, %v8669_v4  ;;  %v11349_v10 = vand.u32 4294901760, %v11330_v41 }
  0x50   : > { %6959 = vmatprep.subr.bf16.mxu0 %v6958_v55  ;;  %v11326_v27 = vld [vmem:[#allocation5_spill] sm:$0xff]  ;;  %v8648_v1 = vpack.c.bf16 %v11111_v33, %v11112_v2  ;;  %v8655_v61 = vpack.c.bf16 %v11109_v17, %v11110_v54  ;;  %v11108_v48 = vand.u32 4294901760, %v8635_v39  ;;  %v11345_v17 = vand.u32 4294901760, %v11325_v12  ;;  %v11346_v54 = vld [vmem:[#allocation26_spill] sm:$0xff] }
  0x51   : > { %v11347_v33 = vand.u32 4294901760, %v11327_v63  ;;  %v11348_v2 = vand.u32 4294901760, %v11328_v13 }
  0x52   : > { %6281 = vmatmul.mubr.f32.gmra.mrb[12].mxu0 %v534_v14  ;;  %7095 = vmatprep.subr.bf16.mxu1 %v8648_v1  ;;  %v8680_v44 = vpack.c.bf16 %v11107_v21, %v11108_v48  ;;  %v11106_v14 = vand.u32 4294901760, %v8664_v56  ;;  %v11343_v21 = vld [vmem:[#allocation16_spill] sm:$0xff]  ;;  %v11344_v48 = vld [vmem:[#allocation17_spill] sm:$0xff] }
  0x53   : > { %6961 = vmatpush3.bf16.msra.mxu0 %v6958_v55  ;;  %6283 = vmatprep.mubr.f32.mxu0 %v544_v57  ;;  %v11329_v55 = vld [vmem:[#allocation6_spill] sm:$0xff]  ;;  %v11331_v57 = vld [vmem:[#allocation15_spill] sm:$0xff] }
  0x54   : > { %6963 = vmatprep.subr.bf16.mxu0 %v6962_v28  ;;  %7097 = vmatpush3.bf16.msra.mxu1 %v8648_v1 }
  0x55   : > { %7099 = vmatprep.subr.bf16.mxu1 %v8655_v61 }
  0x56   : > { %6284 = vmatmul.mubr.f32.gmra.mrb[14].mxu0 %v554_v31  ;;  %v11333_v31 = vld [vmem:[#allocation18_spill] sm:$0xff] }
  0x57   : > { %6965 = vmatpush3.bf16.msra.mxu0 %v6962_v28  ;;  %6318 = vmatprep.mubr.f32.mxu0 %v8187_v30  ;;  %v11332_v28 = vld [vmem:[#allocation7_spill] sm:$0xff] }
  0x58   : > { %6967 = vmatprep.subr.bf16.mxu0 %v6966_v52  ;;  %7101 = vmatpush3.bf16.msra.mxu1 %v8655_v61 }
  0x59   : > { %7103 = vmatprep.subr.bf16.mxu1 %v8680_v44 }
  0x5a   : > { %6319 = vmatmul.mubr.f32.vlgmr.msra.gmra.mrb[0].mxu0 %v8203_v37 }
  0x5b   : > { %6969 = vmatpush3.bf16.msra.mxu0 %v6966_v52  ;;  %6321 = vmatprep.mubr.f32.mxu0 %v8205_v38  ;;  %v8694_v52 = vpack.c.bf16 %v11105_v50, %v11106_v14  ;;  %v11341_v50 = vld [vmem:[#allocation13_spill] sm:$0xff]  ;;  %v11342_v14 = vld [vmem:[#allocation24_spill] sm:$0xff] }
  0x5c   : > { %6971 = vmatprep.subr.bf16.mxu0 %v6970_v0  ;;  %7105 = vmatpush3.bf16.msra.mxu1 %v8680_v44 }
  0x5d   : > { %7107 = vmatprep.subr.bf16.mxu1 %v8694_v52 }
  0x5e   : > { %6322 = vmatmul.mubr.f32.gmra.mrb[2].mxu0 %v8246_v51 }
  0x5f   : > { %6973 = vmatpush3.bf16.msra.mxu0 %v6970_v0  ;;  %6324 = vmatprep.mubr.f32.mxu0 %v8263_v60  ;;  %v11334_v0 = vld [vmem:[#allocation19_spill] sm:$0xff] }
  0x60   : > { %6975 = vmatprep.subr.bf16.mxu0 %v6974_v36  ;;  %7109 = vmatpush3.bf16.msra.mxu1 %v8694_v52 }
  0x62   : > { %6325 = vmatmul.mubr.f32.gmra.mrb[4].mxu0 %v8290_v11 }
  0x63   : > { %6977 = vmatpush3.bf16.msra.mxu0 %v6974_v36  ;;  %6327 = vmatprep.mubr.f32.mxu0 %v8341_v15  ;;  %v11335_v36 = vld [vmem:[#allocation8_spill] sm:$0xff] }
  0x64   : > { %6979 = vmatprep.subr.bf16.mxu0 %v6978_v20 }
  0x66   : > { %6328 = vmatmul.mubr.f32.gmra.mrb[6].mxu0 %v8349_v5 }
  0x67   : > { %6981 = vmatpush3.bf16.msra.mxu0 %v6978_v20  ;;  %6330 = vmatprep.mubr.f32.mxu0 %v8354_v9  ;;  %v11336_v20 = vld [vmem:[#allocation20_spill] sm:$0xff] }
  0x68   : > { %6983 = vmatprep.subr.bf16.mxu0 %v6982_v22 }
  0x6a   : > { %6331 = vmatmul.mubr.f32.gmra.mrb[8].mxu0 %v8356_v7 }
  0x6b   : > { %6985 = vmatpush3.bf16.msra.mxu0 %v6982_v22  ;;  %6333 = vmatprep.mubr.f32.mxu0 %v8406_v3  ;;  %v11337_v22 = vld [vmem:[#allocation21_spill] sm:$0xff] }
  0x6c   : > { %6987 = vmatprep.subr.bf16.mxu0 %v6986_v34 }
  0x6e   : > { %6334 = vmatmul.mubr.f32.gmra.mrb[10].mxu0 %v8408_v40 }
  0x6f   : > { %6989 = vmatpush3.bf16.msra.mxu0 %v6986_v34  ;;  %6336 = vmatprep.mubr.f32.mxu0 %v8447_v19  ;;  %v11338_v34 = vld [vmem:[#allocation10_spill] sm:$0xff] }
  0x70   : > { %6991 = vmatprep.subr.bf16.mxu0 %v6990_v35 }
  0x72   : > { %6337 = vmatmul.mubr.f32.gmra.mrb[12].mxu0 %v8481_v23 }
  0x73   : > { %6993 = vmatpush3.bf16.msra.mxu0 %v6990_v35  ;;  %6339 = vmatprep.mubr.f32.mxu0 %v11324_v59  ;;  %v11339_v35 = vld [vmem:[#allocation22_spill] sm:$0xff] }
  0x74   : > { %6995 = vmatprep.subr.bf16.mxu0 %v6994_v58 }
  0x76   : > { %6340 = vmatmul.mubr.f32.gmra.mrb[14].mxu0 %v8511_v49 }
  0x77   : > { %6997 = vmatpush3.bf16.msra.mxu0 %v6994_v58  ;;  %6374 = vmatprep.mubr.f32.mxu0 %v11325_v12  ;;  %v11340_v58 = vld [vmem:[#allocation23_spill] sm:$0xff]  ;;  %v11350_v12 = vand.u32 4294901760, %v11331_v57 }
  0x78   : > { %6999 = vmatprep.subr.bf16.mxu0 %v11326_v27 }
  0x7a   : > { %6375 = vmatmul.mubr.f32.vlgmr.msra.gmra.mrb[0].mxu0 %v11327_v63  ;;  %v11352_v63 = vand.u32 4294901760, %v11333_v31 }
  0x7b   : > { %7001 = vmatpush3.bf16.msra.mxu0 %v11326_v27  ;;  %6377 = vmatprep.mubr.f32.mxu0 %v11328_v13  ;;  %v11358_v13 = vand.u32 4294901760, %v11340_v58 }
  0x7c   : > { %7003 = vmatprep.subr.bf16.mxu0 %v11329_v55 }
  0x7e   : > { %6378 = vmatmul.mubr.f32.gmra.mrb[2].mxu0 %v11330_v41  ;;  %v11359_v41 = vand.u32 4294901760, %v11342_v14 }
  0x7f   : > { %7005 = vmatpush3.bf16.msra.mxu0 %v11329_v55  ;;  %6380 = vmatprep.mubr.f32.mxu0 %v11331_v57  ;;  %v11360_v57 = vand.u32 4294901760, %v8479_v47 }
  0x80   : > { %7007 = vmatprep.subr.bf16.mxu0 %v11332_v28 }
  0x82   : > { %6381 = vmatmul.mubr.f32.gmra.mrb[4].mxu0 %v11333_v31 }
  0x83   : > { %7009 = vmatpush3.bf16.msra.mxu0 %v11332_v28  ;;  %6383 = vmatprep.mubr.f32.mxu0 %v11334_v0 }
  0x84   : > { %7011 = vmatprep.subr.bf16.mxu0 %v11335_v36 }
  0x86   : > { %6384 = vmatmul.mubr.f32.gmra.mrb[6].mxu0 %v11336_v20 }
  0x87   : > { %7013 = vmatpush3.bf16.msra.mxu0 %v11335_v36  ;;  %6386 = vmatprep.mubr.f32.mxu0 %v11337_v22 }
  0x88   : > { %7015 = vmatprep.subr.bf16.mxu0 %v11338_v34 }
  0x8a   : > { %6387 = vmatmul.mubr.f32.gmra.mrb[8].mxu0 %v11339_v35 }
  0x8b   : > { %7017 = vmatpush3.bf16.msra.mxu0 %v11338_v34  ;;  %6389 = vmatprep.mubr.f32.mxu0 %v11340_v58 }
  0x8c   : > { %7019 = vmatprep.subr.bf16.mxu0 %v11341_v50 }
  0x8e   : > { %6390 = vmatmul.mubr.f32.gmra.mrb[10].mxu0 %v11342_v14 }
  0x8f   : > { %7021 = vmatpush3.bf16.msra.mxu0 %v11341_v50  ;;  %6392 = vmatprep.mubr.f32.mxu0 %v8479_v47 }
  0x90   : > { %7023 = vmatprep.subr.bf16.mxu0 %v11343_v21 }
  0x92   : > { %6393 = vmatmul.mubr.f32.gmra.mrb[12].mxu0 %v8509_v16 }
  0x93   : > { %7025 = vmatpush3.bf16.msra.mxu0 %v11343_v21  ;;  %6395 = vmatprep.mubr.f32.mxu0 %v8516_v53 }
  0x94   : > { %7027 = vmatprep.subr.bf16.mxu0 %v11344_v48 }
  0x96   : > { %6396 = vmatmul.mubr.f32.gmra.mrb[14].mxu0 %v8554_v45 }
  0x97   : > { %7029 = vmatpush3.bf16.msra.mxu0 %v11344_v48  ;;  %6430 = vmatprep.mubr.f32.mxu0 %v11345_v17  ;;  %v11351_v17 = vld [vmem:[#allocation27_spill] sm:$0xff] }
  0x98   : > { %7031 = vmatprep.subr.bf16.mxu0 %v11346_v54 }
  0x9a   : > { %6431 = vmatmul.mubr.f32.vlgmr.msra.gmra.mrb[0].mxu0 %v11347_v33  ;;  %v11353_v33 = vand.u32 4294901760, %v11334_v0 }
  0x9b   : > { %7033 = vmatpush3.bf16.msra.mxu0 %v11346_v54  ;;  %6433 = vmatprep.mubr.f32.mxu0 %v11348_v2  ;;  %v11354_v2 = vld [vmem:[#allocation28_spill] sm:$0xff]  ;;  %v11355_v54 = vand.u32 4294901760, %v11336_v20 }
  0x9c   : > { %7035 = vmatprep.subr.bf16.mxu0 %v8530_v24 }
  0x9e   : > { %6434 = vmatmul.mubr.f32.gmra.mrb[2].mxu0 %v11349_v10  ;;  %v11357_v10 = vand.u32 4294901760, %v11339_v35 }
  0x9f   : > { %7037 = vmatpush3.bf16.msra.mxu0 %v8530_v24  ;;  %6436 = vmatprep.mubr.f32.mxu0 %v11350_v12  ;;  %v11356_v24 = vand.u32 4294901760, %v11337_v22 }
  0xa0   : > { %7039 = vmatprep.subr.bf16.mxu0 %v11351_v17 }
  0xa2   : > { %6437 = vmatmul.mubr.f32.gmra.mrb[4].mxu0 %v11352_v63 }
  0xa3   : > { %7041 = vmatpush3.bf16.msra.mxu0 %v11351_v17  ;;  %6439 = vmatprep.mubr.f32.mxu0 %v11353_v33 }
  0xa4   : > { %7043 = vmatprep.subr.bf16.mxu0 %v11354_v2 }
  0xa6   : > { %6440 = vmatmul.mubr.f32.gmra.mrb[6].mxu0 %v11355_v54 }
  0xa7   : > { %7045 = vmatpush3.bf16.msra.mxu0 %v11354_v2  ;;  %6442 = vmatprep.mubr.f32.mxu0 %v11356_v24 }
  0xa8   : > { %7047 = vmatprep.subr.bf16.mxu0 %v8548_v43 }
  0xaa   : > { %6443 = vmatmul.mubr.f32.gmra.mrb[8].mxu0 %v11357_v10 }
  0xab   : > { %7049 = vmatpush3.bf16.msra.mxu0 %v8548_v43  ;;  %6445 = vmatprep.mubr.f32.mxu0 %v11358_v13  ;;  %v11361_v43 = vand.u32 4294901760, %v8554_v45 }
  0xac   : > { %7051 = vmatprep.subr.bf16.mxu0 %v8550_v42 }
  0xae   : > { %6446 = vmatmul.mubr.f32.gmra.mrb[10].mxu0 %v11359_v41 }
  0xaf   : > { %7053 = vmatpush3.bf16.msra.mxu0 %v8550_v42  ;;  %6448 = vmatprep.mubr.f32.mxu0 %v11360_v57  ;;  %v1635_v42 = vld [vmem:[%s11037_s3 + $0x70] sm:$0xff] }
  0xb0   : > { %7055 = vmatprep.subr.bf16.mxu0 %v8556_v46  ;;  %v1687_v45 = vand.u32 4294901760, %v1635_v42 }
  0xb2   : > { %6449 = vmatmul.mubr.f32.gmra.mrb[12].mxu0 %v532_v6  ;;  %v1636_v6 = vld [vmem:[%s11037_s3 + $0x78] sm:$0xff] }
  0xb3   : > { %7057 = vmatpush3.bf16.msra.mxu0 %v8556_v46  ;;  %6451 = vmatprep.mubr.f32.mxu0 %v542_v29  ;;  %v1690_v46 = vand.u32 4294901760, %v1636_v6 }
  0xb4   : > { %7059 = vmatprep.subr.bf16.mxu0 %v8558_v32 }
  0xb6   : > { %6452 = vmatmul.mubr.f32.gmra.mrb[14].mxu0 %v11361_v43 }
  0xb7   : > { %7061 = vmatpush3.bf16.msra.mxu0 %v8558_v32  ;;  %6486 = vmatprep.mubr.f32.mxu0 %v8187_v30 }
  0xb8   : > { %7063 = vmatprep.subr.bf16.mxu0 %v11326_v27 }
  0xba   : > { %6487 = vmatmul.mubr.f32.vlgmr.msra.gmra.mrb[0].mxu0 %v8203_v37 }
  0xbb   : > { %7065 = vmatpush3.bf16.msra.mxu0 %v11326_v27  ;;  %6489 = vmatprep.mubr.f32.mxu0 %v8205_v38 }
  0xbc   : > { %7067 = vmatprep.subr.bf16.mxu0 %v11329_v55 }
  0xbe   : > { %6490 = vmatmul.mubr.f32.gmra.mrb[2].mxu0 %v8246_v51 }
  0xbf   : > { %7069 = vmatpush3.bf16.msra.mxu0 %v11329_v55  ;;  %6492 = vmatprep.mubr.f32.mxu0 %v8263_v60 }
  0xc0   : > { %7071 = vmatprep.subr.bf16.mxu0 %v11332_v28 }
  0xc2   : > { %6493 = vmatmul.mubr.f32.gmra.mrb[4].mxu0 %v8290_v11 }
  0xc3   : > { %7073 = vmatpush3.bf16.msra.mxu0 %v11332_v28  ;;  %6495 = vmatprep.mubr.f32.mxu0 %v8341_v15 }
  0xc4   : > { %7075 = vmatprep.subr.bf16.mxu0 %v11335_v36 }
  0xc6   : > { %6496 = vmatmul.mubr.f32.gmra.mrb[6].mxu0 %v8349_v5 }
  0xc7   : > { %7077 = vmatpush3.bf16.msra.mxu0 %v11335_v36  ;;  %6498 = vmatprep.mubr.f32.mxu0 %v8354_v9 }
  0xc8   : > { %7079 = vmatprep.subr.bf16.mxu0 %v11338_v34 }
  0xca   : > { %6499 = vmatmul.mubr.f32.gmra.mrb[8].mxu0 %v8356_v7 }
  0xcb   : > { %7081 = vmatpush3.bf16.msra.mxu0 %v11338_v34  ;;  %6501 = vmatprep.mubr.f32.mxu0 %v8406_v3 }
  0xcc   : > { %7083 = vmatprep.subr.bf16.mxu0 %v11341_v50 }
  0xce   : > { %6502 = vmatmul.mubr.f32.gmra.mrb[10].mxu0 %v8408_v40 }
  0xcf   : > { %7085 = vmatpush3.bf16.msra.mxu0 %v11341_v50  ;;  %6504 = vmatprep.mubr.f32.mxu0 %v8447_v19 }
  0xd0   : > { %7087 = vmatprep.subr.bf16.mxu0 %v11343_v21 }
  0xd2   : > { %6505 = vmatmul.mubr.f32.gmra.mrb[12].mxu0 %v8481_v23 }
  0xd3   : > { %7089 = vmatpush3.bf16.msra.mxu0 %v11343_v21  ;;  %6507 = vmatprep.mubr.f32.mxu0 %v11324_v59 }
  0xd4   : > { %7091 = vmatprep.subr.bf16.mxu0 %v11344_v48 }
  0xd6   : > { %6508 = vmatmul.mubr.f32.gmra.mrb[14].mxu0 %v8511_v49 }
  0xd7   : > { %7093 = vmatpush3.bf16.msra.mxu0 %v11344_v48  ;;  %6542 = vmatprep.mubr.f32.mxu0 %v8187_v30  ;;  %v1629_v30 = vld [vmem:[%s11037_s3 + $0x40] sm:$0xff] }
  0xda   : > { %6543 = vmatmul.mubr.f32.vlgmr.msra.gmra.mrb[0].mxu0 %v8203_v37  ;;  %v1630_v37 = vld [vmem:[%s11037_s3 + $0x48] sm:$0xff] }
  0xdb   : > { %6545 = vmatprep.mubr.f32.mxu0 %v8205_v38  ;;  %v1669_v38 = vand.u32 4294901760, %v1629_v30 }
  0xdd   : > { %v8877_v14 = vsub.f32 %v1629_v30, %v1669_v38 }
  0xde   : > { %6546 = vmatmul.mubr.f32.gmra.mrb[2].mxu0 %v8246_v51  ;;  %v1672_v51 = vand.u32 4294901760, %v1630_v37 }
  0xdf   : > { %6548 = vmatprep.mubr.f32.mxu0 %v8263_v60  ;;  %11369 = vst [vmem:[#allocation6_spill] sm:$0xff] %v8877_v14  ;;  %v11121_v28 = vand.u32 4294901760, %v8877_v14 }
  0xe0   : > { %v8822_v60 = vpack.c.bf16 %v1672_v51, %v1669_v38  ;;  %v8879_v50 = vsub.f32 %v1630_v37, %v1672_v51  ;;  %v8917_v37 = vsub.f32 %v1635_v42, %v1687_v45  ;;  %v8919_v38 = vsub.f32 %v1636_v6, %v1690_v46 }
  0xe1   : > { %v1945_v0 = vsub.f32 %v8877_v14, %v11121_v28 }
  0xe2   : > { %6549 = vmatmul.mubr.f32.gmra.mrb[4].mxu0 %v8290_v11  ;;  %7111 = vmatprep.subr.bf16.mxu1 %v8822_v60  ;;  %11370 = vst [vmem:[#allocation14_spill] sm:$0xff] %v8879_v50  ;;  %v11120_v31 = vand.u32 4294901760, %v8879_v50  ;;  %11375 = vst [vmem:[#allocation8_spill] sm:$0xff] %v8917_v37  ;;  %v8939_v42 = vpack.c.bf16 %v8879_v50, %v8877_v14 }
  0xe3   : > { %6551 = vmatprep.mubr.f32.mxu0 %v8341_v15  ;;  %7113 = vmatpush3.bf16.msra.mxu1 %v8822_v60  ;;  %v1946_v34 = vand.u32 4294901760, %v1945_v0  ;;  %11376 = vst [vmem:[#allocation20_spill] sm:$0xff] %v8919_v38  ;;  %v11379_v0 = vand.u32 4294901760, %v8635_v39 }
  0xe4   : > { %v1952_v22 = vsub.f32 %v8879_v50, %v11120_v31 }
  0xe6   : > { %6552 = vmatmul.mubr.f32.gmra.mrb[6].mxu0 %v8349_v5  ;;  %v1634_v5 = vld [vmem:[%s11037_s3 + $0x68] sm:$0xff]  ;;  %v1953_v12 = vand.u32 4294901760, %v1952_v22  ;;  %v8966_v22 = vsub.f32 %v8635_v39, %v11379_v0 }
  0xe7   : > { %6554 = vmatprep.mubr.f32.mxu0 %v8354_v9 }
  0xe8   : > { %v8905_v54 = vpack.c.bf16 %v1953_v12, %v1946_v34  ;;  %v11380_v34 = vand.u32 4294901760, %v8640_v18 }
  0xea   : > { %6555 = vmatmul.mubr.f32.gmra.mrb[8].mxu0 %v8356_v7  ;;  %v1632_v7 = vld [vmem:[%s11037_s3 + $0x58] sm:$0xff]  ;;  %v8971_v12 = vsub.f32 %v8640_v18, %v11380_v34 }
  0xeb   : > { %6557 = vmatprep.mubr.f32.mxu0 %v8406_v3  ;;  %v1678_v11 = vand.u32 4294901760, %v1632_v7  ;;  %v1633_v3 = vld [vmem:[%s11037_s3 + $0x60] sm:$0xff] }
  0xec   : > { %v1681_v32 = vand.u32 4294901760, %v1633_v3 }
  0xed   : > { %v8888_v20 = vsub.f32 %v1632_v7, %v1678_v11  ;;  %v11115_v7 = vand.u32 4294901760, %v8917_v37 }
  0xee   : > { %6558 = vmatmul.mubr.f32.gmra.mrb[10].mxu0 %v8408_v40  ;;  %v1631_v40 = vld [vmem:[%s11037_s3 + $0x50] sm:$0xff]  ;;  %v8901_v33 = vsub.f32 %v1633_v3, %v1681_v32 }
  0xef   : > { %6560 = vmatprep.mubr.f32.mxu0 %v8447_v19  ;;  %v1675_v9 = vand.u32 4294901760, %v1631_v40  ;;  %v1684_v19 = vand.u32 4294901760, %v1634_v5  ;;  %11372 = vst [vmem:[#allocation7_spill] sm:$0xff] %v8888_v20  ;;  %v11118_v58 = vand.u32 4294901760, %v8888_v20  ;;  %v1987_v3 = vsub.f32 %v8917_v37, %v11115_v7 }
  0xf0   : > { %11373 = vst [vmem:[#allocation18_spill] sm:$0xff] %v8901_v33  ;;  %v11117_v13 = vand.u32 4294901760, %v8901_v33 }
  0xf1   : > { %v8832_v15 = vpack.c.bf16 %v1678_v11, %v1675_v9  ;;  %v8842_v47 = vpack.c.bf16 %v1684_v19, %v1681_v32  ;;  %v8886_v36 = vsub.f32 %v1631_v40, %v1675_v9  ;;  %v1966_v63 = vsub.f32 %v8888_v20, %v11118_v58 }
  0xf2   : > { %6561 = vmatmul.mubr.f32.gmra.mrb[12].mxu0 %v8481_v23  ;;  %v11364_v23 = vand.u32 4294901760, %v8611_v62  ;;  %v8903_v2 = vsub.f32 %v1634_v5, %v1684_v19  ;;  %v1973_v43 = vsub.f32 %v8901_v33, %v11117_v13  ;;  %v11114_v9 = vand.u32 4294901760, %v8919_v38 }
  0xf3   : > { %6563 = vmatprep.mubr.f32.mxu0 %v11324_v59  ;;  %11362 = vst [vmem:[#allocation25_spill] sm:$0xff] %v8832_v15  ;;  %7115 = vmatprep.subr.bf16.mxu1 %v8832_v15  ;;  %11363 = vst [vmem:[#allocation9_spill] sm:$0xff] %v8842_v47  ;;  %v11119_v35 = vand.u32 4294901760, %v8886_v36  ;;  %v1967_v10 = vand.u32 4294901760, %v1966_v63  ;;  %v1988_v32 = vand.u32 4294901760, %v1987_v3  ;;  %v8943_v6 = vpack.c.bf16 %v8888_v20, %v8886_v36 }
  0xf4   : > { %7117 = vmatpush3.bf16.msra.mxu1 %v8832_v15  ;;  %v8847_v16 = vsub.f32 %v8611_v62, %v11364_v23  ;;  %v8864_v62 = vpack.c.bf16 %v1690_v46, %v1687_v45  ;;  %11371 = vst [vmem:[#allocation15_spill] sm:$0xff] %v8886_v36  ;;  %11374 = vst [vmem:[#allocation19_spill] sm:$0xff] %v8903_v2  ;;  %v11116_v41 = vand.u32 4294901760, %v8903_v2  ;;  %v1974_v51 = vand.u32 4294901760, %v1973_v43 }
  0xf5   : > { %7119 = vmatprep.subr.bf16.mxu1 %v8842_v47  ;;  %v1959_v17 = vsub.f32 %v8886_v36, %v11119_v35  ;;  %v1994_v5 = vsub.f32 %v8919_v38, %v11114_v9  ;;  %v8947_v45 = vpack.c.bf16 %v8903_v2, %v8901_v33  ;;  %v8951_v46 = vpack.c.bf16 %v8919_v38, %v8917_v37 }
  0xf6   : > { %6564 = vmatmul.mubr.f32.gmra.mrb[14].mxu0 %v8511_v49  ;;  %11365 = vst [vmem:[#allocation5_spill] sm:$0xff] %v8847_v16  ;;  %v11366_v49 = vand.u32 4294901760, %v8616_v26  ;;  %v11130_v29 = vand.u32 4294901760, %v8847_v16  ;;  %11368 = vst [vmem:[#allocation12_spill] sm:$0xff] %v8864_v62  ;;  %v1980_v30 = vsub.f32 %v8903_v2, %v11116_v41  ;;  %v11123_v63 = vand.u32 4294901760, %v8966_v22 }
  0xf7   : > { %v1960_v24 = vand.u32 4294901760, %v1959_v17  ;;  %v1995_v19 = vand.u32 4294901760, %v1994_v5 }
  0xf8   : > { %v8852_v53 = vsub.f32 %v8616_v26, %v11366_v49  ;;  %7121 = vmatpush3.bf16.msra.mxu1 %v8842_v47  ;;  %v1889_v26 = vsub.f32 %v8847_v16, %v11130_v29  ;;  %v1981_v40 = vand.u32 4294901760, %v1980_v30  ;;  %v1917_v3 = vsub.f32 %v8966_v22, %v11123_v63 }
  0xf9   : > { %7123 = vmatprep.subr.bf16.mxu1 %v8864_v62  ;;  %v8909_v57 = vpack.c.bf16 %v1967_v10, %v1960_v24  ;;  %v8931_v23 = vpack.c.bf16 %v1995_v19, %v1988_v32  ;;  %v11122_v24 = vand.u32 4294901760, %v8971_v12 }
  0xfa   : > { %11367 = vst [vmem:[#allocation11_spill] sm:$0xff] %v8852_v53  ;;  %v11129_v59 = vand.u32 4294901760, %v8852_v53  ;;  %v1890_v48 = vand.u32 4294901760, %v1889_v26  ;;  %v8923_v11 = vpack.c.bf16 %v1981_v40, %v1974_v51  ;;  %v8935_v49 = vpack.c.bf16 %v8852_v53, %v8847_v16 }
  0xfb   : > { %v11377_v26 = vand.u32 4294901760, %v8621_v8  ;;  %v1924_v5 = vsub.f32 %v8971_v12, %v11122_v24 }
  0xfc   : > { %v1896_v27 = vsub.f32 %v8852_v53, %v11129_v59  ;;  %7125 = vmatpush3.bf16.msra.mxu1 %v8864_v62 }
  0xfd   : > { %v1925_v58 = vand.u32 4294901760, %v1924_v5 }
  0xfe   : > { %v1897_v21 = vand.u32 4294901760, %v1896_v27  ;;  %v8956_v27 = vsub.f32 %v8621_v8, %v11377_v26  ;;  %v8976_v8 = vld [vmem:[%s11036_s2] ss:$0 sm:$0xff]  ;;  %v11381_v26 = vand.u32 4294901760, %v8664_v56 }
 0x100   : > { %v8874_v55 = vpack.c.bf16 %v1897_v21, %v1890_v48  ;;  %v11378_v48 = vand.u32 4294901760, %v8629_v25  ;;  %v11125_v17 = vand.u32 4294901760, %v8956_v27 }
 0x102   : > { %7127 = vmatprep.subr.bf16.mxu1 %v8874_v55  ;;  %v8961_v21 = vsub.f32 %v8629_v25, %v11378_v48  ;;  %v1903_v30 = vsub.f32 %v8956_v27, %v11125_v17  ;;  %v8999_v48 = vsub.f32 %v8664_v56, %v11381_v26  ;;  %v1918_v26 = vand.u32 4294901760, %v1917_v3 }
 0x104   : > { %v11124_v25 = vand.u32 4294901760, %v8961_v21  ;;  %v1904_v7 = vand.u32 4294901760, %v1903_v30  ;;  %v9034_v24 = vpack.c.bf16 %v1925_v58, %v1918_v26 }
 0x106   : > { %v1910_v51 = vsub.f32 %v8961_v21, %v11124_v25 }
 0x108   : > { %v1911_v41 = vand.u32 4294901760, %v1910_v51 }
 0x1ad   : > { %v6544_v39 = vpop.f32.mrb[0].mxu0 }
 0x1ae   : > { %v7478_v10 = vadd.f32 %v6544_v39, %v8976_v8  ;;  %v1511_v43 = vpop.f32.mrb[1].mxu0 }
 0x1af   : > { %v7479_v18 = vadd.f32 %v8976_v8, %v1511_v43 }
 0x1b0   : > { %v1606_v40 = vmax.f32 %v7478_v10, 0.0  ;;  %v11382_v10 = vand.u32 4294901760, %v8669_v4 }
 0x1b1   : > { %v1605_v32 = vmax.f32 %v7479_v18, 0.0  ;;  %v6547_v19 = vpop.f32.mrb[2].mxu0 }
 0x1b2   : > { %v9001_v0 = vand.u32 4294901760, %v1606_v40  ;;  %v7480_v34 = vadd.f32 %v6547_v19, %v8976_v8  ;;  %v1523_v39 = vpop.f32.mrb[3].mxu0  ;;  %v9007_v43 = vsub.f32 %v8669_v4, %v11382_v10  ;;  %v11128_v4 = vand.u32 4294901760, %v8999_v48 }
 0x1b3   : > { %v9009_v9 = vand.u32 4294901760, %v1605_v32  ;;  %v7481_v18 = vadd.f32 %v8976_v8, %v1523_v39 }
 0x1b4   : > { %v9013_v13 = vsub.f32 %v1606_v40, %v9001_v0  ;;  %v1608_v56 = vmax.f32 %v7480_v34, 0.0  ;;  %v11132_v51 = vand.u32 4294901760, %v9007_v43 }
 0x1b5   : > { %v9016_v19 = vsub.f32 %v1605_v32, %v9009_v9  ;;  %v1607_v35 = vmax.f32 %v7481_v18, 0.0  ;;  %v6550_v31 = vpop.f32.mrb[4].mxu0  ;;  %v7130_v32 = vpack.c.bf16 %v1911_v41, %v1904_v7  ;;  %v1931_v41 = vsub.f32 %v8999_v48, %v11128_v4 }
 0x1b6   : > { %v9019_v10 = vand.u32 4294901760, %v1608_v56  ;;  %v7482_v28 = vadd.f32 %v6550_v31, %v8976_v8  ;;  %v1535_v39 = vpop.f32.mrb[5].mxu0  ;;  %v11126_v30 = vand.u32 4294901760, %v9013_v13 }
 0x1b7   : > { %v9024_v40 = vand.u32 4294901760, %v1607_v35  ;;  %v7483_v3 = vadd.f32 %v8976_v8, %v1535_v39  ;;  %v11127_v5 = vand.u32 4294901760, %v9016_v19 }
 0x1b8   : > { %v9029_v34 = vsub.f32 %v1608_v56, %v9019_v10  ;;  %v1610_v18 = vmax.f32 %v7482_v28, 0.0  ;;  %v1738_v31 = vsub.f32 %v9013_v13, %v11126_v30 }
 0x1b9   : > { %v9037_v63 = vsub.f32 %v1607_v35, %v9024_v40  ;;  %v1609_v25 = vmax.f32 %v7483_v3, 0.0  ;;  %v6553_v17 = vpop.f32.mrb[6].mxu0  ;;  %v1728_v39 = vsub.f32 %v9016_v19, %v11127_v5  ;;  %v1938_v35 = vsub.f32 %v9007_v43, %v11132_v51 }
 0x1ba   : > { %v9045_v28 = vand.u32 4294901760, %v1610_v18  ;;  %v7484_v7 = vadd.f32 %v6553_v17, %v8976_v8  ;;  %v1547_v56 = vpop.f32.mrb[7].mxu0  ;;  %v11135_v58 = vand.u32 4294901760, %v9029_v34  ;;  %v1739_v29 = vand.u32 4294901760, %v1738_v31 }
 0x1bb   : > { %v9052_v26 = vand.u32 4294901760, %v1609_v25  ;;  %v7485_v3 = vadd.f32 %v8976_v8, %v1547_v56  ;;  %v1729_v30 = vand.u32 4294901760, %v1728_v39  ;;  %v11137_v5 = vand.u32 4294901760, %v9037_v63 }
 0x1bc   : > { %v9057_v4 = vsub.f32 %v1610_v18, %v9045_v28  ;;  %v1612_v59 = vmax.f32 %v7484_v7, 0.0  ;;  %v1758_v17 = vsub.f32 %v9029_v34, %v11135_v58  ;;  %v1932_v56 = vand.u32 4294901760, %v1931_v41 }
 0x1bd   : > { %v9063_v38 = vsub.f32 %v1609_v25, %v9052_v26  ;;  %v1611_v51 = vmax.f32 %v7485_v3, 0.0  ;;  %v6556_v37 = vpop.f32.mrb[8].mxu0  ;;  %6598 = vmatprep.mubr.f32.mxu1 %v1729_v30  ;;  %v1748_v39 = vsub.f32 %v9037_v63, %v11137_v5  ;;  %v1939_v58 = vand.u32 4294901760, %v1938_v35 }
 0x1be   : > { %v9068_v2 = vand.u32 4294901760, %v1612_v59  ;;  %v7486_v18 = vadd.f32 %v6556_v37, %v8976_v8  ;;  %v1559_v31 = vpop.f32.mrb[9].mxu0  ;;  %6599 = vmatmul.mubr.f32.vlgmr.msra.gmra.mrb[0].mxu1 %v1739_v29  ;;  %v11140_v7 = vand.u32 4294901760, %v9057_v4  ;;  %v1759_v20 = vand.u32 4294901760, %v1758_v17 }
 0x1bf   : > { %v9072_v33 = vand.u32 4294901760, %v1611_v51  ;;  %v7487_v25 = vadd.f32 %v8976_v8, %v1559_v31  ;;  %7129 = vmatpush3.bf16.msra.mxu1 %v8874_v55  ;;  %v1749_v30 = vand.u32 4294901760, %v1748_v39  ;;  %v11142_v3 = vand.u32 4294901760, %v9063_v38 }
 0x1c0   : > { %v9078_v41 = vsub.f32 %v1612_v59, %v9068_v2  ;;  %v1614_v5 = vmax.f32 %v7486_v18, 0.0  ;;  %7131 = vmatprep.subr.bf16.mxu1 %v7130_v32  ;;  %v1778_v29 = vsub.f32 %v9057_v4, %v11140_v7  ;;  %v7138_v36 = vpack.c.bf16 %v1939_v58, %v1932_v56 }
 0x1c1   : > { %v9084_v37 = vsub.f32 %v1611_v51, %v9072_v33  ;;  %v1613_v35 = vmax.f32 %v7487_v25, 0.0  ;;  %v6559_v31 = vpop.f32.mrb[10].mxu0  ;;  %6601 = vmatprep.mubr.f32.mxu1 %v1749_v30  ;;  %v1768_v55 = vsub.f32 %v9063_v38, %v11142_v3 }
 0x1c2   : > { %v9089_v39 = vand.u32 4294901760, %v1614_v5  ;;  %v7488_v59 = vadd.f32 %v6559_v31, %v8976_v8  ;;  %v1571_v17 = vpop.f32.mrb[11].mxu0  ;;  %6602 = vmatmul.mubr.f32.gmra.mrb[2].mxu1 %v1759_v20  ;;  %v11144_v18 = vand.u32 4294901760, %v9078_v41  ;;  %v1779_v14 = vand.u32 4294901760, %v1778_v29 }
 0x1c3   : > { %v9093_v7 = vand.u32 4294901760, %v1613_v35  ;;  %v7489_v51 = vadd.f32 %v8976_v8, %v1571_v17  ;;  %7133 = vmatpush3.bf16.msra.mxu1 %v7130_v32  ;;  %v1769_v25 = vand.u32 4294901760, %v1768_v55  ;;  %v11145_v30 = vand.u32 4294901760, %v9084_v37 }
 0x1c4   : > { %v9098_v50 = vsub.f32 %v1614_v5, %v9089_v39  ;;  %v1616_v3 = vmax.f32 %v7488_v59, 0.0  ;;  %7135 = vmatprep.subr.bf16.mxu1 %v9034_v24  ;;  %v1798_v20 = vsub.f32 %v9078_v41, %v11144_v18 }
 0x1c5   : > { %v9105_v58 = vsub.f32 %v1613_v35, %v9093_v7  ;;  %v1615_v56 = vmax.f32 %v7489_v51, 0.0  ;;  %v6562_v31 = vpop.f32.mrb[12].mxu0  ;;  %6604 = vmatprep.mubr.f32.mxu1 %v1769_v25  ;;  %v1788_v32 = vsub.f32 %v9084_v37, %v11145_v30 }
 0x1c6   : > { %v9110_v5 = vand.u32 4294901760, %v1616_v3  ;;  %v7490_v29 = vadd.f32 %v6562_v31, %v8976_v8  ;;  %v1583_v55 = vpop.f32.mrb[13].mxu0  ;;  %6605 = vmatmul.mubr.f32.gmra.mrb[4].mxu1 %v1779_v14  ;;  %v11150_v59 = vand.u32 4294901760, %v9098_v50  ;;  %v1799_v53 = vand.u32 4294901760, %v1798_v20 }
 0x1c7   : > { %v9114_v17 = vand.u32 4294901760, %v1615_v56  ;;  %v7491_v35 = vadd.f32 %v8976_v8, %v1583_v55  ;;  %7137 = vmatpush3.bf16.msra.mxu1 %v9034_v24  ;;  %v1789_v51 = vand.u32 4294901760, %v1788_v32  ;;  %v11151_v25 = vand.u32 4294901760, %v9105_v58 }
 0x1c8   : > { %v9120_v18 = vsub.f32 %v1616_v3, %v9110_v5  ;;  %v1618_v30 = vmax.f32 %v7490_v29, 0.0  ;;  %7139 = vmatprep.subr.bf16.mxu1 %v7138_v36  ;;  %v1818_v14 = vsub.f32 %v9098_v50, %v11150_v59 }
 0x1c9   : > { %v9126_v31 = vsub.f32 %v1615_v56, %v9114_v17  ;;  %v1617_v16 = vmax.f32 %v7491_v35, 0.0  ;;  %v6565_v55 = vpop.f32.mrb[14].mxu0  ;;  %6607 = vmatprep.mubr.f32.mxu1 %v1789_v51  ;;  %v1808_v24 = vsub.f32 %v9105_v58, %v11151_v25 }
 0x1ca   : > { %v9131_v32 = vand.u32 4294901760, %v1618_v30  ;;  %v7492_v3 = vadd.f32 %v6565_v55, %v8976_v8  ;;  %v1595_v20 = vpop.f32.mrb[15].mxu0  ;;  %6608 = vmatmul.mubr.f32.gmra.mrb[6].mxu1 %v1799_v53  ;;  %v11160_v29 = vand.u32 4294901760, %v9120_v18  ;;  %v1819_v47 = vand.u32 4294901760, %v1818_v14 }
 0x1cb   : > { %v9135_v62 = vand.u32 4294901760, %v1617_v16  ;;  %v7493_v56 = vadd.f32 %v8976_v8, %v1595_v20  ;;  %7141 = vmatpush3.bf16.msra.mxu1 %v7138_v36  ;;  %v1809_v35 = vand.u32 4294901760, %v1808_v24  ;;  %v11161_v51 = vand.u32 4294901760, %v9126_v31 }
 0x1cc   : > { %11383 = vst [vmem:[#allocation21_spill] sm:$0xff] %v9131_v32  ;;  %v9140_v59 = vsub.f32 %v1618_v30, %v9131_v32  ;;  %v1620_v25 = vmax.f32 %v7492_v3, 0.0  ;;  %7143 = vmatprep.subr.bf16.mxu1 %v8905_v54  ;;  %v1838_v53 = vsub.f32 %v9120_v18, %v11160_v29  ;;  %v2957_v29 = vld [vmem:[%s11039_s5 + $0x58] sm:$0xff] }
 0x1cd   : > { %v9147_v55 = vsub.f32 %v1617_v16, %v9135_v62  ;;  %v1619_v15 = vmax.f32 %v7493_v56, 0.0  ;;  %6610 = vmatprep.mubr.f32.mxu1 %v1809_v35  ;;  %v1828_v36 = vsub.f32 %v9126_v31, %v11161_v51  ;;  %v2954_v51 = vld [vmem:[%s11039_s5 + $0x40] sm:$0xff] }
 0x1ce   : > { %v9152_v8 = vand.u32 4294901760, %v1620_v25  ;;  %6611 = vmatmul.mubr.f32.gmra.mrb[8].mxu1 %v1819_v47  ;;  %v11158_v30 = vand.u32 4294901760, %v9140_v59  ;;  %v1839_v20 = vand.u32 4294901760, %v1838_v53 }
 0x1cf   : > { %v9155_v14 = vand.u32 4294901760, %v1619_v15  ;;  %7145 = vmatpush3.bf16.msra.mxu1 %v8905_v54  ;;  %v1829_v24 = vand.u32 4294901760, %v1828_v36  ;;  %v11159_v3 = vand.u32 4294901760, %v9147_v55 }
 0x1d0   : > { %11384 = vst [vmem:[#allocation10_spill] sm:$0xff] %v9152_v8  ;;  %v9160_v16 = vsub.f32 %v1620_v25, %v9152_v8  ;;  %7147 = vmatprep.subr.bf16.mxu1 %v8909_v57  ;;  %v1858_v56 = vsub.f32 %v9140_v59, %v11158_v30 }
 0x1d1   : > { %11385 = vst [vmem:[#allocation22_spill] sm:$0xff] %v9155_v14  ;;  %v9167_v47 = vsub.f32 %v1619_v15, %v9155_v14  ;;  %6613 = vmatprep.mubr.f32.mxu1 %v1829_v24  ;;  %v1848_v54 = vsub.f32 %v9147_v55, %v11159_v3 }
 0x1d2   : > { %6614 = vmatmul.mubr.f32.gmra.mrb[10].mxu1 %v1839_v20  ;;  %v11156_v35 = vand.u32 4294901760, %v9160_v16  ;;  %v1859_v36 = vand.u32 4294901760, %v1858_v56  ;;  %v7162_v56 = vpack.c.bf16 %v8961_v21, %v8956_v27 }
 0x1d3   : > { %7149 = vmatpush3.bf16.msra.mxu1 %v8909_v57  ;;  %v1849_v25 = vand.u32 4294901760, %v1848_v54  ;;  %v11157_v53 = vand.u32 4294901760, %v9167_v47 }
 0x1d4   : > { %7151 = vmatprep.subr.bf16.mxu1 %v8923_v11  ;;  %v1878_v15 = vsub.f32 %v9160_v16, %v11156_v35 }
 0x1d5   : > { %6616 = vmatprep.mubr.f32.mxu1 %v1849_v25  ;;  %v1868_v24 = vsub.f32 %v9167_v47, %v11157_v53  ;;  %v2948_v25 = vld [vmem:[%s11039_s5 + $0x10] sm:$0xff] }
 0x1d6   : > { %6617 = vmatmul.mubr.f32.gmra.mrb[12].mxu1 %v1859_v36  ;;  %v1879_v57 = vand.u32 4294901760, %v1878_v15  ;;  %v2951_v15 = vld [vmem:[%s11039_s5 + $0x28] sm:$0xff] }
 0x1d7   : > { %7153 = vmatpush3.bf16.msra.mxu1 %v8923_v11  ;;  %v1869_v20 = vand.u32 4294901760, %v1868_v24  ;;  %v7166_v11 = vpack.c.bf16 %v8971_v12, %v8966_v22  ;;  %v2953_v24 = vld [vmem:[%s11039_s5 + $0x38] sm:$0xff] }
 0x1d8   : > { %7155 = vmatprep.subr.bf16.mxu1 %v8931_v23 }
 0x1d9   : > { %6619 = vmatprep.mubr.f32.mxu1 %v1869_v20  ;;  %v2986_v20 = vand.u32 4294901760, %v2951_v15 }
 0x1da   : > { %6620 = vmatmul.mubr.f32.gmra.mrb[14].mxu1 %v1879_v57  ;;  %v2990_v57 = vand.u32 4294901760, %v2953_v24 }
 0x1db   : > { %7157 = vmatpush3.bf16.msra.mxu1 %v8931_v23  ;;  %6654 = vmatprep.mubr.f32.mxu1 %v9009_v9  ;;  %v7170_v23 = vpack.c.bf16 %v9007_v43, %v8999_v48 }
 0x1dc   : > { %7159 = vmatprep.subr.bf16.mxu1 %v8935_v49 }
 0x1de   : > { %6655 = vmatmul.mubr.f32.vlgmr.msra.gmra.mrb[0].mxu1 %v9001_v0 }
 0x1df   : > { %6657 = vmatprep.mubr.f32.mxu1 %v9024_v40  ;;  %7161 = vmatpush3.bf16.msra.mxu1 %v8935_v49  ;;  %v2947_v49 = vld [vmem:[%s11039_s5 + $0x8] sm:$0xff] }
 0x1e0   : > { %7163 = vmatprep.subr.bf16.mxu1 %v7162_v56 }
 0x1e2   : > { %6658 = vmatmul.mubr.f32.gmra.mrb[2].mxu1 %v9019_v10 }
 0x1e3   : > { %6660 = vmatprep.mubr.f32.mxu1 %v9052_v26  ;;  %7165 = vmatpush3.bf16.msra.mxu1 %v7162_v56  ;;  %v2950_v56 = vld [vmem:[%s11039_s5 + $0x20] sm:$0xff] }
 0x1e4   : > { %7167 = vmatprep.subr.bf16.mxu1 %v7166_v11 }
 0x1e6   : > { %6661 = vmatmul.mubr.f32.gmra.mrb[4].mxu1 %v9045_v28 }
 0x1e7   : > { %6663 = vmatprep.mubr.f32.mxu1 %v9072_v33  ;;  %7169 = vmatpush3.bf16.msra.mxu1 %v7166_v11  ;;  %v2952_v11 = vld [vmem:[%s11039_s5 + $0x30] sm:$0xff] }
 0x1e8   : > { %7171 = vmatprep.subr.bf16.mxu1 %v7170_v23 }
 0x1ea   : > { %6664 = vmatmul.mubr.f32.gmra.mrb[6].mxu1 %v9068_v2 }
 0x1eb   : > { %6666 = vmatprep.mubr.f32.mxu1 %v9093_v7  ;;  %7173 = vmatpush3.bf16.msra.mxu1 %v7170_v23  ;;  %v2955_v23 = vld [vmem:[%s11039_s5 + $0x48] sm:$0xff] }
 0x1ec   : > { %7175 = vmatprep.subr.bf16.mxu1 %v8939_v42 }
 0x1ee   : > { %6667 = vmatmul.mubr.f32.gmra.mrb[8].mxu1 %v9089_v39 }
 0x1ef   : > { %6669 = vmatprep.mubr.f32.mxu1 %v9114_v17  ;;  %7177 = vmatpush3.bf16.msra.mxu1 %v8939_v42  ;;  %v2949_v42 = vld [vmem:[%s11039_s5 + $0x18] sm:$0xff] }
 0x1f0   : > { %7179 = vmatprep.subr.bf16.mxu1 %v8943_v6  ;;  %v2982_v54 = vand.u32 4294901760, %v2949_v42 }
 0x1f2   : > { %6670 = vmatmul.mubr.f32.gmra.mrb[10].mxu1 %v9110_v5  ;;  %v9250_v30 = vsub.f32 %v2949_v42, %v2982_v54 }
 0x1f3   : > { %6672 = vmatprep.mubr.f32.mxu1 %v9135_v62  ;;  %7181 = vmatpush3.bf16.msra.mxu1 %v8943_v6  ;;  %v2946_v6 = vld [vmem:[%s11039_s5] sm:$0xff] }
 0x1f4   : > { %7183 = vmatprep.subr.bf16.mxu1 %v8947_v45  ;;  %v2980_v36 = vand.u32 4294901760, %v2946_v6  ;;  %11388 = vst [vmem:[#allocation24_spill] sm:$0xff] %v9250_v30  ;;  %v2988_v30 = vand.u32 4294901760, %v2950_v56 }
 0x1f6   : > { %6673 = vmatmul.mubr.f32.gmra.mrb[12].mxu1 %v9131_v32  ;;  %v9252_v3 = vsub.f32 %v2946_v6, %v2980_v36  ;;  %v9268_v6 = vpack.c.bf16 %v2990_v57, %v2986_v20  ;;  %v2963_v32 = vld [vmem:[%s11039_s5 + $0x88] sm:$0xff] }
 0x1f7   : > { %6675 = vmatprep.mubr.f32.mxu1 %v9155_v14  ;;  %7185 = vmatpush3.bf16.msra.mxu1 %v8947_v45  ;;  %v2978_v45 = vand.u32 4294901760, %v2947_v49 }
 0x1f8   : > { %7187 = vmatprep.subr.bf16.mxu1 %v8951_v46  ;;  %11389 = vst [vmem:[#allocation16_spill] sm:$0xff] %v9252_v3  ;;  %11392 = vst [vmem:[#allocation27_spill] sm:$0xff] %v9268_v6  ;;  %v9277_v3 = vsub.f32 %v2953_v24, %v2990_v57  ;;  %v2958_v24 = vld [vmem:[%s11039_s5 + $0x60] sm:$0xff] }
 0x1f9   : > { %v9246_v35 = vpack.c.bf16 %v2982_v54, %v2978_v45  ;;  %v9248_v53 = vsub.f32 %v2947_v49, %v2978_v45  ;;  %v9270_v45 = vsub.f32 %v2951_v15, %v2986_v20  ;;  %v2959_v54 = vld [vmem:[%s11039_s5 + $0x68] sm:$0xff]  ;;  %v2998_v15 = vand.u32 4294901760, %v2957_v29 }
 0x1fa   : > { %6676 = vmatmul.mubr.f32.gmra.mrb[14].mxu1 %v9152_v8  ;;  %v2956_v8 = vld [vmem:[%s11039_s5 + $0x50] sm:$0xff]  ;;  %11394 = vst [vmem:[#allocation29_spill] sm:$0xff] %v9277_v3  ;;  %v9290_v3 = vsub.f32 %v2950_v56, %v2988_v30  ;;  %v2965_v56 = vld [vmem:[%s11039_s5 + $0x98] sm:$0xff] }
 0x1fb   : > { %7189 = vmatpush3.bf16.msra.mxu1 %v8951_v46  ;;  %6710 = vmatprep.mubr.f32.mxu1 %v9016_v19  ;;  %v2984_v46 = vand.u32 4294901760, %v2948_v25  ;;  %11386 = vst [vmem:[#allocation23_spill] sm:$0xff] %v9246_v35  ;;  %11387 = vst [vmem:[#allocation13_spill] sm:$0xff] %v9248_v53  ;;  %v2992_v53 = vand.u32 4294901760, %v2952_v11  ;;  %v3000_v20 = vand.u32 4294901760, %v2956_v8 }
 0x1fc   : > { %7191 = vmatprep.subr.bf16.mxu1 %v8648_v1  ;;  %11393 = vst [vmem:[#allocation28_spill] sm:$0xff] %v9270_v45  ;;  %7383 = vmatprep.subr.bf16.mxu0 %v9246_v35  ;;  %v3002_v45 = vand.u32 4294901760, %v2959_v54  ;;  %11396 = vst [vmem:[#allocation31_spill] sm:$0xff] %v9290_v3  ;;  %v2960_v35 = vld [vmem:[%s11039_s5 + $0x70] sm:$0xff] }
 0x1fd   : > { %v9264_v49 = vpack.c.bf16 %v2984_v46, %v2980_v36  ;;  %v9266_v42 = vsub.f32 %v2948_v25, %v2984_v46  ;;  %v2994_v36 = vand.u32 4294901760, %v2955_v23  ;;  %v2961_v25 = vld [vmem:[%s11039_s5 + $0x78] sm:$0xff]  ;;  %v2996_v46 = vand.u32 4294901760, %v2954_v51 }
 0x1fe   : > { %6711 = vmatmul.mubr.f32.vlgmr.msra.gmra.mrb[0].mxu1 %v9013_v13  ;;  %v9288_v57 = vpack.c.bf16 %v2992_v53, %v2988_v30  ;;  %v9306_v30 = vsub.f32 %v2957_v29, %v2998_v15  ;;  %v2962_v29 = vld [vmem:[%s11039_s5 + $0x80] sm:$0xff] }
 0x1ff   : > { %11390 = vst [vmem:[#allocation17_spill] sm:$0xff] %v9264_v49  ;;  %11391 = vst [vmem:[#allocation26_spill] sm:$0xff] %v9266_v42  ;;  %6713 = vmatprep.mubr.f32.mxu1 %v9037_v63  ;;  %7193 = vmatpush3.bf16.msra.mxu1 %v8648_v1  ;;  %v9292_v42 = vsub.f32 %v2952_v11, %v2992_v53  ;;  %v9294_v14 = vsub.f32 %v2955_v23, %v2994_v36  ;;  %v3006_v53 = vand.u32 4294901760, %v2961_v25 }
 0x200   : > { %7195 = vmatprep.subr.bf16.mxu1 %v8655_v61  ;;  %7385 = vmatpush1.bf16.msra.mxu0 %v9264_v49  ;;  %11395 = vst [vmem:[#allocation30_spill] sm:$0xff] %v9288_v57  ;;  %v9304_v49 = vpack.c.bf16 %v2998_v15, %v2994_v36  ;;  %11400 = vst [vmem:[#allocation35_spill] sm:$0xff] %v9306_v30  ;;  %v9313_v11 = vsub.f32 %v2954_v51, %v2996_v46  ;;  %v2964_v36 = vld [vmem:[%s11039_s5 + $0x90] sm:$0xff]  ;;  %v3008_v30 = vand.u32 4294901760, %v2960_v35 }
 0x201   : > { %11397 = vst [vmem:[#allocation32_spill] sm:$0xff] %v9292_v42  ;;  %11398 = vst [vmem:[#allocation33_spill] sm:$0xff] %v9294_v14  ;;  %7387 = vmatprep.subr.bf16.mxu0 %v9268_v6  ;;  %v9315_v23 = vsub.f32 %v2956_v8, %v3000_v20  ;;  %v9317_v14 = vsub.f32 %v2959_v54, %v3002_v45  ;;  %v3004_v42 = vand.u32 4294901760, %v2958_v24  ;;  %v3010_v51 = vand.u32 4294901760, %v2963_v32 }
 0x202   : > { %6714 = vmatmul.mubr.f32.gmra.mrb[2].mxu1 %v9029_v34  ;;  %11399 = vst [vmem:[#allocation34_spill] sm:$0xff] %v9304_v49  ;;  %11401 = vst [vmem:[#allocation36_spill] sm:$0xff] %v9313_v11  ;;  %v9326_v15 = vsub.f32 %v2961_v25, %v3006_v53  ;;  %v9329_v8 = vpack.c.bf16 %v3000_v20, %v2996_v46  ;;  %v9331_v54 = vpack.c.bf16 %v3006_v53, %v3002_v45  ;;  %v11415_v53 = vld [vmem:[#allocation12_spill] sm:$0xff] }
 0x203   : > { %6716 = vmatprep.mubr.f32.mxu1 %v9063_v38  ;;  %7197 = vmatpush3.bf16.msra.mxu1 %v8655_v61  ;;  %11402 = vst [vmem:[#allocation37_spill] sm:$0xff] %v9315_v23  ;;  %11403 = vst [vmem:[#allocation38_spill] sm:$0xff] %v9317_v14  ;;  %v9333_v14 = vsub.f32 %v2958_v24, %v3004_v42  ;;  %v3014_v23 = vand.u32 4294901760, %v2965_v56  ;;  %v9337_v11 = vsub.f32 %v2960_v35, %v3008_v30 }
 0x204   : > { %7199 = vmatprep.subr.bf16.mxu1 %v8680_v44  ;;  %11404 = vst [vmem:[#allocation39_spill] sm:$0xff] %v9326_v15  ;;  %7389 = vmatpush1.bf16.msra.mxu0 %v9288_v57  ;;  %11405 = vst [vmem:[#allocation40_spill] sm:$0xff] %v9329_v8  ;;  %v9339_v3 = vsub.f32 %v2963_v32, %v3010_v51  ;;  %v3012_v25 = vand.u32 4294901760, %v2962_v29  ;;  %v3016_v15 = vand.u32 4294901760, %v2964_v36 }
 0x205   : > { %11406 = vst [vmem:[#allocation41_spill] sm:$0xff] %v9331_v54  ;;  %7391 = vmatprep.subr.bf16.mxu0 %v9304_v49  ;;  %v9343_v46 = vsub.f32 %v2965_v56, %v3014_v23  ;;  %v9351_v35 = vpack.c.bf16 %v3008_v30, %v3004_v42  ;;  %v9355_v32 = vpack.c.bf16 %v3014_v23, %v3010_v51  ;;  %v11413_v42 = vld [vmem:[#allocation25_spill] sm:$0xff]  ;;  %v11420_v51 = vand.u32 4294901760, %v9016_v19 }
 0x206   : > { %6717 = vmatmul.mubr.f32.gmra.mrb[4].mxu1 %v9057_v4  ;;  %v9346_v45 = vsub.f32 %v2962_v29, %v3012_v25  ;;  %v9348_v20 = vsub.f32 %v2964_v36, %v3016_v15  ;;  %v9361_v24 = vpack.c.bf16 %v3016_v15, %v3012_v25  ;;  %v11414_v30 = vld [vmem:[#allocation9_spill] sm:$0xff]  ;;  %v11418_v29 = vld [vmem:[#allocation11_spill] sm:$0xff]  ;;  %v11421_v25 = vand.u32 4294901760, %v8956_v27 }
 0x207   : > { %6719 = vmatprep.mubr.f32.mxu1 %v9084_v37  ;;  %7201 = vmatpush3.bf16.msra.mxu1 %v8680_v44  ;;  %11407 = vst [vmem:[#allocation42_spill] sm:$0xff] %v9343_v46  ;;  %11410 = vst [vmem:[#allocation45_spill] sm:$0xff] %v9351_v35  ;;  %v11416_v56 = vld [vmem:[#allocation5_spill] sm:$0xff]  ;;  %v11419_v36 = vand.u32 4294901760, %v11418_v29  ;;  %v11423_v46 = vand.u32 4294901760, %v9013_v13  ;;  %v11426_v29 = vand.u32 4294901760, %v8971_v12 }
 0x208   : > { %7203 = vmatprep.subr.bf16.mxu1 %v8694_v52  ;;  %11408 = vst [vmem:[#allocation43_spill] sm:$0xff] %v9346_v45  ;;  %11409 = vst [vmem:[#allocation44_spill] sm:$0xff] %v9348_v20  ;;  %7393 = vmatpush1.bf16.msra.mxu0 %v9329_v8  ;;  %v11417_v23 = vand.u32 4294901760, %v11416_v56  ;;  %v11422_v20 = vand.u32 4294901760, %v8961_v21  ;;  %v11424_v56 = vand.u32 4294901760, %v9037_v63  ;;  %v11428_v27 = vand.u32 4294901760, %v9063_v38 }
 0x209   : > { %7395 = vmatprep.subr.bf16.mxu0 %v9331_v54  ;;  %11411 = vst [vmem:[#allocation46_spill] sm:$0xff] %v9355_v32  ;;  %11412 = vst [vmem:[#allocation47_spill] sm:$0xff] %v9361_v24  ;;  %v11429_v13 = vand.u32 4294901760, %v8999_v48  ;;  %v11430_v21 = vand.u32 4294901760, %v9007_v43  ;;  %v11433_v12 = vld [vmem:[#allocation6_spill] sm:$0xff]  ;;  %v11438_v48 = vand.u32 4294901760, %v9105_v58 }
 0x20a   : > { %6720 = vmatmul.mubr.f32.gmra.mrb[6].mxu1 %v9078_v41  ;;  %v7222_v15 = vpack.c.bf16 %v11419_v36, %v11417_v23  ;;  %v7226_v45 = vpack.c.bf16 %v11422_v20, %v11421_v25  ;;  %v11425_v23 = vand.u32 4294901760, %v8966_v22  ;;  %v11427_v36 = vand.u32 4294901760, %v9029_v34  ;;  %v11435_v20 = vld [vmem:[#allocation14_spill] sm:$0xff]  ;;  %v11439_v43 = vld [vmem:[#allocation15_spill] sm:$0xff] }
 0x20b   : > { %6722 = vmatprep.mubr.f32.mxu1 %v9105_v58  ;;  %7205 = vmatpush3.bf16.msra.mxu1 %v8694_v52  ;;  %v7234_v63 = vpack.c.bf16 %v11430_v21, %v11429_v13  ;;  %v11432_v22 = vand.u32 4294901760, %v9084_v37  ;;  %v11434_v34 = vand.u32 4294901760, %v11433_v12  ;;  %v11436_v38 = vand.u32 4294901760, %v11435_v20  ;;  %v2975_v20 = vld [vmem:[%s11039_s5 + $0xe8] sm:$0xff] }
 0x20c   : > { %7207 = vmatprep.subr.bf16.mxu1 %v8822_v60  ;;  %7397 = vmatpush1.bf16.msra.mxu0 %v9351_v35  ;;  %v7230_v19 = vpack.c.bf16 %v11426_v29, %v11425_v23  ;;  %v11444_v23 = vand.u32 4294901760, %v9126_v31  ;;  %v11450_v13 = vand.u32 4294901760, %v9147_v55  ;;  %v11456_v12 = vand.u32 4294901760, %v9167_v47 }
 0x20d   : > { %7399 = vmatprep.subr.bf16.mxu0 %v9355_v32 }
 0x20e   : > { %6723 = vmatmul.mubr.f32.gmra.mrb[8].mxu1 %v9098_v50 }
 0x20f   : > { %6725 = vmatprep.mubr.f32.mxu1 %v9126_v31  ;;  %7209 = vmatpush3.bf16.msra.mxu1 %v8822_v60 }
 0x210   : > { %7211 = vmatprep.subr.bf16.mxu1 %v11413_v42  ;;  %7401 = vmatpush1.bf16.msra.mxu0 %v9361_v24 }
 0x212   : > { %6726 = vmatmul.mubr.f32.gmra.mrb[10].mxu1 %v9120_v18 }
 0x213   : > { %6728 = vmatprep.mubr.f32.mxu1 %v9147_v55  ;;  %7213 = vmatpush3.bf16.msra.mxu1 %v11413_v42  ;;  %v2970_v55 = vld [vmem:[%s11039_s5 + $0xc0] sm:$0xff] }
 0x214   : > { %7215 = vmatprep.subr.bf16.mxu1 %v11414_v30 }
 0x216   : > { %6729 = vmatmul.mubr.f32.gmra.mrb[12].mxu1 %v9140_v59 }
 0x217   : > { %6731 = vmatprep.mubr.f32.mxu1 %v9167_v47  ;;  %7217 = vmatpush3.bf16.msra.mxu1 %v11414_v30  ;;  %v3028_v47 = vand.u32 4294901760, %v2970_v55 }
 0x218   : > { %7219 = vmatprep.subr.bf16.mxu1 %v11415_v53 }
 0x21a   : > { %6732 = vmatmul.mubr.f32.gmra.mrb[14].mxu1 %v9160_v16 }
 0x21b   : > { %7221 = vmatpush3.bf16.msra.mxu1 %v11415_v53  ;;  %6766 = vmatprep.mubr.f32.mxu1 %v11420_v51  ;;  %v11441_v51 = vld [vmem:[#allocation7_spill] sm:$0xff] }
 0x21c   : > { %7223 = vmatprep.subr.bf16.mxu1 %v7222_v15  ;;  %v11442_v37 = vand.u32 4294901760, %v11441_v51  ;;  %v2974_v51 = vld [vmem:[%s11039_s5 + $0xe0] sm:$0xff] }
 0x21e   : > { %6767 = vmatmul.mubr.f32.vlgmr.msra.gmra.mrb[0].mxu1 %v11423_v46  ;;  %v11431_v46 = vand.u32 4294901760, %v9057_v4  ;;  %v11440_v4 = vand.u32 4294901760, %v11439_v43  ;;  %v3034_v43 = vand.u32 4294901760, %v2975_v20 }
 0x21f   : > { %6769 = vmatprep.mubr.f32.mxu1 %v11424_v56  ;;  %7225 = vmatpush3.bf16.msra.mxu1 %v7222_v15  ;;  %v7238_v15 = vpack.c.bf16 %v11436_v38, %v11434_v34  ;;  %v11443_v56 = vand.u32 4294901760, %v9098_v50  ;;  %v11451_v50 = vld [vmem:[#allocation8_spill] sm:$0xff] }
 0x220   : > { %7227 = vmatprep.subr.bf16.mxu1 %v7226_v45  ;;  %v7242_v25 = vpack.c.bf16 %v11442_v37, %v11440_v4  ;;  %v11452_v21 = vand.u32 4294901760, %v11451_v50  ;;  %v2977_v38 = vld [vmem:[%s11039_s5 + $0xf8] sm:$0xff]  ;;  %v2976_v37 = vld [vmem:[%s11039_s5 + $0xf0] sm:$0xff]  ;;  %v9579_v50 = vsub.f32 %v2975_v20, %v3034_v43 }
 0x221   : > { %v3038_v4 = vand.u32 4294901760, %v2977_v38 }
 0x222   : > { %6770 = vmatmul.mubr.f32.gmra.mrb[2].mxu1 %v11427_v36 }
 0x223   : > { %6772 = vmatprep.mubr.f32.mxu1 %v11428_v27  ;;  %7229 = vmatpush3.bf16.msra.mxu1 %v7226_v45  ;;  %v11437_v45 = vand.u32 4294901760, %v9078_v41  ;;  %v11445_v41 = vld [vmem:[#allocation18_spill] sm:$0xff]  ;;  %v11449_v27 = vand.u32 4294901760, %v9120_v18  ;;  %v11457_v18 = vand.u32 4294901760, %v9160_v16  ;;  %v2972_v16 = vld [vmem:[%s11039_s5 + $0xd0] sm:$0xff] }
 0x224   : > { %7231 = vmatprep.subr.bf16.mxu1 %v7230_v19  ;;  %v11446_v29 = vand.u32 4294901760, %v11445_v41 }
 0x226   : > { %6773 = vmatmul.mubr.f32.gmra.mrb[4].mxu1 %v11431_v46 }
 0x227   : > { %6775 = vmatprep.mubr.f32.mxu1 %v11432_v22  ;;  %7233 = vmatpush3.bf16.msra.mxu1 %v7230_v19  ;;  %v11447_v19 = vld [vmem:[#allocation19_spill] sm:$0xff]  ;;  %v11455_v22 = vand.u32 4294901760, %v9140_v59 }
 0x228   : > { %7235 = vmatprep.subr.bf16.mxu1 %v7234_v63  ;;  %v11448_v58 = vand.u32 4294901760, %v11447_v19 }
 0x22a   : > { %6776 = vmatmul.mubr.f32.gmra.mrb[6].mxu1 %v11437_v45  ;;  %v7246_v36 = vpack.c.bf16 %v11448_v58, %v11446_v29  ;;  %v11192_v45 = vmov 36   ;;  %v9562_v29 = vpack.c.bf16 %v3038_v4, %v3034_v43 }
 0x22b   : > { %6778 = vmatprep.mubr.f32.mxu1 %v11438_v48  ;;  %7237 = vmatpush3.bf16.msra.mxu1 %v7234_v63  ;;  %v11453_v63 = vld [vmem:[#allocation20_spill] sm:$0xff] }
 0x22c   : > { %7239 = vmatprep.subr.bf16.mxu1 %v7238_v15  ;;  %v11454_v31 = vand.u32 4294901760, %v11453_v63  ;;  %7876 = vset.pattern.permute.xlu0 %v11192_v45  ;;  %11467 = vst [vmem:[#allocation11_spill] sm:$0xff] %v9562_v29 }
 0x22e   : > { %6779 = vmatmul.mubr.f32.gmra.mrb[8].mxu1 %v11443_v56  ;;  %v7250_v46 = vpack.c.bf16 %v11454_v31, %v11452_v21  ;;  %v3040_v56 = vand.u32 4294901760, %v2976_v37  ;;  %v9581_v21 = vsub.f32 %v2977_v38, %v3038_v4 }
 0x22f   : > { %6781 = vmatprep.mubr.f32.mxu1 %v11444_v23  ;;  %7241 = vmatpush3.bf16.msra.mxu1 %v7238_v15  ;;  %v11189_v15 = vmov 35  }
 0x230   : > { %7243 = vmatprep.subr.bf16.mxu1 %v7242_v25  ;;  %7877 = vset.pattern.permute.xlu1 %v11189_v15  ;;  %v9585_v31 = vsub.f32 %v2976_v37, %v3040_v56 }
 0x232   : > { %6782 = vmatmul.mubr.f32.gmra.mrb[10].mxu1 %v11449_v27  ;;  %11470 = vst [vmem:[#allocation15_spill] sm:$0xff] %v9585_v31 }
 0x233   : > { %6784 = vmatprep.mubr.f32.mxu1 %v11450_v13  ;;  %7245 = vmatpush3.bf16.msra.mxu1 %v7242_v25  ;;  %v3036_v25 = vand.u32 4294901760, %v2974_v51 }
 0x234   : > { %7247 = vmatprep.subr.bf16.mxu1 %v7246_v36 }
 0x235   : > { %v9574_v13 = vpack.c.bf16 %v3040_v56, %v3036_v25  ;;  %v9583_v63 = vsub.f32 %v2974_v51, %v3036_v25  ;;  %v11477_v25 = vld [vmem:[#allocation31_spill] sm:$0xff] }
 0x236   : > { %6785 = vmatmul.mubr.f32.gmra.mrb[12].mxu1 %v11455_v22  ;;  %v11471_v22 = vld [vmem:[#allocation13_spill] sm:$0xff]  ;;  %v11201_v56 = vand.u32 4294901760, %v11477_v25 }
 0x237   : > { %6787 = vmatprep.mubr.f32.mxu1 %v11456_v12  ;;  %7249 = vmatpush3.bf16.msra.mxu1 %v7246_v36  ;;  %v9569_v36 = vsub.f32 %v2970_v55, %v3028_v47  ;;  %11468 = vst [vmem:[#allocation6_spill] sm:$0xff] %v9574_v13  ;;  %11469 = vst [vmem:[#allocation14_spill] sm:$0xff] %v9583_v63  ;;  %v3253_v12 = vand.u32 4294901760, %v11471_v22  ;;  %v11475_v55 = vld [vmem:[#allocation28_spill] sm:$0xff] }
 0x238   : > { %7251 = vmatprep.subr.bf16.mxu1 %v7250_v46 }
 0x23a   : > { %6788 = vmatmul.mubr.f32.gmra.mrb[14].mxu1 %v11457_v18  ;;  %v11472_v18 = vld [vmem:[#allocation24_spill] sm:$0xff] }
 0x23b   : > { %7253 = vmatpush3.bf16.msra.mxu1 %v7250_v46  ;;  %6822 = vmatprep.mubr.f32.mxu1 %v9009_v9  ;;  %v11194_v46 = vmov 0.0  }
 0x23c   : > { %7255 = vmatprep.subr.bf16.mxu1 %v8648_v1  ;;  %3941 = vmatprep.mubr.f32.mxu0 %v11194_v46 }
 0x23e   : > { %6823 = vmatmul.mubr.f32.vlgmr.msra.gmra.mrb[0].mxu1 %v9001_v0 }
 0x23f   : > { %6825 = vmatprep.mubr.f32.mxu1 %v9024_v40  ;;  %7257 = vmatpush3.bf16.msra.mxu1 %v8648_v1  ;;  %v11458_v1 = vld [vmem:[#allocation21_spill] sm:$0xff] }
 0x240   : > { %7259 = vmatprep.subr.bf16.mxu1 %v8655_v61 }
 0x242   : > { %6826 = vmatmul.mubr.f32.gmra.mrb[2].mxu1 %v9019_v10 }
 0x243   : > { %6828 = vmatprep.mubr.f32.mxu1 %v9052_v26  ;;  %7261 = vmatpush3.bf16.msra.mxu1 %v8655_v61  ;;  %v11459_v61 = vld [vmem:[#allocation22_spill] sm:$0xff] }
 0x244   : > { %7263 = vmatprep.subr.bf16.mxu1 %v8680_v44 }
 0x246   : > { %6829 = vmatmul.mubr.f32.gmra.mrb[4].mxu1 %v9045_v28 }
 0x247   : > { %6831 = vmatprep.mubr.f32.mxu1 %v9072_v33  ;;  %7265 = vmatpush3.bf16.msra.mxu1 %v8680_v44  ;;  %v11460_v44 = vld [vmem:[#allocation10_spill] sm:$0xff] }
 0x248   : > { %7267 = vmatprep.subr.bf16.mxu1 %v8694_v52 }
 0x24a   : > { %6832 = vmatmul.mubr.f32.gmra.mrb[6].mxu1 %v9068_v2 }
 0x24b   : > { %6834 = vmatprep.mubr.f32.mxu1 %v9093_v7  ;;  %7269 = vmatpush3.bf16.msra.mxu1 %v8694_v52  ;;  %v11461_v52 = vld [vmem:[#allocation23_spill] sm:$0xff] }
 0x24c   : > { %7271 = vmatprep.subr.bf16.mxu1 %v8822_v60 }
 0x24e   : > { %6835 = vmatmul.mubr.f32.gmra.mrb[8].mxu1 %v9089_v39 }
 0x24f   : > { %6837 = vmatprep.mubr.f32.mxu1 %v9114_v17  ;;  %7273 = vmatpush3.bf16.msra.mxu1 %v8822_v60  ;;  %v11462_v60 = vld [vmem:[#allocation17_spill] sm:$0xff] }
 0x250   : > { %7275 = vmatprep.subr.bf16.mxu1 %v11413_v42 }
 0x252   : > { %6838 = vmatmul.mubr.f32.gmra.mrb[10].mxu1 %v9110_v5 }
 0x253   : > { %6840 = vmatprep.mubr.f32.mxu1 %v9135_v62  ;;  %7277 = vmatpush3.bf16.msra.mxu1 %v11413_v42  ;;  %v3032_v42 = vand.u32 4294901760, %v2972_v16 }
 0x254   : > { %7279 = vmatprep.subr.bf16.mxu1 %v11414_v30 }
 0x255   : > { %v9547_v48 = vpack.c.bf16 %v3032_v42, %v3028_v47  ;;  %v9571_v27 = vsub.f32 %v2972_v16, %v3032_v42  ;;  %v11191_v16 = vand.u32 4294901760, %v11475_v55  ;;  %v11476_v42 = vld [vmem:[#allocation29_spill] sm:$0xff] }
 0x256   : > { %6841 = vmatmul.mubr.f32.gmra.mrb[12].mxu1 %v11458_v1  ;;  %v11196_v20 = vand.u32 4294901760, %v11476_v42 }
 0x257   : > { %6843 = vmatprep.mubr.f32.mxu1 %v11459_v61  ;;  %7281 = vmatpush3.bf16.msra.mxu1 %v11414_v30  ;;  %11466 = vst [vmem:[#allocation5_spill] sm:$0xff] %v9547_v48 }
 0x258   : > { %7283 = vmatprep.subr.bf16.mxu1 %v11415_v53 }
 0x25a   : > { %6844 = vmatmul.mubr.f32.gmra.mrb[14].mxu1 %v11460_v44 }
 0x25b   : > { %7285 = vmatpush3.bf16.msra.mxu1 %v11415_v53  ;;  %6878 = vmatprep.mubr.f32.mxu1 %v9009_v9 }
 0x25c   : > { %7287 = vmatprep.subr.bf16.mxu1 %v11461_v52 }
 0x25e   : > { %6879 = vmatmul.mubr.f32.vlgmr.msra.gmra.mrb[0].mxu1 %v9001_v0 }
 0x25f   : > { %6881 = vmatprep.mubr.f32.mxu1 %v9024_v40  ;;  %7289 = vmatpush1.bf16.msra.mxu1 %v11462_v60 }
 0x260   : > { %7291 = vmatprep.subr.bf16.mxu1 %v9268_v6 }
 0x262   : > { %6882 = vmatmul.mubr.f32.gmra.mrb[2].mxu1 %v9019_v10  ;;  %v2968_v10 = vld [vmem:[%s11039_s5 + $0xb0] sm:$0xff] }
 0x263   : > { %6884 = vmatprep.mubr.f32.mxu1 %v9052_v26  ;;  %7293 = vmatpush1.bf16.msra.mxu1 %v9288_v57 }
 0x264   : > { %7295 = vmatprep.subr.bf16.mxu1 %v9304_v49  ;;  %v11497_v49 = vld [vmem:[#allocation36_spill] sm:$0xff] }
 0x265   : > { %v11227_v57 = vand.u32 4294901760, %v11497_v49 }
 0x266   : > { %6885 = vmatmul.mubr.f32.gmra.mrb[4].mxu1 %v9045_v28  ;;  %v3024_v28 = vand.u32 4294901760, %v2968_v10 }
 0x267   : > { %6887 = vmatprep.mubr.f32.mxu1 %v9072_v33  ;;  %7297 = vmatpush1.bf16.msra.mxu1 %v9329_v8  ;;  %v2967_v33 = vld [vmem:[%s11039_s5 + $0xa8] sm:$0xff] }
 0x268   : > { %7299 = vmatprep.subr.bf16.mxu1 %v9331_v54  ;;  %v3018_v9 = vand.u32 4294901760, %v2967_v33  ;;  %v9559_v41 = vsub.f32 %v2968_v10, %v3024_v28 }
 0x26a   : > { %6888 = vmatmul.mubr.f32.gmra.mrb[6].mxu1 %v9068_v2  ;;  %v2969_v2 = vld [vmem:[%s11039_s5 + $0xb8] sm:$0xff]  ;;  %v9535_v53 = vsub.f32 %v2967_v33, %v3018_v9 }
 0x26b   : > { %6890 = vmatprep.mubr.f32.mxu1 %v9093_v7  ;;  %7301 = vmatpush1.bf16.msra.mxu1 %v9351_v35  ;;  %v3022_v0 = vand.u32 4294901760, %v2969_v2 }
 0x26c   : > { %7303 = vmatprep.subr.bf16.mxu1 %v9355_v32 }
 0x26d   : > { %v9513_v26 = vpack.c.bf16 %v3022_v0, %v3018_v9  ;;  %v9537_v34 = vsub.f32 %v2969_v2, %v3022_v0 }
 0x26e   : > { %6891 = vmatmul.mubr.f32.gmra.mrb[8].mxu1 %v9089_v39  ;;  %v2971_v39 = vld [vmem:[%s11039_s5 + $0xc8] sm:$0xff] }
 0x26f   : > { %6893 = vmatprep.mubr.f32.mxu1 %v9114_v17  ;;  %7305 = vmatpush1.bf16.msra.mxu1 %v9361_v24  ;;  %11463 = vst [vmem:[#allocation25_spill] sm:$0xff] %v9513_v26  ;;  %v3026_v59 = vand.u32 4294901760, %v2971_v39  ;;  %v11488_v24 = vmov 0.0  }
 0x270   : > { %7403 = vmatprep.subr.bf16.mxu0 %v9513_v26  ;;  %7307 = vmatprep.subr.bf16.mxu1 %v9513_v26 }
 0x271   : > { %v9565_v19 = vsub.f32 %v2971_v39, %v3026_v59  ;;  %v11474_v39 = vld [vmem:[#allocation26_spill] sm:$0xff] }
 0x272   : > { %6894 = vmatmul.mubr.f32.gmra.mrb[10].mxu1 %v9110_v5  ;;  %v2973_v5 = vld [vmem:[%s11039_s5 + $0xd8] sm:$0xff] }
 0x273   : > { %6896 = vmatprep.mubr.f32.mxu1 %v9135_v62  ;;  %v2966_v62 = vld [vmem:[%s11039_s5 + $0xa0] sm:$0xff]  ;;  %v3030_v17 = vand.u32 4294901760, %v2973_v5 }
 0x274   : > { %v3020_v40 = vand.u32 4294901760, %v2966_v62 }
 0x275   : > { %v9533_v30 = vpack.c.bf16 %v3030_v17, %v3026_v59  ;;  %v9567_v58 = vsub.f32 %v2973_v5, %v3030_v17  ;;  %v3271_v5 = vand.u32 4294901760, %v11474_v39 }
 0x276   : > { %6897 = vmatmul.mubr.f32.gmra.mrb[12].mxu1 %v11458_v1  ;;  %v9515_v7 = vpack.c.bf16 %v3024_v28, %v3020_v40  ;;  %v9557_v23 = vsub.f32 %v2966_v62, %v3020_v40  ;;  %v3265_v1 = vand.u32 4294901760, %v11472_v18  ;;  %v9596_v62 = vld [vmem:[%s11038_s4] ss:$0 sm:$0xff]  ;;  %v11473_v40 = vld [vmem:[#allocation16_spill] sm:$0xff] }
 0x277   : > { %6899 = vmatprep.mubr.f32.mxu1 %v11459_v61  ;;  %11465 = vst [vmem:[#allocation12_spill] sm:$0xff] %v9533_v30  ;;  %v3254_v61 = vsub.f32 %v11471_v22, %v3253_v12  ;;  %v3259_v28 = vand.u32 4294901760, %v11473_v40  ;;  %v3272_v37 = vsub.f32 %v11474_v39, %v3271_v5 }
 0x278   : > { %11464 = vst [vmem:[#allocation9_spill] sm:$0xff] %v9515_v7  ;;  %7405 = vmatpush1.bf16.msra.mxu0 %v9515_v7  ;;  %7309 = vmatpush1.bf16.msra.mxu1 %v9515_v7  ;;  %v7414_v33 = vpack.c.bf16 %v3265_v1, %v3253_v12 }
 0x279   : > { %7407 = vmatprep.subr.bf16.mxu0 %v9533_v30  ;;  %7311 = vmatprep.subr.bf16.mxu1 %v9533_v30  ;;  %v3255_v2 = vand.u32 4294901760, %v3254_v61  ;;  %v3260_v51 = vsub.f32 %v11473_v40, %v3259_v28  ;;  %v7416_v45 = vpack.c.bf16 %v3271_v5, %v3259_v28  ;;  %v11490_v30 = vmov 36  }
 0x27a   : > { %6900 = vmatmul.mubr.f32.gmra.mrb[14].mxu1 %v11460_v44  ;;  %v3266_v44 = vsub.f32 %v11472_v18, %v3265_v1 }
 0x27b   : > { %3074 = vmatprep.mubr.f32.mxu1 %v11194_v46  ;;  %v11199_v46 = vmov 33  }
 0x27c   : > { %7409 = vmatpush1.bf16.msra.mxu0 %v9547_v48  ;;  %7313 = vmatpush1.bf16.msra.mxu1 %v9547_v48  ;;  %v3267_v9 = vand.u32 4294901760, %v3266_v44  ;;  %v3278_v44 = vsub.f32 %v11475_v55, %v11191_v16  ;;  %v3261_v16 = vand.u32 4294901760, %v3260_v51  ;;  %v11486_v48 = vld [vmem:[#allocation35_spill] sm:$0xff] }
 0x27d   : > { %7411 = vmatprep.subr.bf16.mxu0 %v9562_v29  ;;  %7315 = vmatprep.subr.bf16.mxu1 %v9562_v29 }
 0x27e   : > { %v7318_v0 = vpack.c.bf16 %v3267_v9, %v3255_v2  ;;  %v3279_v2 = vand.u32 4294901760, %v3278_v44 }
 0x280   : > { %7413 = vmatpush1.bf16.msra.mxu0 %v9574_v13  ;;  %7317 = vmatpush1.bf16.msra.mxu1 %v9574_v13 }
 0x281   : > { %7415 = vmatprep.subr.bf16.mxu0 %v7414_v33  ;;  %7319 = vmatprep.subr.bf16.mxu1 %v7318_v0  ;;  %v11479_v33 = vld [vmem:[#allocation32_spill] sm:$0xff] }
 0x282   : > { %v11482_v13 = vand.u32 4294901760, %v11479_v33 }
 0x284   : > { %v3296_v29 = vsub.f32 %v11479_v33, %v11482_v13 }
 0x286   : > { %v3297_v54 = vand.u32 4294901760, %v3296_v29 }
 0x331   : > { %v6880_v10 = vpop.f32.mrb[0].mxu1 }
 0x332   : > { %v7494_v59 = vadd.f32 %v6880_v10, %v9596_v62  ;;  %v2836_v17 = vpop.f32.mrb[1].mxu1  ;;  %v3290_v10 = vsub.f32 %v11476_v42, %v11196_v20  ;;  %v3273_v20 = vand.u32 4294901760, %v3272_v37 }
 0x333   : > { %v7495_v47 = vadd.f32 %v9596_v62, %v2836_v17 }
 0x334   : > { %v2931_v38 = vmax.f32 %v7494_v59, 0.0  ;;  %v7320_v32 = vpack.c.bf16 %v3273_v20, %v3261_v16 }
 0x335   : > { %v9604_v43 = vmax.f32 %v7495_v47, 0.0  ;;  %v6883_v4 = vpop.f32.mrb[2].mxu1 }
 0x336   : > { %v7496_v12 = vadd.f32 %v6883_v4, %v9596_v62  ;;  %4953 = vperm.xlu1 %7877, %v2931_v38   ;;  %4671 = vperm.xlu0 %7876, %v2931_v38   ;;  %v2848_v1 = vpop.f32.mrb[3].mxu1  ;;  %v9610_v61 = vand.u32 4294901760, %v2931_v38 }
 0x337   : > { %v9617_v9 = vand.u32 4294901760, %v9604_v43  ;;  %v7497_v0 = vadd.f32 %v9596_v62, %v2848_v1  ;;  %v11202_v1 = vmov 34  }
 0x338   : > { %11478 = vst [vmem:[#allocation7_spill] sm:$0xff] %v9610_v61  ;;  %v9623_v59 = vmax.f32 %v7496_v12, 0.0  ;;  %v9626_v17 = vsub.f32 %v2931_v38, %v9610_v61  ;;  %v11525_v61 = vld [vmem:[#allocation44_spill] sm:$0xff] }
 0x339   : > { %v9628_v47 = vmax.f32 %v7497_v0, 0.0  ;;  %v6886_v4 = vpop.f32.mrb[4].mxu1  ;;  %v9632_v15 = vsub.f32 %v9604_v43, %v9617_v9  ;;  %v3284_v0 = vsub.f32 %v11477_v25, %v11201_v56  ;;  %v11485_v56 = vld [vmem:[#allocation33_spill] sm:$0xff]  ;;  %v11249_v39 = vand.u32 4294901760, %v11525_v61 }
 0x33a   : > { %11480 = vst [vmem:[#allocation18_spill] sm:$0xff] %v9626_v17  ;;  %7879 = vset.pattern.permute.xlu1 %v11199_v46  ;;  %7878 = vset.pattern.permute.xlu0 %v11202_v1  ;;  %v2860_v12 = vpop.f32.mrb[5].mxu1  ;;  %v3291_v46 = vand.u32 4294901760, %v3290_v10  ;;  %v3088_v37 = vand.u32 4294901760, %v9626_v17  ;;  %v9649_v44 = vand.u32 4294901760, %v9623_v59  ;;  %v7498_v13 = vadd.f32 %v6886_v4, %v9596_v62 }
 0x33b   : > { %11481 = vst [vmem:[#allocation19_spill] sm:$0xff] %v9632_v15  ;;  %v7499_v51 = vadd.f32 %v9596_v62, %v2860_v12  ;;  %5489 = vperm.xlu1 %7879, %v2931_v38   ;;  %5221 = vperm.xlu0 %7878, %v2931_v38   ;;  %v3077_v28 = vand.u32 4294901760, %v9632_v15  ;;  %v9645_v5 = vand.u32 4294901760, %v9628_v47  ;;  %v11489_v1 = vmov 34  }
 0x33c   : > { %11484 = vst [vmem:[#allocation20_spill] sm:$0xff] %v9649_v44  ;;  %v3285_v35 = vand.u32 4294901760, %v3284_v0  ;;  %v9670_v16 = vsub.f32 %v9623_v59, %v9649_v44  ;;  %v9675_v20 = vmax.f32 %v7498_v13, 0.0  ;;  %v11494_v0 = vand.u32 4294901760, %v11486_v48 }
 0x33d   : > { %11483 = vst [vmem:[#allocation8_spill] sm:$0xff] %v9645_v5  ;;  %v9654_v12 = vmax.f32 %v7499_v51, 0.0  ;;  %v6889_v38 = vpop.f32.mrb[6].mxu1  ;;  %3945 = vmatmul.mubr.f32.vlgmr.msra.gmra.mrb[16].mxu0 %v3077_v28  ;;  %v3078_v7 = vsub.f32 %v9632_v15, %v3077_v28  ;;  %v9659_v10 = vsub.f32 %v9628_v47, %v9645_v5  ;;  %v7322_v51 = vpack.c.bf16 %v3291_v46, %v3279_v2 }
 0x33e   : > { %v2872_v26 = vpop.f32.mrb[7].mxu1  ;;  %3950 = vmatprep.mubr.f32.mxu0 %v11488_v24  ;;  %7417 = vmatpush1.bf16.msra.mxu0 %v7416_v45  ;;  %v3089_v28 = vsub.f32 %v9626_v17, %v3088_v37  ;;  %11491 = vst [vmem:[#allocation22_spill] sm:$0xff] %v9670_v16  ;;  %v11493_v46 = vand.u32 4294901760, %v11485_v56  ;;  %v3314_v17 = vsub.f32 %v11486_v48, %v11494_v0  ;;  %v11496_v13 = vand.u32 4294901760, %v11476_v42 }
 0x33f   : > { %11487 = vst [vmem:[#allocation21_spill] sm:$0xff] %v9659_v10  ;;  %7882 = vset.pattern.permute.xlu1 %v11489_v1  ;;  %7880 = vset.pattern.permute.xlu0 %v11490_v30  ;;  %v3079_v4 = vand.u32 4294901760, %v3078_v7  ;;  %v3099_v15 = vand.u32 4294901760, %v9659_v10  ;;  %v9673_v45 = vand.u32 4294901760, %v9654_v12  ;;  %v7501_v7 = vadd.f32 %v9596_v62, %v2872_v26 }
 0x340   : > { %5217 = vperm.xlu1 %7882, %v9604_v43   ;;  %4666 = vperm.xlu0 %7880, %v9604_v43   ;;  %v3302_v2 = vsub.f32 %v11485_v56, %v11493_v46  ;;  %v11495_v26 = vand.u32 4294901760, %v11475_v55  ;;  %v11498_v46 = vld [vmem:[#allocation37_spill] sm:$0xff]  ;;  %v11499_v0 = vmov 35   ;;  %v3110_v5 = vand.u32 4294901760, %v9670_v16 }
 0x341   : > { %11492 = vst [vmem:[#allocation10_spill] sm:$0xff] %v9673_v45  ;;  %v9678_v29 = vpop.f32.mrb[8].mxu1  ;;  %3080 = vmatmul.mubr.f32.vlgmr.msra.gmra.mrb[16].mxu1 %v3079_v4  ;;  %3954 = vmatmul.mubr.f32.gmra.mrb[18].mxu0 %v3088_v37  ;;  %v7324_v4 = vpack.c.bf16 %v3297_v54, %v3285_v35  ;;  %v3100_v6 = vsub.f32 %v9659_v10, %v3099_v15  ;;  %v9702_v42 = vmax.f32 %v7501_v7, 0.0 }
 0x342   : > { %v2884_v8 = vpop.f32.mrb[9].mxu1  ;;  %7321 = vmatpush1.bf16.msra.mxu1 %v7320_v32  ;;  %3085 = vmatprep.mubr.f32.mxu1 %v11488_v24  ;;  %v7418_v37 = vpack.c.bf16 %v11496_v13, %v11495_v26  ;;  %v3090_v32 = vand.u32 4294901760, %v3089_v28  ;;  %v3303_v35 = vand.u32 4294901760, %v3302_v2  ;;  %v3315_v26 = vand.u32 4294901760, %v3314_v17 }
 0x343   : > { %3959 = vmatprep.mubr.f32.mxu0 %v11488_v24  ;;  %7323 = vmatprep.subr.bf16.mxu1 %v7322_v51  ;;  %v9700_v51 = vsub.f32 %v9654_v12, %v9673_v45  ;;  %v9709_v28 = vand.u32 4294901760, %v9675_v20  ;;  %v7500_v13 = vadd.f32 %v6889_v38, %v9596_v62  ;;  %v3308_v7 = vsub.f32 %v11497_v49, %v11227_v57 }
 0x344   : > { %7884 = vset.pattern.permute.xlu1 %v11490_v30  ;;  %7881 = vset.pattern.permute.xlu0 %v11499_v0  ;;  %v11502_v2 = vand.u32 4294901760, %v11498_v46  ;;  %v3101_v10 = vand.u32 4294901760, %v3100_v6  ;;  %v11503_v38 = vand.u32 4294901760, %v11477_v25  ;;  %v3111_v45 = vsub.f32 %v9670_v16, %v3110_v5 }
 0x345   : > { %11500 = vst [vmem:[#allocation13_spill] sm:$0xff] %v9700_v51  ;;  %v9704_v54 = vpop.f32.mrb[10].mxu1  ;;  %4681 = vperm.xlu1 %7884, %v9623_v59   ;;  %4949 = vperm.xlu0 %7881, %v9604_v43   ;;  %11501 = vst [vmem:[#allocation24_spill] sm:$0xff] %v9709_v28  ;;  %v3121_v55 = vand.u32 4294901760, %v9700_v51  ;;  %v11505_v57 = vmov 33   ;;  %v7326_v52 = vpack.c.bf16 %v3315_v26, %v3303_v35  ;;  %v9734_v6 = vsub.f32 %v9675_v20, %v9709_v28 }
 0x346   : > { %3091 = vmatmul.mubr.f32.gmra.mrb[18].mxu1 %v3090_v32  ;;  %3963 = vmatmul.mubr.f32.gmra.mrb[20].mxu0 %v3099_v15  ;;  %v9712_v44 = vpop.f32.mrb[11].mxu1  ;;  %v3320_v17 = vsub.f32 %v11498_v46, %v11502_v2  ;;  %v11504_v15 = vand.u32 4294901760, %v11479_v33  ;;  %v7503_v2 = vadd.f32 %v9596_v62, %v2884_v8  ;;  %v3309_v35 = vand.u32 4294901760, %v3308_v7  ;;  %v11509_v33 = vld [vmem:[#allocation39_spill] sm:$0xff] }
 0x347   : > { %3096 = vmatprep.mubr.f32.mxu1 %v11488_v24  ;;  %3968 = vmatprep.mubr.f32.mxu0 %v11488_v24  ;;  %11506 = vst [vmem:[#allocation16_spill] sm:$0xff] %v9734_v6  ;;  %v3122_v16 = vsub.f32 %v9700_v51, %v3121_v55  ;;  %v7502_v28 = vadd.f32 %v9678_v29, %v9596_v62  ;;  %v11516_v51 = vand.u32 4294901760, %v11498_v46  ;;  %v11523_v46 = vld [vmem:[#allocation42_spill] sm:$0xff] }
 0x348   : > { %7419 = vmatprep.subr.bf16.mxu0 %v7418_v37  ;;  %7325 = vmatpush1.bf16.msra.mxu1 %v7324_v4  ;;  %v7420_v32 = vpack.c.bf16 %v11504_v15, %v11503_v38  ;;  %v9737_v37 = vand.u32 4294901760, %v9702_v42  ;;  %v9739_v4 = vmax.f32 %v7500_v13, 0.0  ;;  %v3321_v26 = vand.u32 4294901760, %v3320_v17  ;;  %v11508_v13 = vld [vmem:[#allocation38_spill] sm:$0xff] }
 0x349   : > { %v9728_v60 = vpop.f32.mrb[12].mxu1  ;;  %7886 = vset.pattern.permute.xlu1 %v11489_v1  ;;  %7883 = vset.pattern.permute.xlu0 %v11505_v57  ;;  %v3112_v15 = vand.u32 4294901760, %v3111_v45  ;;  %v9758_v17 = vmax.f32 %v7503_v2, 0.0  ;;  %v11513_v2 = vand.u32 4294901760, %v11485_v56  ;;  %v11514_v45 = vand.u32 4294901760, %v11486_v48 }
 0x34a   : > { %11507 = vst [vmem:[#allocation48_spill] sm:$0xff] %v9737_v37  ;;  %3102 = vmatmul.mubr.f32.gmra.mrb[20].mxu1 %v3101_v10  ;;  %3972 = vmatmul.mubr.f32.gmra.mrb[22].mxu0 %v3110_v5  ;;  %v9742_v38 = vpop.f32.mrb[13].mxu1  ;;  %v3132_v10 = vand.u32 4294901760, %v9734_v6  ;;  %v7328_v7 = vpack.c.bf16 %v3321_v26, %v3309_v35  ;;  %v11518_v56 = vand.u32 4294901760, %v11509_v33  ;;  %v11519_v26 = vand.u32 4294901760, %v9333_v14 }
 0x34b   : > { %5229 = vperm.xlu1 %7886, %v9623_v59   ;;  %5485 = vperm.xlu0 %7883, %v9604_v43   ;;  %v9754_v43 = vsub.f32 %v9702_v42, %v9737_v37  ;;  %11511 = vst [vmem:[#allocation49_spill] sm:$0xff] %v9758_v17  ;;  %v11517_v37 = vand.u32 4294901760, %v11508_v13 }
 0x34c   : > { %7421 = vmatpush1.bf16.msra.mxu0 %v7420_v32  ;;  %3107 = vmatprep.mubr.f32.mxu1 %v11488_v24  ;;  %v3338_v48 = vsub.f32 %v11509_v33, %v11518_v56  ;;  %v3133_v35 = vsub.f32 %v9734_v6, %v3132_v10  ;;  %v7505_v6 = vadd.f32 %v9596_v62, %v9712_v44 }
 0x34d   : > { %3977 = vmatprep.mubr.f32.mxu0 %v11488_v24  ;;  %v6901_v5 = vpop.f32.mrb[14].mxu1  ;;  %7327 = vmatprep.subr.bf16.mxu1 %v7326_v52  ;;  %11510 = vst [vmem:[#allocation38_spill] sm:$0xff] %v9754_v43  ;;  %v9766_v52 = vand.u32 4294901760, %v9739_v4  ;;  %v3326_v25 = vsub.f32 %v11508_v13, %v11517_v37 }
 0x34e   : > { %v9761_v32 = vadd.f32 %v6901_v5, %v9596_v62  ;;  %3113 = vmatmul.mubr.f32.gmra.mrb[22].mxu1 %v3112_v15  ;;  %3981 = vmatmul.mubr.f32.gmra.mrb[24].mxu0 %v3121_v55  ;;  %v9763_v8 = vpop.f32.mrb[15].mxu1  ;;  %v7422_v5 = vpack.c.bf16 %v11514_v45, %v11513_v2  ;;  %v3123_v55 = vand.u32 4294901760, %v3122_v16  ;;  %v11515_v15 = vand.u32 4294901760, %v11497_v49 }
 0x34f   : > { %11512 = vst [vmem:[#allocation50_spill] sm:$0xff] %v9766_v52  ;;  %7888 = vset.pattern.permute.xlu1 %v11490_v30  ;;  %7885 = vset.pattern.permute.xlu0 %v11499_v0  ;;  %v3143_v16 = vand.u32 4294901760, %v9754_v43  ;;  %v11520_v45 = vand.u32 4294901760, %v9337_v11  ;;  %v9800_v56 = vsub.f32 %v9739_v4, %v9766_v52  ;;  %v9803_v2 = vand.u32 4294901760, %v9758_v17  ;;  %v11524_v52 = vld [vmem:[#allocation43_spill] sm:$0xff] }
 0x350   : > { %4676 = vperm.xlu1 %7888, %v9628_v47   ;;  %4961 = vperm.xlu0 %7885, %v9623_v59   ;;  %v7424_v29 = vpack.c.bf16 %v11516_v51, %v11515_v15  ;;  %v3332_v51 = vsub.f32 %v9333_v14, %v11519_v26  ;;  %v9805_v15 = vmax.f32 %v7502_v28, 0.0  ;;  %v11246_v26 = vand.u32 4294901760, %v9339_v3 }
 0x351   : > { %3118 = vmatprep.mubr.f32.mxu1 %v11488_v24  ;;  %3986 = vmatprep.mubr.f32.mxu0 %v11488_v24  ;;  %v3344_v37 = vsub.f32 %v9337_v11, %v11520_v45  ;;  %11521 = vst [vmem:[#allocation51_spill] sm:$0xff] %v9800_v56  ;;  %11522 = vst [vmem:[#allocation52_spill] sm:$0xff] %v9803_v2  ;;  %v11247_v45 = vand.u32 4294901760, %v11523_v46  ;;  %v11250_v49 = vand.u32 4294901760, %v11524_v52  ;;  %v3134_v44 = vand.u32 4294901760, %v3133_v35 }
 0x352   : > { %3124 = vmatmul.mubr.f32.gmra.mrb[24].mxu1 %v3123_v55  ;;  %3990 = vmatmul.mubr.f32.gmra.mrb[26].mxu0 %v3132_v10  ;;  %v3327_v10 = vand.u32 4294901760, %v3326_v25  ;;  %v3339_v55 = vand.u32 4294901760, %v3338_v48  ;;  %v3144_v28 = vsub.f32 %v9754_v43, %v3143_v16  ;;  %v3154_v25 = vand.u32 4294901760, %v9800_v56 }
 0x353   : > { %7423 = vmatprep.subr.bf16.mxu0 %v7422_v5  ;;  %7329 = vmatpush1.bf16.msra.mxu1 %v7328_v7  ;;  %v3333_v7 = vand.u32 4294901760, %v3332_v51  ;;  %v3345_v5 = vand.u32 4294901760, %v3344_v37  ;;  %v9822_v48 = vsub.f32 %v9758_v17, %v9803_v2  ;;  %v3350_v35 = vsub.f32 %v9339_v3, %v11246_v26 }
 0x354   : > { %7425 = vmatpush1.bf16.msra.mxu0 %v7424_v29  ;;  %7889 = vset.pattern.permute.xlu1 %v11499_v0  ;;  %v9824_v29 = vmax.f32 %v7505_v6, 0.0  ;;  %v9834_v51 = vand.u32 4294901760, %v9805_v15  ;;  %v7330_v37 = vpack.c.bf16 %v3339_v55, %v3327_v10  ;;  %v3356_v6 = vsub.f32 %v11524_v52, %v11250_v49 }
 0x355   : > { %7887 = vset.pattern.permute.xlu0 %v11505_v57  ;;  %4957 = vperm.xlu1 %7889, %v9628_v47   ;;  %11526 = vst [vmem:[#allocation42_spill] sm:$0xff] %v9822_v48  ;;  %v7504_v26 = vadd.f32 %v9704_v54, %v9596_v62  ;;  %v11528_v10 = vand.u32 4294901760, %v11509_v33  ;;  %v7332_v43 = vpack.c.bf16 %v3345_v5, %v3333_v7  ;;  %v11530_v49 = vand.u32 4294901760, %v9337_v11 }
 0x356   : > { %5497 = vperm.xlu0 %7887, %v9623_v59   ;;  %3129 = vmatprep.mubr.f32.mxu1 %v11488_v24  ;;  %v3362_v59 = vsub.f32 %v11523_v46, %v11247_v45  ;;  %v3145_v45 = vand.u32 4294901760, %v3144_v28  ;;  %v3155_v2 = vsub.f32 %v9800_v56, %v3154_v25  ;;  %v3165_v17 = vand.u32 4294901760, %v9822_v48 }
 0x357   : > { %3995 = vmatprep.mubr.f32.mxu0 %v11488_v24  ;;  %3135 = vmatmul.mubr.f32.gmra.mrb[26].mxu1 %v3134_v44  ;;  %v3368_v44 = vsub.f32 %v11525_v61, %v11249_v39  ;;  %v11529_v39 = vand.u32 4294901760, %v9333_v14  ;;  %v3351_v28 = vand.u32 4294901760, %v3350_v35  ;;  %v9862_v7 = vsub.f32 %v9805_v15, %v9834_v51 }
 0x358   : > { %3999 = vmatmul.mubr.f32.gmra.mrb[28].mxu0 %v3143_v16  ;;  %3140 = vmatprep.mubr.f32.mxu1 %v11488_v24  ;;  %v11527_v16 = vand.u32 4294901760, %v11508_v13  ;;  %v3363_v33 = vand.u32 4294901760, %v3362_v59  ;;  %v9865_v5 = vand.u32 4294901760, %v9824_v29  ;;  %v3156_v59 = vand.u32 4294901760, %v3155_v2 }
 0x359   : > { %7890 = vset.pattern.permute.xlu1 %v11489_v1  ;;  %4004 = vmatprep.mubr.f32.mxu0 %v11488_v24  ;;  %v7428_v54 = vpack.c.bf16 %v11530_v49, %v11529_v39  ;;  %11531 = vst [vmem:[#allocation43_spill] sm:$0xff] %v9862_v7  ;;  %v3369_v49 = vand.u32 4294901760, %v3368_v44  ;;  %v9867_v39 = vmax.f32 %v7504_v26, 0.0  ;;  %v11533_v2 = vand.u32 4294901760, %v9339_v3 }
 0x35a   : > { %v7426_v55 = vpack.c.bf16 %v11528_v10, %v11527_v16  ;;  %7893 = vset.pattern.permute.xlu0 %v11499_v0  ;;  %5225 = vperm.xlu1 %7890, %v9628_v47   ;;  %v3357_v16 = vand.u32 4294901760, %v3356_v6  ;;  %v7507_v10 = vadd.f32 %v9596_v62, %v9742_v38  ;;  %v7334_v38 = vpack.c.bf16 %v3363_v33, %v3351_v28 }
 0x35b   : > { %4969 = vperm.xlu0 %7893, %v9675_v20   ;;  %3146 = vmatmul.mubr.f32.gmra.mrb[28].mxu1 %v3145_v45  ;;  %v11256_v45 = vand.u32 4294901760, %v9535_v53  ;;  %v9882_v6 = vsub.f32 %v9824_v29, %v9865_v5  ;;  %v11534_v44 = vand.u32 4294901760, %v11523_v46  ;;  %v11535_v26 = vand.u32 4294901760, %v11524_v52 }
 0x35c   : > { %7331 = vmatprep.subr.bf16.mxu1 %v7330_v37  ;;  %4008 = vmatmul.mubr.f32.gmra.mrb[30].mxu0 %v3154_v25  ;;  %v3166_v37 = vsub.f32 %v9822_v48, %v3165_v17  ;;  %v11536_v25 = vand.u32 4294901760, %v11525_v61  ;;  %v7506_v28 = vadd.f32 %v9728_v60, %v9596_v62  ;;  %v9895_v35 = vmax.f32 %v7507_v10, 0.0 }
 0x35d   : > { %7427 = vmatprep.subr.bf16.mxu0 %v7426_v55  ;;  %7333 = vmatpush1.bf16.msra.mxu1 %v7332_v43  ;;  %v3176_v43 = vand.u32 4294901760, %v9862_v7  ;;  %11532 = vst [vmem:[#allocation44_spill] sm:$0xff] %v9882_v6  ;;  %v7430_v55 = vpack.c.bf16 %v11534_v44, %v11533_v2  ;;  %v9902_v2 = vand.u32 4294901760, %v9867_v39  ;;  %v11539_v10 = vand.u32 4294901760, %v9559_v41 }
 0x35e   : > { %7429 = vmatpush1.bf16.msra.mxu0 %v7428_v54  ;;  %3151 = vmatprep.mubr.f32.mxu1 %v11488_v24  ;;  %v7336_v54 = vpack.c.bf16 %v3369_v49, %v3357_v16  ;;  %v7432_v33 = vpack.c.bf16 %v11536_v25, %v11535_v26  ;;  %v3167_v16 = vand.u32 4294901760, %v3166_v37  ;;  %v11537_v49 = vand.u32 4294901760, %v9537_v34 }
 0x35f   : > { %4013 = vmatprep.mubr.f32.mxu0 %v11488_v24  ;;  %7891 = vset.pattern.permute.xlu1 %v11505_v57  ;;  %v3392_v25 = vsub.f32 %v9559_v41, %v11539_v10  ;;  %v3177_v26 = vsub.f32 %v9862_v7, %v3176_v43  ;;  %v3187_v44 = vand.u32 4294901760, %v9882_v6  ;;  %v11259_v37 = vand.u32 4294901760, %v9565_v19 }
 0x360   : > { %7895 = vset.pattern.permute.xlu0 %v11505_v57  ;;  %3157 = vmatmul.mubr.f32.gmra.mrb[30].mxu1 %v3156_v59  ;;  %v3374_v59 = vsub.f32 %v9535_v53, %v11256_v45  ;;  %v3386_v60 = vsub.f32 %v9537_v34, %v11537_v49  ;;  %v9920_v49 = vmax.f32 %v7506_v28, 0.0  ;;  %v9930_v10 = vand.u32 4294901760, %v9895_v35 }
 0x361   : > { %4017 = vmatmul.mubr.f32.gmra.mrb[32].mxu0 %v3165_v17  ;;  %5493 = vperm.xlu1 %7891, %v9628_v47   ;;  %v11538_v17 = vand.u32 4294901760, %v9557_v23  ;;  %v3393_v45 = vand.u32 4294901760, %v3392_v25  ;;  %v11541_v7 = vand.u32 4294901760, %v9567_v58  ;;  %v11548_v56 = vand.u32 4294901760, %v9569_v36 }
 0x362   : > { %5505 = vperm.xlu0 %7895, %v9675_v20   ;;  %3162 = vmatprep.mubr.f32.mxu1 %v11488_v24 }
 0x363   : > { %v3380_v47 = vsub.f32 %v9557_v23, %v11538_v17  ;;  %4022 = vmatprep.mubr.f32.mxu0 %v11488_v24  ;;  %7335 = vmatprep.subr.bf16.mxu1 %v7334_v38  ;;  %v7509_v17 = vadd.f32 %v9596_v62, %v9763_v8  ;;  %v9927_v38 = vsub.f32 %v9867_v39, %v9902_v2  ;;  %v3178_v62 = vand.u32 4294901760, %v3177_v26 }
 0x364   : > { %3168 = vmatmul.mubr.f32.gmra.mrb[32].mxu1 %v3167_v16  ;;  %7431 = vmatprep.subr.bf16.mxu0 %v7430_v55  ;;  %v3375_v16 = vand.u32 4294901760, %v3374_v59  ;;  %v3387_v55 = vand.u32 4294901760, %v3386_v60  ;;  %v3188_v8 = vsub.f32 %v9882_v6, %v3187_v44  ;;  %v3410_v48 = vsub.f32 %v9567_v58, %v11541_v7 }
 0x365   : > { %4026 = vmatmul.mubr.f32.gmra.mrb[34].mxu0 %v3176_v43  ;;  %7892 = vset.pattern.permute.xlu1 %v11490_v30  ;;  %11540 = vst [vmem:[#allocation53_spill] sm:$0xff] %v9927_v38  ;;  %v3381_v28 = vand.u32 4294901760, %v3380_v47  ;;  %v3398_v43 = vsub.f32 %v9565_v19, %v11259_v37  ;;  %v9945_v59 = vmax.f32 %v7509_v17, 0.0  ;;  %v3198_v60 = vand.u32 4294901760, %v9927_v38 }
 0x366   : > { %7896 = vset.pattern.permute.xlu0 %v11490_v30  ;;  %7337 = vmatpush1.bf16.msra.mxu1 %v7336_v54  ;;  %v9951_v47 = vsub.f32 %v9895_v35, %v9930_v10  ;;  %v9954_v7 = vand.u32 4294901760, %v9920_v49  ;;  %v7338_v25 = vpack.c.bf16 %v3387_v55, %v3375_v16  ;;  %v11544_v26 = vand.u32 4294901760, %v9535_v53 }
 0x367   : > { %7433 = vmatpush1.bf16.msra.mxu0 %v7432_v33  ;;  %4691 = vperm.xlu1 %7892, %v9675_v20   ;;  %11542 = vst [vmem:[#allocation54_spill] sm:$0xff] %v9945_v59  ;;  %v11545_v17 = vand.u32 4294901760, %v9537_v34  ;;  %v7340_v33 = vpack.c.bf16 %v3393_v45, %v3381_v28  ;;  %v3399_v54 = vand.u32 4294901760, %v3398_v43  ;;  %v3411_v6 = vand.u32 4294901760, %v3410_v48 }
 0x368   : > { %4686 = vperm.xlu0 %7896, %v9654_v12   ;;  %3173 = vmatprep.mubr.f32.mxu1 %v11488_v24  ;;  %11543 = vst [vmem:[#allocation55_spill] sm:$0xff] %v9951_v47  ;;  %v11547_v16 = vand.u32 4294901760, %v9559_v41  ;;  %v3199_v48 = vsub.f32 %v9927_v38, %v3198_v60  ;;  %v9980_v45 = vsub.f32 %v9920_v49, %v9954_v7  ;;  %v9983_v28 = vand.u32 4294901760, %v9945_v59 }
 0x369   : > { %4031 = vmatprep.mubr.f32.mxu0 %v11488_v24  ;;  %3179 = vmatmul.mubr.f32.gmra.mrb[34].mxu1 %v3178_v62  ;;  %v7434_v37 = vpack.c.bf16 %v11545_v17, %v11544_v26  ;;  %v3189_v62 = vand.u32 4294901760, %v3188_v8  ;;  %v3404_v26 = vsub.f32 %v9569_v36, %v11548_v56  ;;  %v11549_v17 = vand.u32 4294901760, %v9571_v27 }
 0x36a   : > { %4035 = vmatmul.mubr.f32.gmra.mrb[36].mxu0 %v3187_v44  ;;  %3184 = vmatprep.mubr.f32.mxu1 %v11488_v24  ;;  %v11546_v44 = vand.u32 4294901760, %v9557_v23  ;;  %11550 = vst [vmem:[#allocation56_spill] sm:$0xff] %v9980_v45  ;;  %11551 = vst [vmem:[#allocation57_spill] sm:$0xff] %v9983_v28  ;;  %v9986_v56 = vmax.f32 %v9761_v32, 0.0  ;;  %v7342_v43 = vpack.c.bf16 %v3411_v6, %v3399_v54  ;;  %v3427_v38 = vand.u32 4294901760, %v9583_v63 }
 0x36b   : > { %7894 = vset.pattern.permute.xlu1 %v11489_v1  ;;  %4040 = vmatprep.mubr.f32.mxu0 %v11488_v24  ;;  %v3416_v8 = vsub.f32 %v9571_v27, %v11549_v17  ;;  %v3200_v32 = vand.u32 4294901760, %v3199_v48  ;;  %v9999_v54 = vsub.f32 %v9945_v59, %v9983_v28 }
 0x36c   : > { %7898 = vset.pattern.permute.xlu0 %v11489_v1  ;;  %5237 = vperm.xlu1 %7894, %v9675_v20   ;;  %v7436_v55 = vpack.c.bf16 %v11547_v16, %v11546_v44  ;;  %v3209_v20 = vand.u32 4294901760, %v9951_v47  ;;  %v3433_v44 = vand.u32 4294901760, %v9581_v21  ;;  %v3405_v16 = vand.u32 4294901760, %v3404_v26 }
 0x36d   : > { %5233 = vperm.xlu0 %7898, %v9654_v12   ;;  %3190 = vmatmul.mubr.f32.gmra.mrb[36].mxu1 %v3189_v62  ;;  %v3421_v62 = vand.u32 4294901760, %v9579_v50  ;;  %v3417_v17 = vand.u32 4294901760, %v3416_v8  ;;  %v10010_v8 = vand.u32 4294901760, %v9986_v56  ;;  %v3428_v59 = vsub.f32 %v9583_v63, %v3427_v38 }
 0x36e   : > { %7339 = vmatprep.subr.bf16.mxu1 %v7338_v25  ;;  %4044 = vmatmul.mubr.f32.gmra.mrb[38].mxu0 %v3198_v60  ;;  %v3439_v25 = vand.u32 4294901760, %v9585_v31  ;;  %v3210_v6 = vsub.f32 %v9951_v47, %v3209_v20  ;;  %v11553_v60 = vand.u32 4294901760, %v9567_v58  ;;  %v3434_v47 = vsub.f32 %v9581_v21, %v3433_v44 }
 0x36f   : > { %7435 = vmatprep.subr.bf16.mxu0 %v7434_v37  ;;  %7341 = vmatpush1.bf16.msra.mxu1 %v7340_v33  ;;  %v3220_v37 = vand.u32 4294901760, %v9980_v45  ;;  %v11552_v33 = vand.u32 4294901760, %v9565_v19  ;;  %v3422_v26 = vsub.f32 %v9579_v50, %v3421_v62  ;;  %v7344_v48 = vpack.c.bf16 %v3417_v17, %v3405_v16 }
 0x370   : > { %7437 = vmatpush1.bf16.msra.mxu0 %v7436_v55  ;;  %7897 = vset.pattern.permute.xlu1 %v11499_v0  ;;  %v3211_v28 = vand.u32 4294901760, %v3210_v6  ;;  %v11555_v16 = vand.u32 4294901760, %v9571_v27  ;;  %v3429_v63 = vand.u32 4294901760, %v3428_v59 }
 0x371   : > { %7901 = vset.pattern.permute.xlu0 %v11499_v0  ;;  %3195 = vmatprep.mubr.f32.mxu1 %v11488_v24  ;;  %v7438_v55 = vpack.c.bf16 %v11553_v60, %v11552_v33  ;;  %v3221_v33 = vsub.f32 %v9980_v45, %v3220_v37  ;;  %v3440_v60 = vsub.f32 %v9585_v31, %v3439_v25  ;;  %v3423_v6 = vand.u32 4294901760, %v3422_v26 }
 0x372   : > { %4049 = vmatprep.mubr.f32.mxu0 %v11488_v24  ;;  %4965 = vperm.xlu1 %7897, %v9654_v12   ;;  %v3435_v45 = vand.u32 4294901760, %v3434_v47  ;;  %v7444_v26 = vpack.c.bf16 %v3439_v25, %v3427_v38  ;;  %v11562_v25 = vld [vmem:[#allocation8_spill] sm:$0xff] }
 0x373   : > { %4977 = vperm.xlu0 %7901, %v9739_v4   ;;  %3201 = vmatmul.mubr.f32.gmra.mrb[38].mxu1 %v3200_v32  ;;  %v3231_v32 = vand.u32 4294901760, %v9999_v54 }
 0x374   : > { %4053 = vmatmul.mubr.f32.gmra.mrb[40].mxu0 %v3209_v20  ;;  %3206 = vmatprep.mubr.f32.mxu1 %v11488_v24  ;;  %v11554_v20 = vand.u32 4294901760, %v9569_v36 }
 0x375   : > { %4058 = vmatprep.mubr.f32.mxu0 %v11488_v24  ;;  %7343 = vmatprep.subr.bf16.mxu1 %v7342_v43  ;;  %v10027_v43 = vsub.f32 %v9986_v56, %v10010_v8  ;;  %v3232_v31 = vsub.f32 %v9999_v54, %v3231_v32 }
 0x376   : > { %7899 = vset.pattern.permute.xlu1 %v11505_v57  ;;  %7439 = vmatprep.subr.bf16.mxu0 %v7438_v55  ;;  %v7440_v17 = vpack.c.bf16 %v11555_v16, %v11554_v20  ;;  %v3222_v55 = vand.u32 4294901760, %v3221_v33  ;;  %v3441_v20 = vand.u32 4294901760, %v3440_v60  ;;  %v11563_v33 = vld [vmem:[#allocation31_spill] sm:$0xff] }
 0x377   : > { %7903 = vset.pattern.permute.xlu0 %v11505_v57  ;;  %3212 = vmatmul.mubr.f32.gmra.mrb[40].mxu1 %v3211_v28  ;;  %v3242_v28 = vand.u32 4294901760, %v10027_v43  ;;  %v3233_v47 = vand.u32 4294901760, %v3232_v31  ;;  %v7350_v31 = vpack.c.bf16 %v11472_v18, %v11471_v22  ;;  %v11559_v22 = vld [vmem:[#allocation17_spill] sm:$0xff]  ;;  %v11560_v18 = vld [vmem:[#allocation28_spill] sm:$0xff]  ;;  %v11565_v16 = vld [vmem:[#allocation27_spill] sm:$0xff] }
 0x378   : > { %4062 = vmatmul.mubr.f32.gmra.mrb[42].mxu0 %v3220_v37  ;;  %5501 = vperm.xlu1 %7899, %v9654_v12   ;;  %v7346_v12 = vpack.c.bf16 %v3435_v45, %v3423_v6  ;;  %v7442_v37 = vpack.c.bf16 %v3433_v44, %v3421_v62  ;;  %v7348_v59 = vpack.c.bf16 %v3441_v20, %v3429_v63  ;;  %v11557_v45 = vld [vmem:[#allocation7_spill] sm:$0xff]  ;;  %v11568_v6 = vld [vmem:[#allocation49_spill] sm:$0xff] }
 0x379   : > { %5513 = vperm.xlu0 %7903, %v9739_v4   ;;  %7345 = vmatpush1.bf16.msra.mxu1 %v7344_v48  ;;  %v3243_v48 = vsub.f32 %v10027_v43, %v3242_v28  ;;  %v11558_v62 = vld [vmem:[#allocation23_spill] sm:$0xff]  ;;  %v11570_v20 = vld [vmem:[#allocation33_spill] sm:$0xff] }
 0x37a   : > { %7441 = vmatpush1.bf16.msra.mxu0 %v7440_v17  ;;  %3217 = vmatprep.mubr.f32.mxu1 %v11488_v24  ;;  %v11566_v17 = vld [vmem:[#allocation20_spill] sm:$0xff] }
 0x37b   : > { %4067 = vmatprep.mubr.f32.mxu0 %v11488_v24  ;;  %3223 = vmatmul.mubr.f32.gmra.mrb[42].mxu1 %v3222_v55  ;;  %v3244_v63 = vand.u32 4294901760, %v3243_v48  ;;  %v11569_v55 = vld [vmem:[#allocation10_spill] sm:$0xff] }
 0x37c   : > { %4071 = vmatmul.mubr.f32.gmra.mrb[44].mxu0 %v3231_v32  ;;  %7900 = vset.pattern.permute.xlu1 %v11490_v30  ;;  %v11564_v32 = vld [vmem:[#allocation32_spill] sm:$0xff]  ;;  %v11575_v48 = vld [vmem:[#allocation34_spill] sm:$0xff] }
 0x37d   : > { %7904 = vset.pattern.permute.xlu0 %v11490_v30  ;;  %4701 = vperm.xlu1 %7900, %v9739_v4   ;;  %v7356_v60 = vpack.c.bf16 %v11564_v32, %v11563_v33  ;;  %v11605_v33 = vld [vmem:[#allocation44_spill] sm:$0xff] }
 0x37e   : > { %4696 = vperm.xlu0 %7904, %v9702_v42   ;;  %3228 = vmatprep.mubr.f32.mxu1 %v11488_v24 }
 0x37f   : > { %4076 = vmatprep.mubr.f32.mxu0 %v11488_v24  ;;  %3234 = vmatmul.mubr.f32.gmra.mrb[44].mxu1 %v3233_v47  ;;  %v11572_v47 = vld [vmem:[#allocation36_spill] sm:$0xff] }
 0x380   : > { %7347 = vmatprep.subr.bf16.mxu1 %v7346_v12  ;;  %4080 = vmatmul.mubr.f32.gmra.mrb[46].mxu0 %v3242_v28  ;;  %v11571_v28 = vld [vmem:[#allocation35_spill] sm:$0xff] }
 0x381   : > { %7443 = vmatprep.subr.bf16.mxu0 %v7442_v37  ;;  %7349 = vmatpush1.bf16.msra.mxu1 %v7348_v59  ;;  %v7358_v12 = vpack.c.bf16 %v11571_v28, %v11570_v20  ;;  %v11573_v37 = vld [vmem:[#allocation37_spill] sm:$0xff] }
 0x382   : > { %7445 = vmatpush1.bf16.msra.mxu0 %v7444_v26  ;;  %7902 = vset.pattern.permute.xlu1 %v11489_v1  ;;  %v7360_v59 = vpack.c.bf16 %v11573_v37, %v11572_v47  ;;  %v11574_v26 = vld [vmem:[#allocation24_spill] sm:$0xff]  ;;  %v5108_v20 = vld [vmem:[%s11040_s6 + $0x2] sm:$0x3]  ;;  %v5376_v47 = vld [vmem:[%s11040_s6 + $0x4] sm:$0x3] }
 0x383   : > { %7906 = vset.pattern.permute.xlu0 %v11489_v1  ;;  %5245 = vperm.xlu1 %7902, %v9739_v4   ;;  %v11556_v4 = vld [vmem:[#allocation26_spill] sm:$0xff]  ;;  %v5644_v37 = vld [vmem:[%s11040_s6 + $0x6] sm:$0x3] }
 0x384   : > { %5241 = vperm.xlu0 %7906, %v9702_v42   ;;  %3239 = vmatprep.mubr.f32.mxu1 %v11488_v24  ;;  %v7352_v38 = vpack.c.bf16 %v11556_v4, %v11473_v40  ;;  %v11561_v40 = vld [vmem:[#allocation29_spill] sm:$0xff]  ;;  %v11578_v4 = vld [vmem:[#allocation48_spill] sm:$0xff] }
 0x385   : > { %4246 = vmatprep.mubr.f32.mxu0 %v11488_v24  ;;  %3245 = vmatmul.mubr.f32.gmra.mrb[46].mxu1 %v3244_v63  ;;  %v7354_v44 = vpack.c.bf16 %v11561_v40, %v11560_v18  ;;  %v11576_v63 = vld [vmem:[#allocation40_spill] sm:$0xff]  ;;  %v7368_v18 = vpack.c.bf16 %v11525_v61, %v11524_v52  ;;  %v11583_v40 = vld [vmem:[#allocation46_spill] sm:$0xff]  ;;  %v7370_v61 = vpack.c.bf16 %v9537_v34, %v9535_v53  ;;  %v11585_v52 = vld [vmem:[#allocation25_spill] sm:$0xff] }
 0x386   : > { %4248 = vmatmul.mubr.f32.vlgmr.msra.gmra.mrb[16].mxu0 %v9617_v9  ;;  %3475 = vmatprep.mubr.f32.mxu1 %v11488_v24  ;;  %v11586_v53 = vld [vmem:[#allocation9_spill] sm:$0xff]  ;;  %v7374_v34 = vpack.c.bf16 %v9567_v58, %v9565_v19 }
 0x387   : > { %7905 = vset.pattern.permute.xlu1 %v11499_v0  ;;  %4253 = vmatprep.mubr.f32.mxu0 %v11488_v24  ;;  %v11588_v19 = vld [vmem:[#allocation5_spill] sm:$0xff] }
 0x388   : > { %7909 = vset.pattern.permute.xlu0 %v11499_v0  ;;  %4973 = vperm.xlu1 %7905, %v9702_v42   ;;  %v11589_v58 = vld [vmem:[#allocation57_spill] sm:$0xff] }
 0x389   : > { %4985 = vperm.xlu0 %7909, %v9805_v15   ;;  %3477 = vmatmul.mubr.f32.vlgmr.msra.gmra.mrb[16].mxu1 %v9617_v9 }
 0x38a   : > { %7351 = vmatprep.subr.bf16.mxu1 %v7350_v31  ;;  %4255 = vmatmul.mubr.f32.gmra.mrb[18].mxu0 %v11557_v45 }
 0x38b   : > { %7447 = vmatprep.subr.bf16.mxu0 %v11558_v62  ;;  %7353 = vmatpush1.bf16.msra.mxu1 %v7352_v38  ;;  %v7364_v38 = vpack.c.bf16 %v9337_v11, %v9333_v14  ;;  %v11580_v62 = vld [vmem:[#allocation50_spill] sm:$0xff]  ;;  %v11582_v14 = vld [vmem:[#allocation52_spill] sm:$0xff]  ;;  %v7366_v11 = vpack.c.bf16 %v11523_v46, %v9339_v3  ;;  %v11584_v3 = vld [vmem:[#allocation47_spill] sm:$0xff]  ;;  %v7372_v46 = vpack.c.bf16 %v9559_v41, %v9557_v23 }
 0x38c   : > { %7449 = vmatpush1.bf16.msra.mxu0 %v11559_v22  ;;  %3482 = vmatprep.mubr.f32.mxu1 %v11488_v24  ;;  %v11581_v22 = vld [vmem:[#allocation45_spill] sm:$0xff]  ;;  %v7376_v23 = vpack.c.bf16 %v9571_v27, %v9569_v36  ;;  %v11587_v41 = vld [vmem:[#allocation12_spill] sm:$0xff]  ;;  %v7378_v36 = vpack.c.bf16 %v9581_v21, %v9579_v50  ;;  %v11590_v27 = vld [vmem:[#allocation14_spill] sm:$0xff] }
 0x38d   : > { %4260 = vmatprep.mubr.f32.mxu0 %v11488_v24  ;;  %7907 = vset.pattern.permute.xlu1 %v11505_v57  ;;  %v11593_v50 = vld [vmem:[#allocation6_spill] sm:$0xff]  ;;  %v11594_v21 = vld [vmem:[#allocation19_spill] sm:$0xff] }
 0x38e   : > { %7911 = vset.pattern.permute.xlu0 %v11505_v57  ;;  %3484 = vmatmul.mubr.f32.gmra.mrb[18].mxu1 %v11557_v45 }
 0x38f   : > { %4262 = vmatmul.mubr.f32.gmra.mrb[20].mxu0 %v11562_v25  ;;  %5509 = vperm.xlu1 %7907, %v9702_v42   ;;  %v11567_v42 = vld [vmem:[#allocation30_spill] sm:$0xff] }
 0x390   : > { %5521 = vperm.xlu0 %7911, %v9805_v15   ;;  %3489 = vmatprep.mubr.f32.mxu1 %v11488_v24 }
 0x391   : > { %4267 = vmatprep.mubr.f32.mxu0 %v11488_v24  ;;  %7355 = vmatprep.subr.bf16.mxu1 %v7354_v44  ;;  %v11592_v44 = vld [vmem:[#allocation11_spill] sm:$0xff] }
 0x392   : > { %3491 = vmatmul.mubr.f32.gmra.mrb[20].mxu1 %v11562_v25  ;;  %7451 = vmatprep.subr.bf16.mxu0 %v11565_v16 }
 0x393   : > { %4269 = vmatmul.mubr.f32.gmra.mrb[22].mxu0 %v11566_v17  ;;  %7908 = vset.pattern.permute.xlu1 %v11490_v30 }
 0x394   : > { %7912 = vset.pattern.permute.xlu0 %v11490_v30  ;;  %7357 = vmatpush1.bf16.msra.mxu1 %v7356_v60 }
 0x395   : > { %7453 = vmatpush1.bf16.msra.mxu0 %v11567_v42  ;;  %4711 = vperm.xlu1 %7908, %v9805_v15  }
 0x396   : > { %4706 = vperm.xlu0 %7912, %v11568_v6   ;;  %3496 = vmatprep.mubr.f32.mxu1 %v11488_v24 }
 0x397   : > { %4274 = vmatprep.mubr.f32.mxu0 %v11488_v24  ;;  %3498 = vmatmul.mubr.f32.gmra.mrb[22].mxu1 %v11566_v17 }
 0x398   : > { %4276 = vmatmul.mubr.f32.gmra.mrb[24].mxu0 %v11569_v55  ;;  %3503 = vmatprep.mubr.f32.mxu1 %v11488_v24 }
 0x399   : > { %7910 = vset.pattern.permute.xlu1 %v11489_v1  ;;  %4281 = vmatprep.mubr.f32.mxu0 %v11488_v24 }
 0x39a   : > { %7914 = vset.pattern.permute.xlu0 %v11489_v1  ;;  %5253 = vperm.xlu1 %7910, %v9805_v15   ;;  %v11577_v15 = vld [vmem:[#allocation39_spill] sm:$0xff] }
 0x39b   : > { %5249 = vperm.xlu0 %7914, %v11568_v6   ;;  %3505 = vmatmul.mubr.f32.gmra.mrb[24].mxu1 %v11569_v55  ;;  %v7362_v31 = vpack.c.bf16 %v11577_v15, %v11508_v13  ;;  %v11579_v13 = vld [vmem:[#allocation41_spill] sm:$0xff] }
 0x39c   : > { %7359 = vmatprep.subr.bf16.mxu1 %v7358_v12  ;;  %4283 = vmatmul.mubr.f32.gmra.mrb[26].mxu0 %v11574_v26 }
 0x39d   : > { %7455 = vmatprep.subr.bf16.mxu0 %v11575_v48  ;;  %7361 = vmatpush1.bf16.msra.mxu1 %v7360_v59 }
 0x39e   : > { %7457 = vmatpush1.bf16.msra.mxu0 %v11576_v63  ;;  %7913 = vset.pattern.permute.xlu1 %v11499_v0 }
 0x39f   : > { %7917 = vset.pattern.permute.xlu0 %v11499_v0  ;;  %3510 = vmatprep.mubr.f32.mxu1 %v11488_v24 }
 0x3a0   : > { %4288 = vmatprep.mubr.f32.mxu0 %v11488_v24  ;;  %4981 = vperm.xlu1 %7913, %v11568_v6  }
 0x3a1   : > { %4993 = vperm.xlu0 %7917, %v9867_v39   ;;  %3512 = vmatmul.mubr.f32.gmra.mrb[26].mxu1 %v11574_v26 }
 0x3a2   : > { %4290 = vmatmul.mubr.f32.gmra.mrb[28].mxu0 %v11578_v4  ;;  %3517 = vmatprep.mubr.f32.mxu1 %v11488_v24 }
 0x3a3   : > { %4295 = vmatprep.mubr.f32.mxu0 %v11488_v24  ;;  %7363 = vmatprep.subr.bf16.mxu1 %v7362_v31 }
 0x3a4   : > { %7915 = vset.pattern.permute.xlu1 %v11505_v57  ;;  %7459 = vmatprep.subr.bf16.mxu0 %v11579_v13 }
 0x3a5   : > { %7919 = vset.pattern.permute.xlu0 %v11505_v57  ;;  %3519 = vmatmul.mubr.f32.gmra.mrb[28].mxu1 %v11578_v4 }
 0x3a6   : > { %4297 = vmatmul.mubr.f32.gmra.mrb[30].mxu0 %v11580_v62  ;;  %5517 = vperm.xlu1 %7915, %v11568_v6  }
 0x3a7   : > { %5529 = vperm.xlu0 %7919, %v9867_v39   ;;  %7365 = vmatpush1.bf16.msra.mxu1 %v7364_v38 }
 0x3a8   : > { %7461 = vmatpush1.bf16.msra.mxu0 %v11581_v22  ;;  %3524 = vmatprep.mubr.f32.mxu1 %v11488_v24 }
 0x3a9   : > { %4302 = vmatprep.mubr.f32.mxu0 %v11488_v24  ;;  %3526 = vmatmul.mubr.f32.gmra.mrb[30].mxu1 %v11580_v62 }
 0x3aa   : > { %4304 = vmatmul.mubr.f32.gmra.mrb[32].mxu0 %v11582_v14  ;;  %7916 = vset.pattern.permute.xlu1 %v11490_v30 }
 0x3ab   : > { %7920 = vset.pattern.permute.xlu0 %v11490_v30  ;;  %4721 = vperm.xlu1 %7916, %v9867_v39  }
 0x3ac   : > { %4716 = vperm.xlu0 %7920, %v9824_v29   ;;  %3531 = vmatprep.mubr.f32.mxu1 %v11488_v24 }
 0x3ad   : > { %4309 = vmatprep.mubr.f32.mxu0 %v11488_v24  ;;  %3533 = vmatmul.mubr.f32.gmra.mrb[32].mxu1 %v11582_v14 }
 0x3ae   : > { %7367 = vmatprep.subr.bf16.mxu1 %v7366_v11  ;;  %4311 = vmatmul.mubr.f32.gmra.mrb[34].mxu0 %v9834_v51 }
 0x3af   : > { %7463 = vmatprep.subr.bf16.mxu0 %v11583_v40  ;;  %7369 = vmatpush1.bf16.msra.mxu1 %v7368_v18 }
 0x3b0   : > { %7465 = vmatpush1.bf16.msra.mxu0 %v11584_v3  ;;  %7918 = vset.pattern.permute.xlu1 %v11489_v1 }
 0x3b1   : > { %7922 = vset.pattern.permute.xlu0 %v11489_v1  ;;  %5261 = vperm.xlu1 %7918, %v9867_v39  }
 0x3b2   : > { %5257 = vperm.xlu0 %7922, %v9824_v29   ;;  %3538 = vmatprep.mubr.f32.mxu1 %v11488_v24 }
 0x3b3   : > { %4316 = vmatprep.mubr.f32.mxu0 %v11488_v24  ;;  %3540 = vmatmul.mubr.f32.gmra.mrb[34].mxu1 %v9834_v51 }
 0x3b4   : > { %4318 = vmatmul.mubr.f32.gmra.mrb[36].mxu0 %v9865_v5  ;;  %3545 = vmatprep.mubr.f32.mxu1 %v11488_v24 }
 0x3b5   : > { %7921 = vset.pattern.permute.xlu1 %v11499_v0  ;;  %4323 = vmatprep.mubr.f32.mxu0 %v11488_v24 }
 0x3b6   : > { %7925 = vset.pattern.permute.xlu0 %v11499_v0  ;;  %4989 = vperm.xlu1 %7921, %v9824_v29  }
 0x3b7   : > { %5001 = vperm.xlu0 %7925, %v9920_v49   ;;  %3547 = vmatmul.mubr.f32.gmra.mrb[36].mxu1 %v9865_v5 }
 0x3b8   : > { %7371 = vmatprep.subr.bf16.mxu1 %v7370_v61  ;;  %4325 = vmatmul.mubr.f32.gmra.mrb[38].mxu0 %v9902_v2 }
 0x3b9   : > { %7467 = vmatprep.subr.bf16.mxu0 %v11585_v52  ;;  %7373 = vmatpush1.bf16.msra.mxu1 %v7372_v46 }
 0x3ba   : > { %7469 = vmatpush1.bf16.msra.mxu0 %v11586_v53  ;;  %3552 = vmatprep.mubr.f32.mxu1 %v11488_v24 }
 0x3bb   : > { %4330 = vmatprep.mubr.f32.mxu0 %v11488_v24  ;;  %7923 = vset.pattern.permute.xlu1 %v11505_v57 }
 0x3bc   : > { %7927 = vset.pattern.permute.xlu0 %v11505_v57  ;;  %3554 = vmatmul.mubr.f32.gmra.mrb[38].mxu1 %v9902_v2 }
 0x3bd   : > { %4332 = vmatmul.mubr.f32.gmra.mrb[40].mxu0 %v9930_v10  ;;  %5525 = vperm.xlu1 %7923, %v9824_v29   ;;  %v11591_v29 = vld [vmem:[#allocation15_spill] sm:$0xff] }
 0x3be   : > { %5537 = vperm.xlu0 %7927, %v9920_v49   ;;  %3559 = vmatprep.mubr.f32.mxu1 %v11488_v24  ;;  %v7380_v39 = vpack.c.bf16 %v11591_v29, %v11590_v27 }
 0x3bf   : > { %4337 = vmatprep.mubr.f32.mxu0 %v11488_v24  ;;  %7375 = vmatprep.subr.bf16.mxu1 %v7374_v34 }
 0x3c0   : > { %3561 = vmatmul.mubr.f32.gmra.mrb[40].mxu1 %v9930_v10  ;;  %7471 = vmatprep.subr.bf16.mxu0 %v11587_v41 }
 0x3c1   : > { %4339 = vmatmul.mubr.f32.gmra.mrb[42].mxu0 %v9954_v7  ;;  %7924 = vset.pattern.permute.xlu1 %v11490_v30 }
 0x3c2   : > { %7928 = vset.pattern.permute.xlu0 %v11490_v30  ;;  %7377 = vmatpush1.bf16.msra.mxu1 %v7376_v23 }
 0x3c3   : > { %7473 = vmatpush1.bf16.msra.mxu0 %v11588_v19  ;;  %4731 = vperm.xlu1 %7924, %v9920_v49  }
 0x3c4   : > { %4726 = vperm.xlu0 %7928, %v9895_v35   ;;  %3566 = vmatprep.mubr.f32.mxu1 %v11488_v24 }
 0x3c5   : > { %4344 = vmatprep.mubr.f32.mxu0 %v11488_v24  ;;  %3568 = vmatmul.mubr.f32.gmra.mrb[42].mxu1 %v9954_v7 }
 0x3c6   : > { %4346 = vmatmul.mubr.f32.gmra.mrb[44].mxu0 %v11589_v58  ;;  %3573 = vmatprep.mubr.f32.mxu1 %v11488_v24 }
 0x3c7   : > { %7926 = vset.pattern.permute.xlu1 %v11489_v1  ;;  %4351 = vmatprep.mubr.f32.mxu0 %v11488_v24 }
 0x3c8   : > { %7930 = vset.pattern.permute.xlu0 %v11489_v1  ;;  %5269 = vperm.xlu1 %7926, %v9920_v49   ;;  %v11595_v49 = vld [vmem:[#allocation54_spill] sm:$0xff] }
 0x3c9   : > { %5265 = vperm.xlu0 %7930, %v9895_v35   ;;  %3575 = vmatmul.mubr.f32.gmra.mrb[44].mxu1 %v11589_v58 }
 0x3ca   : > { %7379 = vmatprep.subr.bf16.mxu1 %v7378_v36  ;;  %4353 = vmatmul.mubr.f32.gmra.mrb[46].mxu0 %v10010_v8 }
 0x3cb   : > { %7475 = vmatprep.subr.bf16.mxu0 %v11592_v44  ;;  %7381 = vmatpush1.bf16.msra.mxu1 %v7380_v39 }
 0x3cc   : > { %7477 = vmatpush1.bf16.msra.mxu0 %v11593_v50  ;;  %7929 = vset.pattern.permute.xlu1 %v11499_v0 }
 0x3cd   : > { %7933 = vset.pattern.permute.xlu0 %v11499_v0  ;;  %3580 = vmatprep.mubr.f32.mxu1 %v11488_v24 }
 0x3ce   : > { %4455 = vmatprep.mubr.f32.mxu0 %v11488_v24  ;;  %4997 = vperm.xlu1 %7929, %v9895_v35  }
 0x3cf   : > { %5009 = vperm.xlu0 %7933, %v9986_v56   ;;  %3582 = vmatmul.mubr.f32.gmra.mrb[46].mxu1 %v10010_v8 }
 0x3d0   : > { %4457 = vmatmul.mubr.f32.vlgmr.msra.gmra.mrb[16].mxu0 %v9617_v9  ;;  %3716 = vmatprep.mubr.f32.mxu1 %v11488_v24  ;;  %v11596_v9 = vld [vmem:[#allocation18_spill] sm:$0xff] }
 0x3d1   : > { %4462 = vmatprep.mubr.f32.mxu0 %v11488_v24 }
 0x3d2   : > { %7931 = vset.pattern.permute.xlu1 %v11505_v57 }
 0x3d3   : > { %7935 = vset.pattern.permute.xlu0 %v11490_v30  ;;  %3719 = vmatmul.mubr.f32.vlgmr.msra.gmra.mrb[16].mxu1 %v11594_v21 }
 0x3d4   : > { %4464 = vmatmul.mubr.f32.gmra.mrb[18].mxu0 %v11557_v45  ;;  %5533 = vperm.xlu1 %7931, %v9895_v35   ;;  %v11597_v35 = vld [vmem:[#allocation21_spill] sm:$0xff]  ;;  %v11602_v45 = vld [vmem:[#allocation51_spill] sm:$0xff] }
 0x3d5   : > { %4736 = vperm.xlu0 %7935, %v11595_v49   ;;  %3724 = vmatprep.mubr.f32.mxu1 %v11488_v24 }
 0x3d6   : > { %4469 = vmatprep.mubr.f32.mxu0 %v11488_v24 }
 0x3d7   : > { %3727 = vmatmul.mubr.f32.gmra.mrb[18].mxu1 %v11596_v9 }
 0x3d8   : > { %4471 = vmatmul.mubr.f32.gmra.mrb[20].mxu0 %v11562_v25  ;;  %7932 = vset.pattern.permute.xlu1 %v11490_v30  ;;  %v11598_v30 = vld [vmem:[#allocation22_spill] sm:$0xff]  ;;  %v11604_v25 = vld [vmem:[#allocation43_spill] sm:$0xff] }
 0x3d9   : > { %7937 = vset.pattern.permute.xlu0 %v11489_v1  ;;  %4741 = vperm.xlu1 %7932, %v9986_v56  }
 0x3da   : > { %5273 = vperm.xlu0 %7937, %v11595_v49   ;;  %3732 = vmatprep.mubr.f32.mxu1 %v11488_v24 }
 0x3db   : > { %4476 = vmatprep.mubr.f32.mxu0 %v11488_v24  ;;  %3735 = vmatmul.mubr.f32.gmra.mrb[20].mxu1 %v11597_v35 }
 0x3dc   : > { %4478 = vmatmul.mubr.f32.gmra.mrb[22].mxu0 %v11566_v17  ;;  %3740 = vmatprep.mubr.f32.mxu1 %v11488_v24  ;;  %v4842_v17 = vlaneseq }
 0x3dd   : > { %7934 = vset.pattern.permute.xlu1 %v11489_v1  ;;  %4483 = vmatprep.mubr.f32.mxu0 %v11488_v24  ;;  %v11599_v1 = vld [vmem:[#allocation13_spill] sm:$0xff] }
 0x3de   : > { %7939 = vset.pattern.permute.xlu0 %v11505_v57  ;;  %5277 = vperm.xlu1 %7934, %v9986_v56   ;;  %v4843_v6 = vshrl.u32 %v4842_v17, 7 }
 0x3df   : > { %5545 = vperm.xlu0 %7939, %v9986_v56   ;;  %3743 = vmatmul.mubr.f32.gmra.mrb[22].mxu1 %v11598_v30  ;;  %v11600_v56 = vld [vmem:[#allocation16_spill] sm:$0xff] }
 0x3e0   : > { %4485 = vmatmul.mubr.f32.gmra.mrb[24].mxu0 %v11569_v55  ;;  %3748 = vmatprep.mubr.f32.mxu1 %v11488_v24  ;;  %v4848_v28 = vsub.s32 1, %v4843_v6 }
 0x3e1   : > { %4490 = vmatprep.mubr.f32.mxu0 %v11488_v24 }
 0x3e2   : > { %7936 = vset.pattern.permute.xlu1 %v11499_v0  ;;  %v11601_v0 = vld [vmem:[#allocation38_spill] sm:$0xff]  ;;  %v10331_v11 = vrot.slane %v5376_v47, %v4848_v28  ;;  %v10333_v18 = vrot.slane %v5644_v37, %v4848_v28 }
 0x3e3   : > { %5005 = vperm.xlu1 %7936, %v11595_v49   ;;  %3751 = vmatmul.mubr.f32.gmra.mrb[24].mxu1 %v11599_v1 }
 0x3e4   : > { %4492 = vmatmul.mubr.f32.gmra.mrb[26].mxu0 %v11574_v26  ;;  %3756 = vmatprep.mubr.f32.mxu1 %v11488_v24 }
 0x3e5   : > { %4497 = vmatprep.mubr.f32.mxu0 %v11488_v24 }
 0x3e7   : > { %7938 = vset.pattern.permute.xlu1 %v11505_v57  ;;  %3759 = vmatmul.mubr.f32.gmra.mrb[26].mxu1 %v11600_v56  ;;  %v11603_v57 = vld [vmem:[#allocation42_spill] sm:$0xff] }
 0x3e8   : > { %4499 = vmatmul.mubr.f32.gmra.mrb[28].mxu0 %v11578_v4  ;;  %5541 = vperm.xlu1 %7938, %v11595_v49  }
 0x3e9   : > { %3764 = vmatprep.mubr.f32.mxu1 %v11488_v24  ;;  %4504 = vmatprep.mubr.f32.mxu0 %v11488_v24 }
 0x3eb   : > { %3767 = vmatmul.mubr.f32.gmra.mrb[28].mxu1 %v11601_v0 }
 0x3ec   : > { %4506 = vmatmul.mubr.f32.gmra.mrb[30].mxu0 %v11580_v62  ;;  %3772 = vmatprep.mubr.f32.mxu1 %v11488_v24 }
 0x3ed   : > { %4511 = vmatprep.mubr.f32.mxu0 %v11488_v24 }
 0x3ef   : > { %3775 = vmatmul.mubr.f32.gmra.mrb[30].mxu1 %v11602_v45 }
 0x3f0   : > { %4513 = vmatmul.mubr.f32.gmra.mrb[32].mxu0 %v11582_v14  ;;  %3780 = vmatprep.mubr.f32.mxu1 %v11488_v24  ;;  %v10329_v14 = vrot.slane %v5108_v20, %v4848_v28 }
 0x3f1   : > { %4518 = vmatprep.mubr.f32.mxu0 %v11488_v24 }
 0x3f3   : > { %3783 = vmatmul.mubr.f32.gmra.mrb[32].mxu1 %v11603_v57 }
 0x3f4   : > { %4520 = vmatmul.mubr.f32.gmra.mrb[34].mxu0 %v9834_v51  ;;  %3788 = vmatprep.mubr.f32.mxu1 %v11488_v24  ;;  %v11606_v51 = vld [vmem:[#allocation53_spill] sm:$0xff] }
 0x3f5   : > { %4525 = vmatprep.mubr.f32.mxu0 %v11488_v24 }
 0x3f7   : > { %3791 = vmatmul.mubr.f32.gmra.mrb[34].mxu1 %v11604_v25 }
 0x3f8   : > { %4527 = vmatmul.mubr.f32.gmra.mrb[36].mxu0 %v9865_v5  ;;  %3796 = vmatprep.mubr.f32.mxu1 %v11488_v24  ;;  %v11607_v5 = vld [vmem:[#allocation55_spill] sm:$0xff] }
 0x3f9   : > { %4532 = vmatprep.mubr.f32.mxu0 %v11488_v24 }
 0x3fb   : > { %3799 = vmatmul.mubr.f32.gmra.mrb[36].mxu1 %v11605_v33 }
 0x3fc   : > { %4534 = vmatmul.mubr.f32.gmra.mrb[38].mxu0 %v9902_v2  ;;  %3804 = vmatprep.mubr.f32.mxu1 %v11488_v24  ;;  %v11608_v2 = vld [vmem:[#allocation56_spill] sm:$0xff] }
 0x3fd   : > { %4539 = vmatprep.mubr.f32.mxu0 %v11488_v24 }
 0x3ff   : > { %3807 = vmatmul.mubr.f32.gmra.mrb[38].mxu1 %v11606_v51 }
 0x400   : > { %4541 = vmatmul.mubr.f32.gmra.mrb[40].mxu0 %v9930_v10  ;;  %3812 = vmatprep.mubr.f32.mxu1 %v11488_v24  ;;  %v10291_v10 = vpop.permute.xlu1 %4953 }
 0x401   : > { %4546 = vmatprep.mubr.f32.mxu0 %v11488_v24 }
 0x403   : > { %3815 = vmatmul.mubr.f32.gmra.mrb[40].mxu1 %v11607_v5 }
 0x404   : > { %4548 = vmatmul.mubr.f32.gmra.mrb[42].mxu0 %v9954_v7  ;;  %3820 = vmatprep.mubr.f32.mxu1 %v11488_v24  ;;  %v10293_v7 = vpop.permute.xlu0 %4671  ;;  %v10295_v32 = vpop.permute.xlu1 %5489 }
 0x405   : > { %4553 = vmatprep.mubr.f32.mxu0 %v11488_v24 }
 0x407   : > { %3823 = vmatmul.mubr.f32.gmra.mrb[42].mxu1 %v11608_v2 }
 0x408   : > { %4555 = vmatmul.mubr.f32.gmra.mrb[44].mxu0 %v11589_v58  ;;  %3828 = vmatprep.mubr.f32.mxu1 %v11488_v24  ;;  %v10297_v60 = vpop.permute.xlu0 %5221  ;;  %v10299_v16 = vpop.permute.xlu1 %5217 }
 0x409   : > { %4560 = vmatprep.mubr.f32.mxu0 %v11488_v24 }
 0x40b   : > { %3831 = vmatmul.mubr.f32.gmra.mrb[44].mxu1 %v9999_v54 }
 0x40c   : > { %4562 = vmatmul.mubr.f32.gmra.mrb[46].mxu0 %v10010_v8  ;;  %3836 = vmatprep.mubr.f32.mxu1 %v11488_v24  ;;  %v4667_v42 = vpop.permute.xlu0 %4666  ;;  %v10301_v54 = vpop.permute.xlu1 %4681  ;;  %v4844_v8 = vsub.s32 0, %v4843_v6 }
 0x40e   : > { %v10319_v63 = vrot.slane %v5108_v20, %v4844_v8  ;;  %v10321_v31 = vrot.slane %v5376_v47, %v4844_v8  ;;  %v10323_v4 = vrot.slane %v5644_v37, %v4844_v8 }
 0x40f   : > { %3839 = vmatmul.mubr.f32.gmra.mrb[46].mxu1 %v10027_v43  ;;  %v4840_v43 = vld [vmem:[%s11040_s6] sm:$0x3] }
 0x410   : > { %v4950_v55 = vpop.permute.xlu0 %4949  ;;  %v10315_v59 = vpop.permute.xlu1 %5229  ;;  %v10317_v48 = vrot.slane %v4840_v43, %v4844_v8  ;;  %v10327_v62 = vrot.slane %v4840_v43, %v4848_v28 }
 0x414   : > { %v5486_v3 = vpop.permute.xlu0 %5485  ;;  %v10337_v21 = vpop.permute.xlu1 %4676 }
 0x4a3   : > { %v4458_v24 = vpop.f32.mrb[16].mxu0 }
 0x4a4   : > { %v4460_v12 = vpop.f32.mrb[17].mxu0 }
 0x4a6   : > { %v3720_v26 = vpop.f32.mrb[16].mxu1 }
 0x4a7   : > { %v7510_v15 = vadd.f32 %v4458_v24, %v3720_v26  ;;  %v10325_v38 = vpop.f32.mrb[18].mxu0  ;;  %v3722_v13 = vpop.f32.mrb[17].mxu1 }
 0x4a8   : > { %v7511_v22 = vadd.f32 %v4460_v12, %v3722_v13  ;;  %v4467_v40 = vpop.f32.mrb[19].mxu0 }
 0x4a9   : > { %v4568_v61 = vadd.f32 -1.0, %v7510_v15  ;;  %v4744_v46 = vadd.f32 %v7510_v15, %v4667_v42  ;;  %v5012_v52 = vadd.f32 %v7510_v15, %v4950_v55  ;;  %v5280_v53 = vadd.f32 %v7510_v15, %v10299_v16 }
 0x4aa   : > { %v5548_v34 = vadd.f32 %v7510_v15, %v5486_v3  ;;  %v4569_v23 = vadd.f32 -1.0, %v7511_v22  ;;  %v4745_v41 = vadd.f32 %v7511_v22, %v4667_v42  ;;  %v5013_v19 = vadd.f32 %v7511_v22, %v4950_v55  ;;  %v3728_v58 = vpop.f32.mrb[18].mxu1 }
 0x4ab   : > { %v4600_v36 = vmax.f32 %v4568_v61, 0.0  ;;  %v4776_v27 = vadd.f32 -2.0, %v4744_v46  ;;  %v5044_v29 = vadd.f32 -2.0, %v5012_v52  ;;  %v5312_v39 = vadd.f32 -2.0, %v5280_v53  ;;  %v4472_v44 = vpop.f32.mrb[20].mxu0  ;;  %v3730_v50 = vpop.f32.mrb[19].mxu1 }
 0x4ac   : > { %v5580_v49 = vadd.f32 -2.0, %v5548_v34  ;;  %v4601_v9 = vmax.f32 %v4569_v23, 0.0  ;;  %v4777_v35 = vadd.f32 -2.0, %v4745_v41  ;;  %v5045_v30 = vadd.f32 -2.0, %v5013_v19  ;;  %v4474_v1 = vpop.f32.mrb[21].mxu0  ;;  %v10353_v61 = vpop.permute.xlu1 %4957 }
 0x4ad   : > { %v4632_v56 = vsub.f32 1.0, %v4600_v36  ;;  %v4808_v0 = vmax.f32 %v4776_v27, 0.0  ;;  %v5076_v45 = vmax.f32 %v5044_v29, 0.0  ;;  %v5344_v57 = vmax.f32 %v5312_v39, 0.0 }
 0x4ae   : > { %v5612_v25 = vmax.f32 %v5580_v49, 0.0  ;;  %v4633_v33 = vsub.f32 1.0, %v4601_v9  ;;  %v4809_v51 = vmax.f32 %v4777_v35, 0.0  ;;  %v5077_v5 = vmax.f32 %v5045_v30, 0.0  ;;  %v3736_v2 = vpop.f32.mrb[20].mxu1 }
 0x4af   : > { %v4852_v17 = vmul.f32 %v10317_v48, %v4632_v56  ;;  %v5120_v42 = vmul.f32 %v10319_v63, %v4632_v56  ;;  %v5388_v6 = vmul.f32 %v10321_v31, %v4632_v56  ;;  %v5656_v8 = vmul.f32 %v10323_v4, %v4632_v56  ;;  %v4479_v55 = vpop.f32.mrb[22].mxu0  ;;  %v3738_v24 = vpop.f32.mrb[21].mxu1 }
 0x4b0   : > { %v4853_v43 = vmul.f32 %v10327_v62, %v4633_v33  ;;  %v5121_v20 = vmul.f32 %v10329_v14, %v4633_v33  ;;  %v5281_v28 = vadd.f32 %v7511_v22, %v10299_v16  ;;  %v5389_v12 = vmul.f32 %v10331_v11, %v4633_v33  ;;  %v10351_v47 = vpop.f32.mrb[23].mxu0 }
 0x4b1   : > { %v4884_v37 = vadd.f32 %v4852_v17, %v4808_v0  ;;  %v5152_v26 = vadd.f32 %v5120_v42, %v5076_v45  ;;  %v5420_v15 = vadd.f32 %v5388_v6, %v5344_v57  ;;  %v5688_v13 = vadd.f32 %v5656_v8, %v5612_v25 }
 0x4b2   : > { %v4885_v46 = vadd.f32 %v4853_v43, %v4809_v51  ;;  %v5153_v52 = vadd.f32 %v5121_v20, %v5077_v5  ;;  %v5313_v53 = vadd.f32 -2.0, %v5281_v28  ;;  %v5549_v34 = vadd.f32 %v7511_v22, %v5486_v3  ;;  %v3744_v23 = vpop.f32.mrb[22].mxu1 }
 0x4b3   : > { %4916 = vst [vmem:[%s10356_s21] sm:$0xff] %v4884_v37  ;;  %5184 = vst [vmem:[%s10356_s21 + $0x10] sm:$0xff] %v5152_v26  ;;  %v5657_v16 = vmul.f32 %v10333_v18, %v4633_v33  ;;  %v7512_v41 = vadd.f32 %v10325_v38, %v3728_v58  ;;  %v10364_v19 = vadd.f32 %v4467_v40, %v3730_v50  ;;  %v10368_v3 = vpop.f32.mrb[24].mxu0  ;;  %v10370_v36 = vpop.f32.mrb[23].mxu1 }
 0x4b4   : > { %5452 = vst [vmem:[%s10356_s21 + $0x20] sm:$0xff] %v5420_v15  ;;  %5720 = vst [vmem:[%s10356_s21 + $0x30] sm:$0xff] %v5688_v13  ;;  %v10366_v22 = vadd.f32 %v4472_v44, %v3736_v2  ;;  %v5345_v27 = vmax.f32 %v5313_v53, 0.0  ;;  %v5581_v29 = vadd.f32 -2.0, %v5549_v34  ;;  %v10374_v39 = vadd.f32 %v4474_v1, %v3738_v24  ;;  %v10378_v9 = vpop.f32.mrb[25].mxu0  ;;  %v10383_v44 = vpop.permute.xlu0 %4961 }
 0x4b5   : > { %4917 = vst [vmem:[%s10356_s21 + $0x8] sm:$0xff] %v4885_v46  ;;  %5185 = vst [vmem:[%s10356_s21 + $0x18] sm:$0xff] %v5153_v52  ;;  %v10376_v49 = vadd.f32 %v4479_v55, %v3744_v23  ;;  %v4570_v35 = vadd.f32 -1.0, %v7512_v41  ;;  %v4746_v38 = vadd.f32 %v7512_v41, %v10293_v7  ;;  %v5014_v40 = vadd.f32 %v7512_v41, %v10291_v10  ;;  %v10393_v2 = vpop.permute.xlu1 %5225 }
 0x4b6   : > { %v5282_v58 = vadd.f32 %v7512_v41, %v10297_v60  ;;  %v5421_v50 = vadd.f32 %v5389_v12, %v5345_v27  ;;  %v5613_v30 = vmax.f32 %v5581_v29, 0.0  ;;  %v5550_v56 = vadd.f32 %v7512_v41, %v10295_v32  ;;  %v10387_v0 = vpop.f32.mrb[24].mxu1 }
 0x4b7   : > { %v4571_v1 = vadd.f32 -1.0, %v10364_v19  ;;  %v4602_v45 = vmax.f32 %v4570_v35, 0.0  ;;  %v4778_v57 = vadd.f32 -2.0, %v4746_v38  ;;  %v5046_v25 = vadd.f32 -2.0, %v5014_v40  ;;  %v10389_v51 = vpop.f32.mrb[26].mxu0  ;;  %v10391_v5 = vpop.f32.mrb[25].mxu1 }
 0x4b8   : > { %v5314_v33 = vadd.f32 -2.0, %v5282_v58  ;;  %5453 = vst [vmem:[%s10356_s21 + $0x28] sm:$0xff] %v5421_v50  ;;  %v5689_v17 = vadd.f32 %v5657_v16, %v5613_v30  ;;  %v5582_v42 = vadd.f32 -2.0, %v5550_v56  ;;  %v4747_v8 = vadd.f32 %v10364_v19, %v10293_v7  ;;  %v10398_v55 = vpop.f32.mrb[27].mxu0  ;;  %v10413_v16 = vpop.permute.xlu0 %5497 }
 0x4b9   : > { %v4603_v6 = vmax.f32 %v4571_v1, 0.0  ;;  %v4634_v24 = vsub.f32 1.0, %v4602_v45  ;;  %v4810_v43 = vmax.f32 %v4778_v57, 0.0  ;;  %v5078_v20 = vmax.f32 %v5046_v25, 0.0  ;;  %v10419_v30 = vpop.permute.xlu1 %5493 }
 0x4ba   : > { %v5346_v28 = vmax.f32 %v5314_v33, 0.0  ;;  %5721 = vst [vmem:[%s10356_s21 + $0x38] sm:$0xff] %v5689_v17  ;;  %v5614_v12 = vmax.f32 %v5582_v42, 0.0  ;;  %v4779_v26 = vadd.f32 -2.0, %v4747_v8  ;;  %v5015_v15 = vadd.f32 %v10364_v19, %v10291_v10  ;;  %v10403_v13 = vpop.f32.mrb[26].mxu1 }
 0x4bb   : > { %v4635_v37 = vsub.f32 1.0, %v4603_v6  ;;  %v4854_v46 = vmul.f32 %v10317_v48, %v4634_v24  ;;  %v5122_v52 = vmul.f32 %v10319_v63, %v4634_v24  ;;  %v5390_v7 = vmul.f32 %v10321_v31, %v4634_v24  ;;  %v10409_v34 = vpop.f32.mrb[28].mxu0  ;;  %v10411_v23 = vpop.f32.mrb[27].mxu1 }
 0x4bc   : > { %v5658_v53 = vmul.f32 %v10323_v4, %v4634_v24  ;;  %v4811_v41 = vmax.f32 %v4779_v26, 0.0  ;;  %v5047_v27 = vadd.f32 -2.0, %v5015_v15  ;;  %v10417_v35 = vpop.f32.mrb[29].mxu0  ;;  %v5283_v45 = vadd.f32 %v10364_v19, %v10297_v60  ;;  %v10449_v15 = vpop.permute.xlu0 %4969 }
 0x4bd   : > { %v4855_v10 = vmul.f32 %v10327_v62, %v4635_v37  ;;  %v5123_v29 = vmul.f32 %v10329_v14, %v4635_v37  ;;  %v4886_v38 = vadd.f32 %v4854_v46, %v4810_v43  ;;  %v5154_v40 = vadd.f32 %v5122_v52, %v5078_v20 }
 0x4be   : > { %v5422_v58 = vadd.f32 %v5390_v7, %v5346_v28  ;;  %v5690_v50 = vadd.f32 %v5658_v53, %v5614_v12  ;;  %v5079_v1 = vmax.f32 %v5047_v27, 0.0  ;;  %v5391_v57 = vmul.f32 %v10331_v11, %v4635_v37  ;;  %v10424_v25 = vpop.f32.mrb[28].mxu1 }
 0x4bf   : > { %v4887_v56 = vadd.f32 %v4855_v10, %v4811_v41  ;;  %4918 = vst [vmem:[%s10356_s21 + $0x40] sm:$0xff] %v4886_v38  ;;  %5186 = vst [vmem:[%s10356_s21 + $0x50] sm:$0xff] %v5154_v40  ;;  %v5551_v33 = vadd.f32 %v10364_v19, %v10295_v32  ;;  %v5659_v17 = vmul.f32 %v10333_v18, %v4635_v37  ;;  %v4572_v42 = vadd.f32 -1.0, %v10366_v22  ;;  %v10436_v60 = vpop.f32.mrb[30].mxu0  ;;  %v10438_v8 = vpop.f32.mrb[29].mxu1 }
 0x4c0   : > { %5454 = vst [vmem:[%s10356_s21 + $0x60] sm:$0xff] %v5422_v58  ;;  %5722 = vst [vmem:[%s10356_s21 + $0x70] sm:$0xff] %v5690_v50  ;;  %v4748_v6 = vadd.f32 %v10366_v22, %v10337_v21  ;;  %v5155_v24 = vadd.f32 %v5123_v29, %v5079_v1  ;;  %v5315_v43 = vadd.f32 -2.0, %v5283_v45  ;;  %v5016_v20 = vadd.f32 %v10366_v22, %v10353_v61  ;;  %v10445_v19 = vpop.f32.mrb[31].mxu0 }
 0x4c1   : > { %4919 = vst [vmem:[%s10356_s21 + $0x48] sm:$0xff] %v4887_v56  ;;  %v5284_v32 = vadd.f32 %v10366_v22, %v10393_v2  ;;  %v5583_v28 = vadd.f32 -2.0, %v5551_v33  ;;  %v4604_v12 = vmax.f32 %v4572_v42, 0.0  ;;  %v5552_v26 = vadd.f32 %v10366_v22, %v10419_v30  ;;  %v10459_v22 = vpop.permute.xlu1 %4691 }
 0x4c2   : > { %v4780_v37 = vadd.f32 -2.0, %v4748_v6  ;;  %5187 = vst [vmem:[%s10356_s21 + $0x58] sm:$0xff] %v5155_v24  ;;  %v5347_v46 = vmax.f32 %v5315_v43, 0.0  ;;  %v5048_v52 = vadd.f32 -2.0, %v5016_v20  ;;  %v4573_v53 = vadd.f32 -1.0, %v10374_v39  ;;  %v10453_v41 = vpop.f32.mrb[30].mxu1 }
 0x4c3   : > { %v5316_v7 = vadd.f32 -2.0, %v5284_v32  ;;  %v5615_v10 = vmax.f32 %v5583_v28, 0.0  ;;  %v4636_v27 = vsub.f32 1.0, %v4604_v12  ;;  %v5584_v38 = vadd.f32 -2.0, %v5552_v26  ;;  %v10455_v40 = vpop.f32.mrb[32].mxu0  ;;  %v10457_v58 = vpop.f32.mrb[31].mxu1 }
 0x4c4   : > { %v4812_v29 = vmax.f32 %v4780_v37, 0.0  ;;  %v5423_v50 = vadd.f32 %v5391_v57, %v5347_v46  ;;  %v5080_v56 = vmax.f32 %v5048_v52, 0.0  ;;  %v4605_v45 = vmax.f32 %v4573_v53, 0.0  ;;  %v10461_v33 = vpop.f32.mrb[33].mxu0  ;;  %v10479_v53 = vpop.permute.xlu0 %5505 }
 0x4c5   : > { %v5348_v1 = vmax.f32 %v5316_v7, 0.0  ;;  %v5691_v42 = vadd.f32 %v5659_v17, %v5615_v10  ;;  %v4856_v6 = vmul.f32 %v10317_v48, %v4636_v27  ;;  %v5124_v24 = vmul.f32 %v10319_v63, %v4636_v27 }
 0x4c6   : > { %v5392_v43 = vmul.f32 %v10321_v31, %v4636_v27  ;;  %5455 = vst [vmem:[%s10356_s21 + $0x68] sm:$0xff] %v5423_v50  ;;  %v5616_v20 = vmax.f32 %v5584_v38, 0.0  ;;  %v5660_v32 = vmul.f32 %v10323_v4, %v4636_v27  ;;  %v4637_v28 = vsub.f32 1.0, %v4605_v45  ;;  %v10470_v12 = vpop.f32.mrb[32].mxu1  ;;  %v10493_v45 = vpop.permute.xlu1 %5237 }
 0x4c7   : > { %v4749_v57 = vadd.f32 %v10374_v39, %v10337_v21  ;;  %5723 = vst [vmem:[%s10356_s21 + $0x78] sm:$0xff] %v5691_v42  ;;  %v4888_v17 = vadd.f32 %v4856_v6, %v4812_v29  ;;  %v5156_v37 = vadd.f32 %v5124_v24, %v5080_v56  ;;  %v5017_v46 = vadd.f32 %v10374_v39, %v10353_v61  ;;  %v10475_v52 = vpop.f32.mrb[34].mxu0  ;;  %v10477_v7 = vpop.f32.mrb[33].mxu1 }
 0x4c8   : > { %v5424_v26 = vadd.f32 %v5392_v43, %v5348_v1  ;;  %11609 = vst [vmem:[#allocation26_spill] sm:$0xff] %v10475_v52  ;;  %v5692_v10 = vadd.f32 %v5660_v32, %v5616_v20  ;;  %v4857_v27 = vmul.f32 %v10327_v62, %v4637_v28  ;;  %v5125_v38 = vmul.f32 %v10329_v14, %v4637_v28  ;;  %v10483_v50 = vpop.f32.mrb[35].mxu0 }
 0x4c9   : > { %v4781_v21 = vadd.f32 -2.0, %v4749_v57  ;;  %11610 = vst [vmem:[#allocation7_spill] sm:$0xff] %v10483_v50  ;;  %4920 = vst [vmem:[%s10356_s21 + $0x80] sm:$0xff] %v4888_v17  ;;  %v5049_v29 = vadd.f32 -2.0, %v5017_v46  ;;  %v5285_v61 = vadd.f32 %v10374_v39, %v10393_v2  ;;  %v5393_v56 = vmul.f32 %v10331_v11, %v4637_v28  ;;  %v10512_v50 = vpop.permute.xlu0 %4686 }
 0x4ca   : > { %5188 = vst [vmem:[%s10356_s21 + $0x90] sm:$0xff] %v5156_v37  ;;  %5456 = vst [vmem:[%s10356_s21 + $0xa0] sm:$0xff] %v5424_v26  ;;  %v5553_v1 = vadd.f32 %v10374_v39, %v10419_v30  ;;  %v5661_v6 = vmul.f32 %v10333_v18, %v4637_v28  ;;  %v4574_v24 = vadd.f32 -1.0, %v10376_v49  ;;  %v4750_v43 = vadd.f32 %v10376_v49, %v10301_v54  ;;  %v10500_v20 = vpop.f32.mrb[34].mxu1 }
 0x4cb   : > { %5724 = vst [vmem:[%s10356_s21 + $0xb0] sm:$0xff] %v5692_v10  ;;  %v4813_v42 = vmax.f32 %v4781_v21, 0.0  ;;  %11611 = vst [vmem:[#allocation23_spill] sm:$0xff] %v10500_v20  ;;  %v5081_v32 = vmax.f32 %v5049_v29, 0.0  ;;  %v5317_v2 = vadd.f32 -2.0, %v5285_v61  ;;  %v5018_v39 = vadd.f32 %v10376_v49, %v10383_v44  ;;  %v10504_v30 = vpop.f32.mrb[36].mxu0 }
 0x4cc   : > { %v5585_v57 = vadd.f32 -2.0, %v5553_v1  ;;  %11612 = vst [vmem:[#allocation17_spill] sm:$0xff] %v10504_v30  ;;  %v10506_v17 = vpop.f32.mrb[35].mxu1  ;;  %v4606_v28 = vmax.f32 %v4574_v24, 0.0  ;;  %v4782_v26 = vadd.f32 -2.0, %v4750_v43  ;;  %v5286_v46 = vadd.f32 %v10376_v49, %v10315_v59  ;;  %v10510_v10 = vpop.f32.mrb[37].mxu0 }
 0x4cd   : > { %v4889_v37 = vadd.f32 %v4857_v27, %v4813_v42  ;;  %11613 = vst [vmem:[#allocation28_spill] sm:$0xff] %v10510_v10  ;;  %v5157_v21 = vadd.f32 %v5125_v38, %v5081_v32  ;;  %v5349_v29 = vmax.f32 %v5317_v2, 0.0  ;;  %v5050_v1 = vadd.f32 -2.0, %v5018_v39  ;;  %v10526_v39 = vpop.permute.xlu1 %4965 }
 0x4ce   : > { %v5617_v61 = vmax.f32 %v5585_v57, 0.0  ;;  %v4638_v52 = vsub.f32 1.0, %v4606_v28  ;;  %v4814_v30 = vmax.f32 %v4782_v26, 0.0  ;;  %v5318_v20 = vadd.f32 -2.0, %v5286_v46  ;;  %v10517_v42 = vpop.f32.mrb[36].mxu1 }
 0x4cf   : > { %4921 = vst [vmem:[%s10356_s21 + $0x88] sm:$0xff] %v4889_v37  ;;  %v5554_v27 = vadd.f32 %v10376_v49, %v10413_v16  ;;  %5189 = vst [vmem:[%s10356_s21 + $0x98] sm:$0xff] %v5157_v21  ;;  %v5425_v24 = vadd.f32 %v5393_v56, %v5349_v29  ;;  %v5082_v38 = vmax.f32 %v5050_v1, 0.0  ;;  %v7517_v32 = vadd.f32 %v10351_v47, %v10370_v36  ;;  %v10522_v2 = vpop.f32.mrb[38].mxu0  ;;  %v10524_v57 = vpop.f32.mrb[37].mxu1 }
 0x4d0   : > { %v5693_v43 = vadd.f32 %v5661_v6, %v5617_v61  ;;  %11614 = vst [vmem:[#allocation29_spill] sm:$0xff] %v10522_v2  ;;  %v4858_v37 = vmul.f32 %v10317_v48, %v4638_v52  ;;  %v5126_v49 = vmul.f32 %v10319_v63, %v4638_v52  ;;  %v5350_v28 = vmax.f32 %v5318_v20, 0.0  ;;  %v10531_v46 = vpop.f32.mrb[39].mxu0 }
 0x4d1   : > { %v5394_v26 = vmul.f32 %v10321_v31, %v4638_v52  ;;  %11615 = vst [vmem:[#allocation8_spill] sm:$0xff] %v10531_v46  ;;  %5457 = vst [vmem:[%s10356_s21 + $0xa8] sm:$0xff] %v5425_v24  ;;  %v5586_v56 = vadd.f32 -2.0, %v5554_v27  ;;  %v5662_v47 = vmul.f32 %v10323_v4, %v4638_v52  ;;  %v4575_v36 = vadd.f32 -1.0, %v7517_v32 }
 0x4d2   : > { %5725 = vst [vmem:[%s10356_s21 + $0xb8] sm:$0xff] %v5693_v43  ;;  %v4751_v6 = vadd.f32 %v7517_v32, %v10301_v54  ;;  %v4890_v21 = vadd.f32 %v4858_v37, %v4814_v30  ;;  %v5158_v29 = vadd.f32 %v5126_v49, %v5082_v38  ;;  %v5019_v20 = vadd.f32 %v7517_v32, %v10383_v44  ;;  %v10538_v1 = vpop.f32.mrb[38].mxu1 }
 0x4d3   : > { %v5426_v61 = vadd.f32 %v5394_v26, %v5350_v28  ;;  %v5618_v2 = vmax.f32 %v5586_v56, 0.0  ;;  %v4607_v46 = vmax.f32 %v4575_v36, 0.0  ;;  %v5287_v43 = vadd.f32 %v7517_v32, %v10315_v59  ;;  %v10541_v27 = vpop.f32.mrb[40].mxu0  ;;  %v10543_v10 = vpop.f32.mrb[39].mxu1 }
 0x4d4   : > { %v4783_v24 = vadd.f32 -2.0, %v4751_v6  ;;  %11616 = vst [vmem:[#allocation31_spill] sm:$0xff] %v10541_v27  ;;  %4922 = vst [vmem:[%s10356_s21 + $0xc0] sm:$0xff] %v4890_v21  ;;  %v5051_v54 = vadd.f32 -2.0, %v5019_v20  ;;  %v5555_v52 = vadd.f32 %v7517_v32, %v10413_v16  ;;  %v7518_v44 = vadd.f32 %v10368_v3, %v10387_v0  ;;  %v10555_v38 = vpop.f32.mrb[41].mxu0  ;;  %v5234_v59 = vpop.permute.xlu0 %5233 }
 0x4d5   : > { %5190 = vst [vmem:[%s10356_s21 + $0xd0] sm:$0xff] %v5158_v29  ;;  %5458 = vst [vmem:[%s10356_s21 + $0xe0] sm:$0xff] %v5426_v61  ;;  %v10553_v30 = vadd.f32 %v10378_v9, %v10391_v5  ;;  %v5694_v37 = vadd.f32 %v5662_v47, %v5618_v2  ;;  %v4639_v49 = vsub.f32 1.0, %v4607_v46  ;;  %v5319_v26 = vadd.f32 -2.0, %v5287_v43  ;;  %v10557_v56 = vpop.permute.xlu1 %5501 }
 0x4d6   : > { %11617 = vst [vmem:[#allocation32_spill] sm:$0xff] %v10555_v38  ;;  %v4815_v28 = vmax.f32 %v4783_v24, 0.0  ;;  %v5083_v36 = vmax.f32 %v5051_v54, 0.0  ;;  %v5587_v6 = vadd.f32 -2.0, %v5555_v52  ;;  %v4576_v21 = vadd.f32 -1.0, %v7518_v44  ;;  %v10560_v32 = vpop.f32.mrb[40].mxu1 }
 0x4d7   : > { %v4752_v16 = vadd.f32 %v7518_v44, %v10512_v50  ;;  %5726 = vst [vmem:[%s10356_s21 + $0xf0] sm:$0xff] %v5694_v37  ;;  %v4859_v3 = vmul.f32 %v10327_v62, %v4639_v49  ;;  %v5127_v9 = vmul.f32 %v10329_v14, %v4639_v49  ;;  %v5351_v0 = vmax.f32 %v5319_v26, 0.0  ;;  %v10566_v2 = vpop.f32.mrb[42].mxu0  ;;  %v10568_v46 = vpop.f32.mrb[41].mxu1 }
 0x4d8   : > { %v5395_v5 = vmul.f32 %v10331_v11, %v4639_v49  ;;  %11618 = vst [vmem:[#allocation27_spill] sm:$0xff] %v10566_v2  ;;  %11619 = vst [vmem:[#allocation20_spill] sm:$0xff] %v10568_v46  ;;  %v5619_v47 = vmax.f32 %v5587_v6, 0.0  ;;  %v5663_v29 = vmul.f32 %v10333_v18, %v4639_v49  ;;  %v4608_v61 = vmax.f32 %v4576_v21, 0.0  ;;  %v10571_v24 = vpop.f32.mrb[43].mxu0 }
 0x4d9   : > { %v4784_v20 = vadd.f32 -2.0, %v4752_v16  ;;  %11620 = vst [vmem:[#allocation30_spill] sm:$0xff] %v10571_v24  ;;  %v4891_v43 = vadd.f32 %v4859_v3, %v4815_v28  ;;  %v5159_v54 = vadd.f32 %v5127_v9, %v5083_v36  ;;  %v5020_v37 = vadd.f32 %v7518_v44, %v10526_v39  ;;  %v10587_v3 = vpop.permute.xlu0 %4977 }
 0x4da   : > { %v5427_v52 = vadd.f32 %v5395_v5, %v5351_v0  ;;  %v5695_v26 = vadd.f32 %v5663_v29, %v5619_v47  ;;  %v4640_v2 = vsub.f32 1.0, %v4608_v61  ;;  %v5288_v27 = vadd.f32 %v7518_v44, %v5234_v59  ;;  %v10574_v46 = vpop.f32.mrb[42].mxu1  ;;  %v10595_v29 = vpop.permute.xlu1 %4701 }
 0x4db   : > { %v4816_v38 = vmax.f32 %v4784_v20, 0.0  ;;  %4923 = vst [vmem:[%s10356_s21 + $0xc8] sm:$0xff] %v4891_v43  ;;  %5191 = vst [vmem:[%s10356_s21 + $0xd8] sm:$0xff] %v5159_v54  ;;  %v5052_v49 = vadd.f32 -2.0, %v5020_v37  ;;  %v5556_v6 = vadd.f32 %v7518_v44, %v10557_v56  ;;  %v4577_v21 = vadd.f32 -1.0, %v10553_v30  ;;  %v10583_v36 = vpop.f32.mrb[44].mxu0 }
 0x4dc   : > { %5459 = vst [vmem:[%s10356_s21 + $0xe8] sm:$0xff] %v5427_v52  ;;  %v4753_v28 = vadd.f32 %v10553_v30, %v10512_v50  ;;  %11621 = vst [vmem:[#allocation49_spill] sm:$0xff] %v10583_v36  ;;  %v10585_v16 = vpop.f32.mrb[43].mxu1  ;;  %v4860_v9 = vmul.f32 %v10317_v48, %v4640_v2  ;;  %v5128_v0 = vmul.f32 %v10319_v63, %v4640_v2  ;;  %v5320_v5 = vadd.f32 -2.0, %v5288_v27  ;;  %v10593_v44 = vpop.f32.mrb[45].mxu0 }
 0x4dd   : > { %11622 = vst [vmem:[#allocation10_spill] sm:$0xff] %v10585_v16  ;;  %5727 = vst [vmem:[%s10356_s21 + $0xf8] sm:$0xff] %v5695_v26  ;;  %v5396_v47 = vmul.f32 %v10321_v31, %v4640_v2  ;;  %v5084_v50 = vmax.f32 %v5052_v49, 0.0  ;;  %v5588_v61 = vadd.f32 -2.0, %v5556_v6  ;;  %v5664_v20 = vmul.f32 %v10323_v4, %v4640_v2 }
 0x4de   : > { %11623 = vst [vmem:[#allocation33_spill] sm:$0xff] %v10593_v44  ;;  %v4609_v43 = vmax.f32 %v4577_v21, 0.0  ;;  %v4892_v54 = vadd.f32 %v4860_v9, %v4816_v38  ;;  %v5352_v52 = vmax.f32 %v5320_v5, 0.0  ;;  %v4785_v37 = vadd.f32 -2.0, %v4753_v28  ;;  %v10600_v27 = vpop.f32.mrb[44].mxu1 }
 0x4df   : > { %v5021_v26 = vadd.f32 %v10553_v30, %v10526_v39  ;;  %v5160_v36 = vadd.f32 %v5128_v0, %v5084_v50  ;;  %v5620_v24 = vmax.f32 %v5588_v61, 0.0  ;;  %v5289_v16 = vadd.f32 %v10553_v30, %v5234_v59  ;;  %v10603_v49 = vpop.f32.mrb[46].mxu0  ;;  %v10605_v6 = vpop.f32.mrb[45].mxu1 }
 0x4e0   : > { %v4641_v44 = vsub.f32 1.0, %v4609_v43  ;;  %4924 = vst [vmem:[%s10356_s21 + $0x100] sm:$0xff] %v4892_v54  ;;  %v5428_v38 = vadd.f32 %v5396_v47, %v5352_v52  ;;  %v4817_v2 = vmax.f32 %v4785_v37, 0.0  ;;  %v5557_v39 = vadd.f32 %v10553_v30, %v10557_v56  ;;  %v10610_v28 = vpop.f32.mrb[47].mxu0  ;;  %v10615_v50 = vpop.permute.xlu0 %5513 }
 0x4e1   : > { %v5053_v21 = vadd.f32 -2.0, %v5021_v26  ;;  %5192 = vst [vmem:[%s10356_s21 + $0x110] sm:$0xff] %v5160_v36  ;;  %v5696_v9 = vadd.f32 %v5664_v20, %v5620_v24  ;;  %v5321_v5 = vadd.f32 -2.0, %v5289_v16  ;;  %v10622_v56 = vpop.permute.xlu1 %5245  ;;  %v7520_v16 = vadd.f32 %v10389_v51, %v10403_v13 }
 0x4e2   : > { %v4861_v0 = vmul.f32 %v10327_v62, %v4641_v44  ;;  %v5129_v59 = vmul.f32 %v10329_v14, %v4641_v44  ;;  %5460 = vst [vmem:[%s10356_s21 + $0x120] sm:$0xff] %v5428_v38  ;;  %v5397_v47 = vmul.f32 %v10331_v11, %v4641_v44  ;;  %v5589_v43 = vadd.f32 -2.0, %v5557_v39  ;;  %v10620_v30 = vpop.f32.mrb[46].mxu1 }
 0x4e3   : > { %v5085_v61 = vmax.f32 %v5053_v21, 0.0  ;;  %v5665_v54 = vmul.f32 %v10333_v18, %v4641_v44  ;;  %5728 = vst [vmem:[%s10356_s21 + $0x130] sm:$0xff] %v5696_v9  ;;  %v5353_v36 = vmax.f32 %v5321_v5, 0.0  ;;  %v7521_v20 = vadd.f32 %v10398_v55, %v10411_v23  ;;  %v10629_v52 = vpop.f32.mrb[47].mxu1 }
 0x4e4   : > { %v4893_v24 = vadd.f32 %v4861_v0, %v4817_v2  ;;  %v5621_v26 = vmax.f32 %v5589_v43, 0.0  ;;  %v10633_v44 = vadd.f32 %v10409_v34, %v10424_v25  ;;  %v10637_v38 = vadd.f32 %v10417_v35, %v10438_v8 }
 0x4e5   : > { %v5161_v37 = vadd.f32 %v5129_v59, %v5085_v61  ;;  %v5429_v2 = vadd.f32 %v5397_v47, %v5353_v36  ;;  %v4578_v51 = vadd.f32 -1.0, %v7520_v16  ;;  %v4754_v13 = vadd.f32 %v7520_v16, %v10459_v22  ;;  %v10649_v47 = vpop.permute.xlu0 %4696  ;;  %v10651_v43 = vpop.permute.xlu1 %4973 }
 0x4e6   : > { %4925 = vst [vmem:[%s10356_s21 + $0x108] sm:$0xff] %v4893_v24  ;;  %v5022_v55 = vadd.f32 %v7520_v16, %v10449_v15  ;;  %v5697_v23 = vadd.f32 %v5665_v54, %v5621_v26  ;;  %v5290_v21 = vadd.f32 %v7520_v16, %v10493_v45  ;;  %v5558_v39 = vadd.f32 %v7520_v16, %v10479_v53 }
 0x4e7   : > { %5193 = vst [vmem:[%s10356_s21 + $0x118] sm:$0xff] %v5161_v37  ;;  %v4579_v34 = vadd.f32 -1.0, %v7521_v20  ;;  %5461 = vst [vmem:[%s10356_s21 + $0x128] sm:$0xff] %v5429_v2  ;;  %v4610_v25 = vmax.f32 %v4578_v51, 0.0  ;;  %v4786_v9 = vadd.f32 -2.0, %v4754_v13  ;;  %v4755_v8 = vadd.f32 %v7521_v20, %v10459_v22 }
 0x4e8   : > { %v5054_v35 = vadd.f32 -2.0, %v5022_v55  ;;  %5729 = vst [vmem:[%s10356_s21 + $0x138] sm:$0xff] %v5697_v23  ;;  %v5322_v0 = vadd.f32 -2.0, %v5290_v21  ;;  %v5590_v59 = vadd.f32 -2.0, %v5558_v39  ;;  %v5023_v61 = vadd.f32 %v7521_v20, %v10449_v15 }
 0x4e9   : > { %v4611_v5 = vmax.f32 %v4579_v34, 0.0  ;;  %v4642_v54 = vsub.f32 1.0, %v4610_v25  ;;  %v4818_v24 = vmax.f32 %v4786_v9, 0.0  ;;  %v4787_v16 = vadd.f32 -2.0, %v4755_v8 }
 0x4ea   : > { %v5086_v36 = vmax.f32 %v5054_v35, 0.0  ;;  %v5354_v37 = vmax.f32 %v5322_v0, 0.0  ;;  %v5622_v26 = vmax.f32 %v5590_v59, 0.0  ;;  %v5055_v51 = vadd.f32 -2.0, %v5023_v61 }
 0x4eb   : > { %v4643_v2 = vsub.f32 1.0, %v4611_v5  ;;  %v4862_v22 = vmul.f32 %v10317_v48, %v4642_v54  ;;  %v5130_v13 = vmul.f32 %v10319_v63, %v4642_v54  ;;  %v5398_v55 = vmul.f32 %v10321_v31, %v4642_v54 }
 0x4ec   : > { %v5666_v15 = vmul.f32 %v10323_v4, %v4642_v54  ;;  %v4819_v23 = vmax.f32 %v4787_v16, 0.0  ;;  %v5087_v39 = vmax.f32 %v5055_v51, 0.0  ;;  %v5291_v5 = vadd.f32 %v7521_v20, %v10493_v45  ;;  %v5242_v54 = vpop.permute.xlu0 %5241  ;;  %v5510_v16 = vpop.permute.xlu1 %5509 }
 0x4ed   : > { %v4863_v21 = vmul.f32 %v10327_v62, %v4643_v2  ;;  %v5131_v34 = vmul.f32 %v10329_v14, %v4643_v2  ;;  %v4894_v25 = vadd.f32 %v4862_v22, %v4818_v24  ;;  %v5162_v9 = vadd.f32 %v5130_v13, %v5086_v36 }
 0x4ee   : > { %v5430_v35 = vadd.f32 %v5398_v55, %v5354_v37  ;;  %v5698_v8 = vadd.f32 %v5666_v15, %v5622_v26  ;;  %v5399_v61 = vmul.f32 %v10331_v11, %v4643_v2  ;;  %v5559_v51 = vadd.f32 %v7521_v20, %v10479_v53 }
 0x4ef   : > { %v4895_v0 = vadd.f32 %v4863_v21, %v4819_v23  ;;  %v5163_v59 = vadd.f32 %v5131_v34, %v5087_v39  ;;  %4926 = vst [vmem:[%s10356_s21 + $0x140] sm:$0xff] %v4894_v25  ;;  %5194 = vst [vmem:[%s10356_s21 + $0x150] sm:$0xff] %v5162_v9  ;;  %v5667_v24 = vmul.f32 %v10333_v18, %v4643_v2  ;;  %v4580_v36 = vadd.f32 -1.0, %v10633_v44 }
 0x4f0   : > { %5462 = vst [vmem:[%s10356_s21 + $0x160] sm:$0xff] %v5430_v35  ;;  %5730 = vst [vmem:[%s10356_s21 + $0x170] sm:$0xff] %v5698_v8  ;;  %v4756_v37 = vadd.f32 %v10633_v44, %v10649_v47  ;;  %v5323_v45 = vadd.f32 -2.0, %v5291_v5  ;;  %v5024_v26 = vadd.f32 %v10633_v44, %v10651_v43  ;;  %v5292_v22 = vadd.f32 %v10633_v44, %v5242_v54 }
 0x4f1   : > { %4927 = vst [vmem:[%s10356_s21 + $0x148] sm:$0xff] %v4895_v0  ;;  %5195 = vst [vmem:[%s10356_s21 + $0x158] sm:$0xff] %v5163_v59  ;;  %v5560_v13 = vadd.f32 %v10633_v44, %v5510_v16  ;;  %v5591_v55 = vadd.f32 -2.0, %v5559_v51  ;;  %v4612_v15 = vmax.f32 %v4580_v36, 0.0  ;;  %v4581_v20 = vadd.f32 -1.0, %v10637_v38  ;;  %v10677_v44 = vpop.permute.xlu0 %4985 }
 0x4f2   : > { %v4788_v53 = vadd.f32 -2.0, %v4756_v37  ;;  %v5355_v2 = vmax.f32 %v5323_v45, 0.0  ;;  %v5056_v23 = vadd.f32 -2.0, %v5024_v26  ;;  %v5324_v21 = vadd.f32 -2.0, %v5292_v22  ;;  %v10682_v26 = vpop.permute.xlu1 %4711 }
 0x4f3   : > { %v5592_v39 = vadd.f32 -2.0, %v5560_v13  ;;  %v5623_v34 = vmax.f32 %v5591_v55, 0.0  ;;  %v4644_v25 = vsub.f32 1.0, %v4612_v15  ;;  %v4613_v35 = vmax.f32 %v4581_v20, 0.0 }
 0x4f4   : > { %v4820_v9 = vmax.f32 %v4788_v53, 0.0  ;;  %v5431_v8 = vadd.f32 %v5399_v61, %v5355_v2  ;;  %v5088_v0 = vmax.f32 %v5056_v23, 0.0  ;;  %v5356_v59 = vmax.f32 %v5324_v21, 0.0 }
 0x4f5   : > { %v5624_v5 = vmax.f32 %v5592_v39, 0.0  ;;  %v5699_v51 = vadd.f32 %v5667_v24, %v5623_v34  ;;  %v4864_v36 = vmul.f32 %v10317_v48, %v4644_v25  ;;  %v5132_v37 = vmul.f32 %v10319_v63, %v4644_v25 }
 0x4f6   : > { %v5400_v45 = vmul.f32 %v10321_v31, %v4644_v25  ;;  %5463 = vst [vmem:[%s10356_s21 + $0x168] sm:$0xff] %v5431_v8  ;;  %v5668_v61 = vmul.f32 %v10323_v4, %v4644_v25  ;;  %v4645_v22 = vsub.f32 1.0, %v4613_v35  ;;  %v4757_v13 = vadd.f32 %v10637_v38, %v10649_v47 }
 0x4f7   : > { %v5025_v24 = vadd.f32 %v10637_v38, %v10651_v43  ;;  %5731 = vst [vmem:[%s10356_s21 + $0x178] sm:$0xff] %v5699_v51  ;;  %v4896_v55 = vadd.f32 %v4864_v36, %v4820_v9  ;;  %v5164_v15 = vadd.f32 %v5132_v37, %v5088_v0  ;;  %v5293_v20 = vadd.f32 %v10637_v38, %v5242_v54  ;;  %v10703_v0 = vpop.permute.xlu0 %5521 }
 0x4f8   : > { %v5432_v53 = vadd.f32 %v5400_v45, %v5356_v59  ;;  %v5700_v2 = vadd.f32 %v5668_v61, %v5624_v5  ;;  %v4789_v23 = vadd.f32 -2.0, %v4757_v13  ;;  %v4865_v21 = vmul.f32 %v10327_v62, %v4645_v22 }
 0x4f9   : > { %v5057_v39 = vadd.f32 -2.0, %v5025_v24  ;;  %4928 = vst [vmem:[%s10356_s21 + $0x180] sm:$0xff] %v4896_v55  ;;  %5196 = vst [vmem:[%s10356_s21 + $0x190] sm:$0xff] %v5164_v15  ;;  %v5133_v47 = vmul.f32 %v10329_v14, %v4645_v22  ;;  %v5325_v34 = vadd.f32 -2.0, %v5293_v20  ;;  %v5401_v43 = vmul.f32 %v10331_v11, %v4645_v22 }
 0x4fa   : > { %5464 = vst [vmem:[%s10356_s21 + $0x1a0] sm:$0xff] %v5432_v53  ;;  %v5561_v25 = vadd.f32 %v10637_v38, %v5510_v16  ;;  %5732 = vst [vmem:[%s10356_s21 + $0x1b0] sm:$0xff] %v5700_v2  ;;  %v4821_v9 = vmax.f32 %v4789_v23, 0.0  ;;  %v5669_v54 = vmul.f32 %v10333_v18, %v4645_v22  ;;  %v7524_v8 = vadd.f32 %v10436_v60, %v10453_v41  ;;  %v10711_v16 = vpop.permute.xlu1 %5253 }
 0x4fb   : > { %v5089_v35 = vmax.f32 %v5057_v39, 0.0  ;;  %v5357_v59 = vmax.f32 %v5325_v34, 0.0  ;;  %v7525_v51 = vadd.f32 %v10445_v19, %v10457_v58  ;;  %v10709_v38 = vadd.f32 %v10455_v40, %v10470_v12  ;;  %v4707_v39 = vpop.permute.xlu0 %4706 }
 0x4fc   : > { %v5593_v5 = vadd.f32 -2.0, %v5561_v25  ;;  %v4897_v36 = vadd.f32 %v4865_v21, %v4821_v9  ;;  %v4582_v45 = vadd.f32 -1.0, %v7524_v8  ;;  %v4758_v60 = vadd.f32 %v7524_v8, %v10595_v29 }
 0x4fd   : > { %v5165_v37 = vadd.f32 %v5133_v47, %v5089_v35  ;;  %v5433_v41 = vadd.f32 %v5401_v43, %v5357_v59  ;;  %v5026_v22 = vadd.f32 %v7524_v8, %v10587_v3  ;;  %v5294_v13 = vadd.f32 %v7524_v8, %v10622_v56 }
 0x4fe   : > { %v5625_v61 = vmax.f32 %v5593_v5, 0.0  ;;  %4929 = vst [vmem:[%s10356_s21 + $0x188] sm:$0xff] %v4897_v36  ;;  %v4614_v19 = vmax.f32 %v4582_v45, 0.0  ;;  %v4790_v40 = vadd.f32 -2.0, %v4758_v60  ;;  %v5562_v58 = vadd.f32 %v7524_v8, %v10615_v50  ;;  %v10723_v9 = vpop.permute.xlu1 %4981 }
 0x4ff   : > { %5197 = vst [vmem:[%s10356_s21 + $0x198] sm:$0xff] %v5165_v37  ;;  %v4583_v12 = vadd.f32 -1.0, %v7525_v51  ;;  %5465 = vst [vmem:[%s10356_s21 + $0x1a8] sm:$0xff] %v5433_v41  ;;  %v5058_v55 = vadd.f32 -2.0, %v5026_v22  ;;  %v5326_v15 = vadd.f32 -2.0, %v5294_v13  ;;  %v4759_v53 = vadd.f32 %v7525_v51, %v10595_v29 }
 0x500   : > { %v5701_v24 = vadd.f32 %v5669_v54, %v5625_v61  ;;  %v4646_v20 = vsub.f32 1.0, %v4614_v19  ;;  %v4822_v2 = vmax.f32 %v4790_v40, 0.0  ;;  %v5594_v23 = vadd.f32 -2.0, %v5562_v58 }
 0x501   : > { %v4615_v21 = vmax.f32 %v4583_v12, 0.0  ;;  %v5090_v47 = vmax.f32 %v5058_v55, 0.0  ;;  %v5358_v34 = vmax.f32 %v5326_v15, 0.0  ;;  %v4791_v43 = vadd.f32 -2.0, %v4759_v53  ;;  %v5250_v55 = vpop.permute.xlu0 %5249 }
 0x502   : > { %5733 = vst [vmem:[%s10356_s21 + $0x1b8] sm:$0xff] %v5701_v24  ;;  %v5027_v25 = vadd.f32 %v7525_v51, %v10587_v3  ;;  %v4866_v35 = vmul.f32 %v10317_v48, %v4646_v20  ;;  %v5134_v54 = vmul.f32 %v10319_v63, %v4646_v20  ;;  %v5402_v29 = vmul.f32 %v10321_v31, %v4646_v20 }
 0x503   : > { %v5626_v8 = vmax.f32 %v5594_v23, 0.0  ;;  %v5670_v59 = vmul.f32 %v10323_v4, %v4646_v20  ;;  %v4647_v5 = vsub.f32 1.0, %v4615_v21  ;;  %v4823_v36 = vmax.f32 %v4791_v43, 0.0 }
 0x504   : > { %v5059_v37 = vadd.f32 -2.0, %v5027_v25  ;;  %v4898_v45 = vadd.f32 %v4866_v35, %v4822_v2  ;;  %v5166_v3 = vadd.f32 %v5134_v54, %v5090_v47  ;;  %v5434_v60 = vadd.f32 %v5402_v29, %v5358_v34  ;;  %v5518_v2 = vpop.permute.xlu1 %5517 }
 0x505   : > { %v5295_v41 = vadd.f32 %v7525_v51, %v10622_v56  ;;  %v5702_v61 = vadd.f32 %v5670_v59, %v5626_v8  ;;  %v4867_v22 = vmul.f32 %v10327_v62, %v4647_v5  ;;  %v5135_v19 = vmul.f32 %v10329_v14, %v4647_v5 }
 0x506   : > { %v5091_v13 = vmax.f32 %v5059_v37, 0.0  ;;  %4930 = vst [vmem:[%s10356_s21 + $0x1c0] sm:$0xff] %v4898_v45  ;;  %5198 = vst [vmem:[%s10356_s21 + $0x1d0] sm:$0xff] %v5166_v3  ;;  %v5403_v58 = vmul.f32 %v10331_v11, %v4647_v5  ;;  %v5563_v12 = vadd.f32 %v7525_v51, %v10615_v50  ;;  %v5671_v24 = vmul.f32 %v10333_v18, %v4647_v5 }
 0x507   : > { %5466 = vst [vmem:[%s10356_s21 + $0x1e0] sm:$0xff] %v5434_v60  ;;  %v5327_v40 = vadd.f32 -2.0, %v5295_v41  ;;  %5734 = vst [vmem:[%s10356_s21 + $0x1f0] sm:$0xff] %v5702_v61  ;;  %v4899_v56 = vadd.f32 %v4867_v22, %v4823_v36  ;;  %v4584_v53 = vadd.f32 -1.0, %v10709_v38  ;;  %v4760_v20 = vadd.f32 %v10709_v38, %v4707_v39  ;;  %v10750_v61 = vpop.permute.xlu0 %4993 }
 0x508   : > { %v5167_v15 = vadd.f32 %v5135_v19, %v5091_v13  ;;  %v5595_v21 = vadd.f32 -2.0, %v5563_v12  ;;  %v5028_v47 = vadd.f32 %v10709_v38, %v10723_v9  ;;  %v5296_v34 = vadd.f32 %v10709_v38, %v5250_v55  ;;  %v10755_v13 = vpop.permute.xlu1 %4721 }
 0x509   : > { %v5359_v23 = vmax.f32 %v5327_v40, 0.0  ;;  %4931 = vst [vmem:[%s10356_s21 + $0x1c8] sm:$0xff] %v4899_v56  ;;  %v4616_v50 = vmax.f32 %v4584_v53, 0.0  ;;  %v4792_v51 = vadd.f32 -2.0, %v4760_v20  ;;  %v5564_v43 = vadd.f32 %v10709_v38, %v5518_v2 }
 0x50a   : > { %5199 = vst [vmem:[%s10356_s21 + $0x1d8] sm:$0xff] %v5167_v15  ;;  %v7527_v25 = vadd.f32 %v10461_v33, %v10477_v7  ;;  %v5627_v54 = vmax.f32 %v5595_v21, 0.0  ;;  %v5060_v29 = vadd.f32 -2.0, %v5028_v47  ;;  %v5328_v8 = vadd.f32 -2.0, %v5296_v34 }
 0x50b   : > { %v5435_v35 = vadd.f32 %v5403_v58, %v5359_v23  ;;  %v4648_v59 = vsub.f32 1.0, %v4616_v50  ;;  %v4824_v5 = vmax.f32 %v4792_v51, 0.0  ;;  %v5596_v36 = vadd.f32 -2.0, %v5564_v43  ;;  %v11624_v50 = vld [vmem:[#allocation23_spill] sm:$0xff]  ;;  %v11625_v51 = vld [vmem:[#allocation26_spill] sm:$0xff] }
 0x50c   : > { %v4585_v37 = vadd.f32 -1.0, %v7527_v25  ;;  %v5703_v45 = vadd.f32 %v5671_v24, %v5627_v54  ;;  %v5092_v3 = vmax.f32 %v5060_v29, 0.0  ;;  %v5360_v60 = vmax.f32 %v5328_v8, 0.0 }
 0x50d   : > { %5467 = vst [vmem:[%s10356_s21 + $0x1e8] sm:$0xff] %v5435_v35  ;;  %v4761_v41 = vadd.f32 %v7527_v25, %v4707_v39  ;;  %v4868_v38 = vmul.f32 %v10317_v48, %v4648_v59  ;;  %v5136_v33 = vmul.f32 %v10319_v63, %v4648_v59  ;;  %v5404_v7 = vmul.f32 %v10321_v31, %v4648_v59  ;;  %v11626_v35 = vld [vmem:[#allocation7_spill] sm:$0xff] }
 0x50e   : > { %v5628_v22 = vmax.f32 %v5596_v36, 0.0  ;;  %5735 = vst [vmem:[%s10356_s21 + $0x1f8] sm:$0xff] %v5703_v45  ;;  %v5672_v19 = vmul.f32 %v10323_v4, %v4648_v59  ;;  %v4617_v40 = vmax.f32 %v4585_v37, 0.0  ;;  %v5029_v39 = vadd.f32 %v7527_v25, %v10723_v9  ;;  %v10771_v59 = vpop.permute.xlu0 %5529  ;;  %v10774_v37 = vpop.permute.xlu1 %5261 }
 0x50f   : > { %v4793_v58 = vadd.f32 -2.0, %v4761_v41  ;;  %v4900_v12 = vadd.f32 %v4868_v38, %v4824_v5  ;;  %v5168_v24 = vadd.f32 %v5136_v33, %v5092_v3  ;;  %v5436_v56 = vadd.f32 %v5404_v7, %v5360_v60 }
 0x510   : > { %v5297_v15 = vadd.f32 %v7527_v25, %v5250_v55  ;;  %v5704_v53 = vadd.f32 %v5672_v19, %v5628_v22  ;;  %v4649_v20 = vsub.f32 1.0, %v4617_v40  ;;  %v5061_v21 = vadd.f32 -2.0, %v5029_v39 }
 0x511   : > { %v4825_v23 = vmax.f32 %v4793_v58, 0.0  ;;  %4932 = vst [vmem:[%s10356_s21 + $0x200] sm:$0xff] %v4900_v12  ;;  %5200 = vst [vmem:[%s10356_s21 + $0x210] sm:$0xff] %v5168_v24  ;;  %v5565_v34 = vadd.f32 %v7527_v25, %v5518_v2  ;;  %v7528_v43 = vadd.f32 %v11625_v51, %v11624_v50  ;;  %v7529_v9 = vadd.f32 %v11626_v35, %v10506_v17 }
 0x512   : > { %5468 = vst [vmem:[%s10356_s21 + $0x220] sm:$0xff] %v5436_v56  ;;  %v5329_v47 = vadd.f32 -2.0, %v5297_v15  ;;  %5736 = vst [vmem:[%s10356_s21 + $0x230] sm:$0xff] %v5704_v53  ;;  %v4869_v54 = vmul.f32 %v10327_v62, %v4649_v20  ;;  %v5093_v29 = vmax.f32 %v5061_v21, 0.0  ;;  %v5137_v55 = vmul.f32 %v10329_v14, %v4649_v20  ;;  %v10784_v21 = vpop.permute.xlu0 %4716 }
 0x513   : > { %v5405_v8 = vmul.f32 %v10331_v11, %v4649_v20  ;;  %v5597_v2 = vadd.f32 -2.0, %v5565_v34  ;;  %v5673_v25 = vmul.f32 %v10333_v18, %v4649_v20  ;;  %v4586_v36 = vadd.f32 -1.0, %v7528_v43 }
 0x514   : > { %v5361_v5 = vmax.f32 %v5329_v47, 0.0  ;;  %v4901_v17 = vadd.f32 %v4869_v54, %v4825_v23  ;;  %v5169_v45 = vadd.f32 %v5137_v55, %v5093_v29  ;;  %v4762_v3 = vadd.f32 %v7528_v43, %v10682_v26 }
 0x515   : > { %v5030_v60 = vadd.f32 %v7528_v43, %v10677_v44  ;;  %v5629_v38 = vmax.f32 %v5597_v2, 0.0  ;;  %v4618_v33 = vmax.f32 %v4586_v36, 0.0  ;;  %v5298_v7 = vadd.f32 %v7528_v43, %v10711_v16 }
 0x516   : > { %v5437_v41 = vadd.f32 %v5405_v8, %v5361_v5  ;;  %4933 = vst [vmem:[%s10356_s21 + $0x208] sm:$0xff] %v4901_v17  ;;  %5201 = vst [vmem:[%s10356_s21 + $0x218] sm:$0xff] %v5169_v45  ;;  %v4794_v22 = vadd.f32 -2.0, %v4762_v3  ;;  %v5566_v40 = vadd.f32 %v7528_v43, %v10703_v0  ;;  %v4587_v58 = vadd.f32 -1.0, %v7529_v9  ;;  %v4990_v43 = vpop.permute.xlu1 %4989 }
 0x517   : > { %v5062_v19 = vadd.f32 -2.0, %v5030_v60  ;;  %v5705_v39 = vadd.f32 %v5673_v25, %v5629_v38  ;;  %v4650_v12 = vsub.f32 1.0, %v4618_v33  ;;  %v5330_v24 = vadd.f32 -2.0, %v5298_v7  ;;  %v11627_v7 = vld [vmem:[#allocation17_spill] sm:$0xff] }
 0x518   : > { %5469 = vst [vmem:[%s10356_s21 + $0x228] sm:$0xff] %v5437_v41  ;;  %v4763_v56 = vadd.f32 %v7529_v9, %v10682_v26  ;;  %v4826_v15 = vmax.f32 %v4794_v22, 0.0  ;;  %v5598_v20 = vadd.f32 -2.0, %v5566_v40  ;;  %v4619_v23 = vmax.f32 %v4587_v58, 0.0  ;;  %v5258_v58 = vpop.permute.xlu0 %5257 }
 0x519   : > { %v5094_v53 = vmax.f32 %v5062_v19, 0.0  ;;  %5737 = vst [vmem:[%s10356_s21 + $0x238] sm:$0xff] %v5705_v39  ;;  %v4870_v47 = vmul.f32 %v10317_v48, %v4650_v12  ;;  %v5138_v34 = vmul.f32 %v10319_v63, %v4650_v12  ;;  %v5362_v50 = vmax.f32 %v5330_v24, 0.0  ;;  %v11628_v19 = vld [vmem:[#allocation28_spill] sm:$0xff] }
 0x51a   : > { %v5406_v51 = vmul.f32 %v10321_v31, %v4650_v12  ;;  %v5630_v35 = vmax.f32 %v5598_v20, 0.0  ;;  %v5674_v26 = vmul.f32 %v10323_v4, %v4650_v12  ;;  %v4651_v54 = vsub.f32 1.0, %v4619_v23 }
 0x51b   : > { %v4795_v29 = vadd.f32 -2.0, %v4763_v56  ;;  %v4902_v55 = vadd.f32 %v4870_v47, %v4826_v15  ;;  %v5170_v8 = vadd.f32 %v5138_v34, %v5094_v53  ;;  %v5031_v2 = vadd.f32 %v7529_v9, %v10677_v44 }
 0x51c   : > { %v5438_v5 = vadd.f32 %v5406_v51, %v5362_v50  ;;  %v5706_v25 = vadd.f32 %v5674_v26, %v5630_v35  ;;  %v4871_v17 = vmul.f32 %v10327_v62, %v4651_v54  ;;  %v5139_v45 = vmul.f32 %v10329_v14, %v4651_v54 }
 0x51d   : > { %v4827_v36 = vmax.f32 %v4795_v29, 0.0  ;;  %4934 = vst [vmem:[%s10356_s21 + $0x240] sm:$0xff] %v4902_v55  ;;  %5202 = vst [vmem:[%s10356_s21 + $0x250] sm:$0xff] %v5170_v8  ;;  %v5063_v3 = vadd.f32 -2.0, %v5031_v2  ;;  %v5299_v60 = vadd.f32 %v7529_v9, %v10711_v16  ;;  %v5407_v41 = vmul.f32 %v10331_v11, %v4651_v54  ;;  %v11629_v16 = vld [vmem:[#allocation29_spill] sm:$0xff] }
 0x51e   : > { %5470 = vst [vmem:[%s10356_s21 + $0x260] sm:$0xff] %v5438_v5  ;;  %v5567_v38 = vadd.f32 %v7529_v9, %v10703_v0  ;;  %5738 = vst [vmem:[%s10356_s21 + $0x270] sm:$0xff] %v5706_v25  ;;  %v5675_v44 = vmul.f32 %v10333_v18, %v4651_v54  ;;  %v7530_v22 = vadd.f32 %v11627_v7, %v10517_v42  ;;  %v5526_v0 = vpop.permute.xlu1 %5525 }
 0x51f   : > { %v4903_v33 = vadd.f32 %v4871_v17, %v4827_v36  ;;  %v7531_v40 = vadd.f32 %v11628_v19, %v10524_v57  ;;  %v5095_v39 = vmax.f32 %v5063_v3, 0.0  ;;  %v5331_v12 = vadd.f32 -2.0, %v5299_v60  ;;  %v10816_v3 = vpop.permute.xlu0 %5001 }
 0x520   : > { %v5599_v24 = vadd.f32 -2.0, %v5567_v38  ;;  %v10808_v56 = vadd.f32 %v11629_v16, %v10538_v1  ;;  %v4588_v9 = vadd.f32 -1.0, %v7530_v22  ;;  %v4764_v15 = vadd.f32 %v7530_v22, %v10784_v21 }
 0x521   : > { %4935 = vst [vmem:[%s10356_s21 + $0x248] sm:$0xff] %v4903_v33  ;;  %v5032_v53 = vadd.f32 %v7530_v22, %v4990_v43  ;;  %v5300_v20 = vadd.f32 %v7530_v22, %v5258_v58  ;;  %v5171_v42 = vadd.f32 %v5139_v45, %v5095_v39  ;;  %v5363_v23 = vmax.f32 %v5331_v12, 0.0 }
 0x522   : > { %v5631_v57 = vmax.f32 %v5599_v24, 0.0  ;;  %v5568_v47 = vadd.f32 %v7530_v22, %v5526_v0  ;;  %v4620_v34 = vmax.f32 %v4588_v9, 0.0  ;;  %v4796_v50 = vadd.f32 -2.0, %v4764_v15  ;;  %v10818_v60 = vpop.permute.xlu1 %4731 }
 0x523   : > { %v5064_v51 = vadd.f32 -2.0, %v5032_v53  ;;  %v5332_v35 = vadd.f32 -2.0, %v5300_v20  ;;  %5203 = vst [vmem:[%s10356_s21 + $0x258] sm:$0xff] %v5171_v42  ;;  %v5439_v1 = vadd.f32 %v5407_v41, %v5363_v23  ;;  %v4589_v29 = vadd.f32 -1.0, %v7531_v40 }
 0x524   : > { %v5707_v26 = vadd.f32 %v5675_v44, %v5631_v57  ;;  %v5600_v54 = vadd.f32 -2.0, %v5568_v47  ;;  %v4652_v55 = vsub.f32 1.0, %v4620_v34  ;;  %v4828_v8 = vmax.f32 %v4796_v50, 0.0 }
 0x525   : > { %v5096_v5 = vmax.f32 %v5064_v51, 0.0  ;;  %v5364_v2 = vmax.f32 %v5332_v35, 0.0  ;;  %5471 = vst [vmem:[%s10356_s21 + $0x268] sm:$0xff] %v5439_v1  ;;  %v4621_v36 = vmax.f32 %v4589_v29, 0.0  ;;  %v4765_v17 = vadd.f32 %v7531_v40, %v10784_v21  ;;  %v10835_v51 = vpop.permute.xlu0 %5537 }
 0x526   : > { %5739 = vst [vmem:[%s10356_s21 + $0x278] sm:$0xff] %v5707_v26  ;;  %v5632_v25 = vmax.f32 %v5600_v54, 0.0  ;;  %v5033_v45 = vadd.f32 %v7531_v40, %v4990_v43  ;;  %v4872_v41 = vmul.f32 %v10317_v48, %v4652_v55  ;;  %v5140_v38 = vmul.f32 %v10319_v63, %v4652_v55  ;;  %v10837_v35 = vpop.permute.xlu1 %5269 }
 0x527   : > { %v5408_v33 = vmul.f32 %v10321_v31, %v4652_v55  ;;  %v5676_v44 = vmul.f32 %v10323_v4, %v4652_v55  ;;  %v4653_v7 = vsub.f32 1.0, %v4621_v36  ;;  %v4797_v22 = vadd.f32 -2.0, %v4765_v17 }
 0x528   : > { %v5065_v21 = vadd.f32 -2.0, %v5033_v45  ;;  %v5301_v43 = vadd.f32 %v7531_v40, %v5258_v58  ;;  %v4904_v19 = vadd.f32 %v4872_v41, %v4828_v8  ;;  %v5172_v39 = vadd.f32 %v5140_v38, %v5096_v5  ;;  %v11630_v8 = vld [vmem:[#allocation8_spill] sm:$0xff] }
 0x529   : > { %v5440_v12 = vadd.f32 %v5408_v33, %v5364_v2  ;;  %v5708_v24 = vadd.f32 %v5676_v44, %v5632_v25  ;;  %v4829_v16 = vmax.f32 %v4797_v22, 0.0  ;;  %v4873_v9 = vmul.f32 %v10327_v62, %v4653_v7 }
 0x52a   : > { %v5097_v15 = vmax.f32 %v5065_v21, 0.0  ;;  %v5141_v53 = vmul.f32 %v10329_v14, %v4653_v7  ;;  %4936 = vst [vmem:[%s10356_s21 + $0x280] sm:$0xff] %v4904_v19  ;;  %5204 = vst [vmem:[%s10356_s21 + $0x290] sm:$0xff] %v5172_v39  ;;  %v5333_v20 = vadd.f32 -2.0, %v5301_v43  ;;  %v5409_v42 = vmul.f32 %v10331_v11, %v4653_v7  ;;  %v4727_v39 = vpop.permute.xlu0 %4726 }
 0x52b   : > { %5472 = vst [vmem:[%s10356_s21 + $0x2a0] sm:$0xff] %v5440_v12  ;;  %5740 = vst [vmem:[%s10356_s21 + $0x2b0] sm:$0xff] %v5708_v24  ;;  %v5569_v58 = vadd.f32 %v7531_v40, %v5526_v0  ;;  %v5677_v23 = vmul.f32 %v10333_v18, %v4653_v7  ;;  %v4905_v57 = vadd.f32 %v4873_v9, %v4829_v16  ;;  %v4590_v34 = vadd.f32 -1.0, %v10808_v56  ;;  %v10854_v12 = vpop.permute.xlu1 %4997 }
 0x52c   : > { %v5173_v47 = vadd.f32 %v5141_v53, %v5097_v15  ;;  %v4766_v50 = vadd.f32 %v10808_v56, %v10755_v13  ;;  %v5365_v1 = vmax.f32 %v5333_v20, 0.0  ;;  %v5034_v54 = vadd.f32 %v10808_v56, %v10750_v61 }
 0x52d   : > { %v5601_v26 = vadd.f32 -2.0, %v5569_v58  ;;  %v5302_v40 = vadd.f32 %v10808_v56, %v10774_v37  ;;  %4937 = vst [vmem:[%s10356_s21 + $0x288] sm:$0xff] %v4905_v57  ;;  %v4622_v0 = vmax.f32 %v4590_v34, 0.0  ;;  %v5570_v55 = vadd.f32 %v10808_v56, %v10771_v59 }
 0x52e   : > { %5205 = vst [vmem:[%s10356_s21 + $0x298] sm:$0xff] %v5173_v47  ;;  %v4798_v29 = vadd.f32 -2.0, %v4766_v50  ;;  %v7533_v5 = vadd.f32 %v11630_v8, %v10543_v10  ;;  %v5441_v2 = vadd.f32 %v5409_v42, %v5365_v1  ;;  %v5066_v36 = vadd.f32 -2.0, %v5034_v54  ;;  %v11631_v1 = vld [vmem:[#allocation31_spill] sm:$0xff]  ;;  %v11633_v54 = vld [vmem:[#allocation32_spill] sm:$0xff] }
 0x52f   : > { %v5633_v25 = vmax.f32 %v5601_v26, 0.0  ;;  %v5334_v17 = vadd.f32 -2.0, %v5302_v40  ;;  %v4654_v45 = vsub.f32 1.0, %v4622_v0  ;;  %v5602_v38 = vadd.f32 -2.0, %v5570_v55 }
 0x530   : > { %v4830_v41 = vmax.f32 %v4798_v29, 0.0  ;;  %v4591_v33 = vadd.f32 -1.0, %v7533_v5  ;;  %5473 = vst [vmem:[%s10356_s21 + $0x2a8] sm:$0xff] %v5441_v2  ;;  %v5098_v7 = vmax.f32 %v5066_v36, 0.0  ;;  %v4767_v21 = vadd.f32 %v7533_v5, %v10755_v13 }
 0x531   : > { %v5709_v44 = vadd.f32 %v5677_v23, %v5633_v25  ;;  %v5366_v22 = vmax.f32 %v5334_v17, 0.0  ;;  %v4874_v56 = vmul.f32 %v10317_v48, %v4654_v45  ;;  %v5142_v43 = vmul.f32 %v10319_v63, %v4654_v45  ;;  %v5266_v25 = vpop.permute.xlu0 %5265 }
 0x532   : > { %v5410_v10 = vmul.f32 %v10321_v31, %v4654_v45  ;;  %v5634_v19 = vmax.f32 %v5602_v38, 0.0  ;;  %v5678_v24 = vmul.f32 %v10323_v4, %v4654_v45  ;;  %v4623_v16 = vmax.f32 %v4591_v33, 0.0 }
 0x533   : > { %5741 = vst [vmem:[%s10356_s21 + $0x2b8] sm:$0xff] %v5709_v44  ;;  %v4799_v9 = vadd.f32 -2.0, %v4767_v21  ;;  %v5035_v13 = vadd.f32 %v7533_v5, %v10750_v61  ;;  %v4906_v15 = vadd.f32 %v4874_v56, %v4830_v41  ;;  %v5174_v53 = vadd.f32 %v5142_v43, %v5098_v7  ;;  %v11632_v61 = vld [vmem:[#allocation20_spill] sm:$0xff] }
 0x534   : > { %v5442_v20 = vadd.f32 %v5410_v10, %v5366_v22  ;;  %v5303_v42 = vadd.f32 %v7533_v5, %v10774_v37  ;;  %v5710_v58 = vadd.f32 %v5678_v24, %v5634_v19  ;;  %v4655_v23 = vsub.f32 1.0, %v4623_v16 }
 0x535   : > { %v4831_v57 = vmax.f32 %v4799_v9, 0.0  ;;  %v5067_v47 = vadd.f32 -2.0, %v5035_v13  ;;  %4938 = vst [vmem:[%s10356_s21 + $0x2c0] sm:$0xff] %v4906_v15  ;;  %5206 = vst [vmem:[%s10356_s21 + $0x2d0] sm:$0xff] %v5174_v53  ;;  %v5571_v50 = vadd.f32 %v7533_v5, %v10771_v59  ;;  %v7534_v26 = vadd.f32 %v11631_v1, %v10560_v32  ;;  %v5534_v32 = vpop.permute.xlu1 %5533 }
 0x536   : > { %5474 = vst [vmem:[%s10356_s21 + $0x2e0] sm:$0xff] %v5442_v20  ;;  %v5335_v34 = vadd.f32 -2.0, %v5303_v42  ;;  %v7535_v40 = vadd.f32 %v11633_v54, %v11632_v61  ;;  %5742 = vst [vmem:[%s10356_s21 + $0x2f0] sm:$0xff] %v5710_v58  ;;  %v4875_v0 = vmul.f32 %v10327_v62, %v4655_v23  ;;  %v5143_v29 = vmul.f32 %v10329_v14, %v4655_v23 }
 0x537   : > { %v5099_v37 = vmax.f32 %v5067_v47, 0.0  ;;  %v5411_v55 = vmul.f32 %v10331_v11, %v4655_v23  ;;  %v5603_v2 = vadd.f32 -2.0, %v5571_v50  ;;  %v5679_v59 = vmul.f32 %v10333_v18, %v4655_v23 }
 0x538   : > { %v5367_v8 = vmax.f32 %v5335_v34, 0.0  ;;  %v4592_v5 = vadd.f32 -1.0, %v7534_v26  ;;  %v4907_v36 = vadd.f32 %v4875_v0, %v4831_v57  ;;  %v4768_v45 = vadd.f32 %v7534_v26, %v4727_v39 }
 0x539   : > { %v5175_v17 = vadd.f32 %v5143_v29, %v5099_v37  ;;  %v5036_v41 = vadd.f32 %v7534_v26, %v10854_v12  ;;  %v5635_v33 = vmax.f32 %v5603_v2, 0.0  ;;  %v5304_v7 = vadd.f32 %v7534_v26, %v5266_v25  ;;  %v10881_v57 = vpop.permute.xlu1 %4741 }
 0x53a   : > { %v5443_v38 = vadd.f32 %v5411_v55, %v5367_v8  ;;  %v4624_v44 = vmax.f32 %v4592_v5, 0.0  ;;  %4939 = vst [vmem:[%s10356_s21 + $0x2c8] sm:$0xff] %v4907_v36  ;;  %v4800_v22 = vadd.f32 -2.0, %v4768_v45  ;;  %v5572_v56 = vadd.f32 %v7534_v26, %v5534_v32 }
 0x53b   : > { %5207 = vst [vmem:[%s10356_s21 + $0x2d8] sm:$0xff] %v5175_v17  ;;  %v5068_v21 = vadd.f32 -2.0, %v5036_v41  ;;  %v4593_v43 = vadd.f32 -1.0, %v7535_v40  ;;  %v5711_v10 = vadd.f32 %v5679_v59, %v5635_v33  ;;  %v5336_v24 = vadd.f32 -2.0, %v5304_v7  ;;  %v11635_v41 = vld [vmem:[#allocation10_spill] sm:$0xff] }
 0x53c   : > { %5475 = vst [vmem:[%s10356_s21 + $0x2e8] sm:$0xff] %v5443_v38  ;;  %v4656_v19 = vsub.f32 1.0, %v4624_v44  ;;  %v4769_v16 = vadd.f32 %v7535_v40, %v4727_v39  ;;  %v4832_v9 = vmax.f32 %v4800_v22, 0.0  ;;  %v5604_v15 = vadd.f32 -2.0, %v5572_v56  ;;  %v11636_v38 = vld [vmem:[#allocation30_spill] sm:$0xff]  ;;  %v10897_v44 = vpop.permute.xlu0 %5009 }
 0x53d   : > { %v5100_v13 = vmax.f32 %v5068_v21, 0.0  ;;  %v4625_v53 = vmax.f32 %v4593_v43, 0.0  ;;  %5743 = vst [vmem:[%s10356_s21 + $0x2f8] sm:$0xff] %v5711_v10  ;;  %v5368_v58 = vmax.f32 %v5336_v24, 0.0  ;;  %v5037_v54 = vadd.f32 %v7535_v40, %v10854_v12  ;;  %v11634_v12 = vld [vmem:[#allocation27_spill] sm:$0xff] }
 0x53e   : > { %v4876_v20 = vmul.f32 %v10317_v48, %v4656_v19  ;;  %v5144_v42 = vmul.f32 %v10319_v63, %v4656_v19  ;;  %v5412_v23 = vmul.f32 %v10321_v31, %v4656_v19  ;;  %v5636_v47 = vmax.f32 %v5604_v15, 0.0 }
 0x53f   : > { %v5680_v39 = vmul.f32 %v10323_v4, %v4656_v19  ;;  %v4657_v34 = vsub.f32 1.0, %v4625_v53  ;;  %v4801_v50 = vadd.f32 -2.0, %v4769_v16  ;;  %v5069_v8 = vadd.f32 -2.0, %v5037_v54 }
 0x540   : > { %v4908_v1 = vadd.f32 %v4876_v20, %v4832_v9  ;;  %v5176_v26 = vadd.f32 %v5144_v42, %v5100_v13  ;;  %v5444_v61 = vadd.f32 %v5412_v23, %v5368_v58  ;;  %v5305_v2 = vadd.f32 %v7535_v40, %v5266_v25  ;;  %v11637_v25 = vld [vmem:[#allocation49_spill] sm:$0xff] }
 0x541   : > { %v5712_v0 = vadd.f32 %v5680_v39, %v5636_v47  ;;  %v4833_v37 = vmax.f32 %v4801_v50, 0.0  ;;  %v4877_v29 = vmul.f32 %v10327_v62, %v4657_v34  ;;  %v5145_v55 = vmul.f32 %v10329_v14, %v4657_v34 }
 0x542   : > { %4940 = vst [vmem:[%s10356_s21 + $0x300] sm:$0xff] %v4908_v1  ;;  %5208 = vst [vmem:[%s10356_s21 + $0x310] sm:$0xff] %v5176_v26  ;;  %v5413_v59 = vmul.f32 %v10331_v11, %v4657_v34  ;;  %v5573_v5 = vadd.f32 %v7535_v40, %v5534_v32  ;;  %v5681_v17 = vmul.f32 %v10333_v18, %v4657_v34  ;;  %v5101_v7 = vmax.f32 %v5069_v8, 0.0  ;;  %v10903_v40 = vpop.permute.xlu1 %5277  ;;  %v4737_v1 = vpop.permute.xlu0 %4736 }
 0x543   : > { %5476 = vst [vmem:[%s10356_s21 + $0x320] sm:$0xff] %v5444_v61  ;;  %5744 = vst [vmem:[%s10356_s21 + $0x330] sm:$0xff] %v5712_v0  ;;  %v4909_v36 = vadd.f32 %v4877_v29, %v4833_v37  ;;  %v7536_v45 = vadd.f32 %v11634_v12, %v10574_v46  ;;  %v7537_v33 = vadd.f32 %v11636_v38, %v11635_v41  ;;  %v5337_v22 = vadd.f32 -2.0, %v5305_v2 }
 0x544   : > { %v5605_v21 = vadd.f32 -2.0, %v5573_v5  ;;  %v10901_v56 = vadd.f32 %v11637_v25, %v10600_v27  ;;  %v5177_v19 = vadd.f32 %v5145_v55, %v5101_v7 }
 0x545   : > { %4941 = vst [vmem:[%s10356_s21 + $0x308] sm:$0xff] %v4909_v36  ;;  %v4594_v32 = vadd.f32 -1.0, %v7536_v45  ;;  %v4770_v43 = vadd.f32 %v7536_v45, %v10818_v60  ;;  %v5038_v46 = vadd.f32 %v7536_v45, %v10816_v3  ;;  %v5306_v10 = vadd.f32 %v7536_v45, %v10837_v35 }
 0x546   : > { %v5369_v24 = vmax.f32 %v5337_v22, 0.0  ;;  %v5637_v16 = vmax.f32 %v5605_v21, 0.0  ;;  %v5574_v9 = vadd.f32 %v7536_v45, %v10835_v51  ;;  %5209 = vst [vmem:[%s10356_s21 + $0x318] sm:$0xff] %v5177_v19  ;;  %v4595_v23 = vadd.f32 -1.0, %v7537_v33  ;;  %v5006_v37 = vpop.permute.xlu1 %5005 }
 0x547   : > { %v4626_v13 = vmax.f32 %v4594_v32, 0.0  ;;  %v4802_v27 = vadd.f32 -2.0, %v4770_v43  ;;  %v5070_v15 = vadd.f32 -2.0, %v5038_v46  ;;  %v5338_v53 = vadd.f32 -2.0, %v5306_v10  ;;  %v5274_v43 = vpop.permute.xlu0 %5273 }
 0x548   : > { %v5445_v20 = vadd.f32 %v5413_v59, %v5369_v24  ;;  %v5713_v42 = vadd.f32 %v5681_v17, %v5637_v16  ;;  %v5606_v58 = vadd.f32 -2.0, %v5574_v9  ;;  %v4627_v61 = vmax.f32 %v4595_v23, 0.0 }
 0x549   : > { %v4658_v47 = vsub.f32 1.0, %v4626_v13  ;;  %v4834_v39 = vmax.f32 %v4802_v27, 0.0  ;;  %v5102_v34 = vmax.f32 %v5070_v15, 0.0  ;;  %v5370_v50 = vmax.f32 %v5338_v53, 0.0 }
 0x54a   : > { %5477 = vst [vmem:[%s10356_s21 + $0x328] sm:$0xff] %v5445_v20  ;;  %5745 = vst [vmem:[%s10356_s21 + $0x338] sm:$0xff] %v5713_v42  ;;  %v5638_v26 = vmax.f32 %v5606_v58, 0.0  ;;  %v4771_v54 = vadd.f32 %v7537_v33, %v10818_v60  ;;  %v5039_v0 = vadd.f32 %v7537_v33, %v10816_v3  ;;  %v4659_v59 = vsub.f32 1.0, %v4627_v61  ;;  %v5542_v16 = vpop.permute.xlu1 %5541  ;;  %v11638_v20 = vld [vmem:[#allocation33_spill] sm:$0xff] }
 0x54b   : > { %v4878_v29 = vmul.f32 %v10317_v48, %v4658_v47  ;;  %v5146_v55 = vmul.f32 %v10319_v63, %v4658_v47  ;;  %v5414_v8 = vmul.f32 %v10321_v31, %v4658_v47  ;;  %v5682_v2 = vmul.f32 %v10323_v4, %v4658_v47 }
 0x54c   : > { %v4803_v5 = vadd.f32 -2.0, %v4771_v54  ;;  %v5071_v36 = vadd.f32 -2.0, %v5039_v0  ;;  %v5307_v60 = vadd.f32 %v7537_v33, %v10837_v35  ;;  %v4879_v38 = vmul.f32 %v10327_v62, %v4659_v59 }
 0x54d   : > { %v4910_v17 = vadd.f32 %v4878_v29, %v4834_v39  ;;  %v5178_v3 = vadd.f32 %v5146_v55, %v5102_v34  ;;  %v5446_v12 = vadd.f32 %v5414_v8, %v5370_v50  ;;  %v5714_v45 = vadd.f32 %v5682_v2, %v5638_v26 }
 0x54e   : > { %v4835_v41 = vmax.f32 %v4803_v5, 0.0  ;;  %v5103_v7 = vmax.f32 %v5071_v36, 0.0  ;;  %v5147_v22 = vmul.f32 %v10329_v14, %v4659_v59  ;;  %v5339_v21 = vadd.f32 -2.0, %v5307_v60 }
 0x54f   : > { %4942 = vst [vmem:[%s10356_s21 + $0x340] sm:$0xff] %v4910_v17  ;;  %5210 = vst [vmem:[%s10356_s21 + $0x350] sm:$0xff] %v5178_v3  ;;  %v5415_v25 = vmul.f32 %v10331_v11, %v4659_v59  ;;  %v5575_v35 = vadd.f32 %v7537_v33, %v10835_v51  ;;  %v5683_v32 = vmul.f32 %v10333_v18, %v4659_v59  ;;  %v4596_v19 = vadd.f32 -1.0, %v10901_v56 }
 0x550   : > { %5478 = vst [vmem:[%s10356_s21 + $0x360] sm:$0xff] %v5446_v12  ;;  %5746 = vst [vmem:[%s10356_s21 + $0x370] sm:$0xff] %v5714_v45  ;;  %v4911_v46 = vadd.f32 %v4879_v38, %v4835_v41  ;;  %v5179_v10 = vadd.f32 %v5147_v22, %v5103_v7  ;;  %v4772_v24 = vadd.f32 %v10901_v56, %v4737_v1  ;;  %v5371_v9 = vmax.f32 %v5339_v21, 0.0 }
 0x551   : > { %v5607_v13 = vadd.f32 -2.0, %v5575_v35  ;;  %v5040_v27 = vadd.f32 %v10901_v56, %v5006_v37  ;;  %v5308_v15 = vadd.f32 %v10901_v56, %v5274_v43  ;;  %v4628_v51 = vmax.f32 %v4596_v19, 0.0 }
 0x552   : > { %4943 = vst [vmem:[%s10356_s21 + $0x348] sm:$0xff] %v4911_v46  ;;  %5211 = vst [vmem:[%s10356_s21 + $0x358] sm:$0xff] %v5179_v10  ;;  %v4804_v33 = vadd.f32 -2.0, %v4772_v24  ;;  %v5576_v53 = vadd.f32 %v10901_v56, %v5542_v16  ;;  %v7539_v42 = vadd.f32 %v11638_v20, %v10605_v6  ;;  %v5447_v58 = vadd.f32 %v5415_v25, %v5371_v9  ;;  %v5546_v9 = vpop.permute.xlu0 %5545 }
 0x553   : > { %v5639_v23 = vmax.f32 %v5607_v13, 0.0  ;;  %v5072_v47 = vadd.f32 -2.0, %v5040_v27  ;;  %v5340_v39 = vadd.f32 -2.0, %v5308_v15  ;;  %v4660_v34 = vsub.f32 1.0, %v4628_v51 }
 0x554   : > { %v4836_v50 = vmax.f32 %v4804_v33, 0.0  ;;  %v5608_v26 = vadd.f32 -2.0, %v5576_v53  ;;  %v4597_v61 = vadd.f32 -1.0, %v7539_v42  ;;  %5479 = vst [vmem:[%s10356_s21 + $0x368] sm:$0xff] %v5447_v58  ;;  %v4773_v55 = vadd.f32 %v7539_v42, %v4737_v1 }
 0x555   : > { %v5715_v54 = vadd.f32 %v5683_v32, %v5639_v23  ;;  %v5104_v0 = vmax.f32 %v5072_v47, 0.0  ;;  %v5372_v29 = vmax.f32 %v5340_v39, 0.0  ;;  %v4880_v8 = vmul.f32 %v10317_v48, %v4660_v34 }
 0x556   : > { %v5148_v56 = vmul.f32 %v10319_v63, %v4660_v34  ;;  %v5416_v6 = vmul.f32 %v10321_v31, %v4660_v34  ;;  %v5640_v2 = vmax.f32 %v5608_v26, 0.0  ;;  %v5684_v59 = vmul.f32 %v10323_v4, %v4660_v34 }
 0x557   : > { %5747 = vst [vmem:[%s10356_s21 + $0x378] sm:$0xff] %v5715_v54  ;;  %v4629_v5 = vmax.f32 %v4597_v61, 0.0  ;;  %v4805_v36 = vadd.f32 -2.0, %v4773_v55  ;;  %v5041_v60 = vadd.f32 %v7539_v42, %v5006_v37  ;;  %v4912_v17 = vadd.f32 %v4880_v8, %v4836_v50 }
 0x558   : > { %v5180_v3 = vadd.f32 %v5148_v56, %v5104_v0  ;;  %v5448_v1 = vadd.f32 %v5416_v6, %v5372_v29  ;;  %v5309_v12 = vadd.f32 %v7539_v42, %v5274_v43  ;;  %v5716_v45 = vadd.f32 %v5684_v59, %v5640_v2 }
 0x559   : > { %v4661_v41 = vsub.f32 1.0, %v4629_v5  ;;  %v4837_v38 = vmax.f32 %v4805_v36, 0.0  ;;  %v5073_v7 = vadd.f32 -2.0, %v5041_v60  ;;  %4944 = vst [vmem:[%s10356_s21 + $0x380] sm:$0xff] %v4912_v17  ;;  %v5577_v21 = vadd.f32 %v7539_v42, %v5542_v16 }
 0x55a   : > { %5212 = vst [vmem:[%s10356_s21 + $0x390] sm:$0xff] %v5180_v3  ;;  %5480 = vst [vmem:[%s10356_s21 + $0x3a0] sm:$0xff] %v5448_v1  ;;  %v5341_v22 = vadd.f32 -2.0, %v5309_v12  ;;  %v7540_v25 = vadd.f32 %v10603_v49, %v10620_v30  ;;  %v7541_v37 = vadd.f32 %v10610_v28, %v10629_v52 }
 0x55b   : > { %5748 = vst [vmem:[%s10356_s21 + $0x3b0] sm:$0xff] %v5716_v45  ;;  %v4881_v35 = vmul.f32 %v10327_v62, %v4661_v41  ;;  %v5105_v32 = vmax.f32 %v5073_v7, 0.0  ;;  %v5149_v43 = vmul.f32 %v10329_v14, %v4661_v41  ;;  %v5417_v46 = vmul.f32 %v10331_v11, %v4661_v41 }
 0x55c   : > { %v5373_v10 = vmax.f32 %v5341_v22, 0.0  ;;  %v5609_v19 = vadd.f32 -2.0, %v5577_v21  ;;  %v5685_v24 = vmul.f32 %v10333_v18, %v4661_v41  ;;  %v4598_v16 = vadd.f32 -1.0, %v7540_v25 }
 0x55d   : > { %v4913_v49 = vadd.f32 %v4881_v35, %v4837_v38  ;;  %v5181_v30 = vadd.f32 %v5149_v43, %v5105_v32  ;;  %v4774_v28 = vadd.f32 %v7540_v25, %v10881_v57  ;;  %v5042_v52 = vadd.f32 %v7540_v25, %v10897_v44 }
 0x55e   : > { %v5449_v13 = vadd.f32 %v5417_v46, %v5373_v10  ;;  %v5641_v27 = vmax.f32 %v5609_v19, 0.0  ;;  %v4630_v15 = vmax.f32 %v4598_v16, 0.0  ;;  %v5310_v51 = vadd.f32 %v7540_v25, %v10903_v40 }
 0x55f   : > { %4945 = vst [vmem:[%s10356_s21 + $0x388] sm:$0xff] %v4913_v49  ;;  %5213 = vst [vmem:[%s10356_s21 + $0x398] sm:$0xff] %v5181_v30  ;;  %v4806_v33 = vadd.f32 -2.0, %v4774_v28  ;;  %v5074_v53 = vadd.f32 -2.0, %v5042_v52  ;;  %v5578_v20 = vadd.f32 %v7540_v25, %v5546_v9  ;;  %v4599_v42 = vadd.f32 -1.0, %v7541_v37 }
 0x560   : > { %5481 = vst [vmem:[%s10356_s21 + $0x3a8] sm:$0xff] %v5449_v13  ;;  %v5717_v58 = vadd.f32 %v5685_v24, %v5641_v27  ;;  %v4662_v23 = vsub.f32 1.0, %v4630_v15  ;;  %v5342_v47 = vadd.f32 -2.0, %v5310_v51  ;;  %v4775_v39 = vadd.f32 %v7541_v37, %v10881_v57 }
 0x561   : > { %v4838_v34 = vmax.f32 %v4806_v33, 0.0  ;;  %v5106_v50 = vmax.f32 %v5074_v53, 0.0  ;;  %v5610_v26 = vadd.f32 -2.0, %v5578_v20  ;;  %v4631_v61 = vmax.f32 %v4599_v42, 0.0 }
 0x562   : > { %5749 = vst [vmem:[%s10356_s21 + $0x3b8] sm:$0xff] %v5717_v58  ;;  %v4882_v54 = vmul.f32 %v10317_v48, %v4662_v23  ;;  %v5150_v0 = vmul.f32 %v10319_v63, %v4662_v23  ;;  %v5374_v29 = vmax.f32 %v5342_v47, 0.0  ;;  %v5418_v55 = vmul.f32 %v10321_v31, %v4662_v23 }
 0x563   : > { %v5642_v8 = vmax.f32 %v5610_v26, 0.0  ;;  %v5686_v56 = vmul.f32 %v10323_v4, %v4662_v23  ;;  %v4663_v6 = vsub.f32 1.0, %v4631_v61  ;;  %v4807_v57 = vadd.f32 -2.0, %v4775_v39 }
 0x564   : > { %v4914_v2 = vadd.f32 %v4882_v54, %v4838_v34  ;;  %v5182_v59 = vadd.f32 %v5150_v0, %v5106_v50  ;;  %v5450_v5 = vadd.f32 %v5418_v55, %v5374_v29  ;;  %v5043_v36 = vadd.f32 %v7541_v37, %v10897_v44 }
 0x565   : > { %v5718_v60 = vadd.f32 %v5686_v56, %v5642_v8  ;;  %v4839_v48 = vmax.f32 %v4807_v57, 0.0  ;;  %v4883_v63 = vmul.f32 %v10327_v62, %v4663_v6  ;;  %v5151_v4 = vmul.f32 %v10329_v14, %v4663_v6 }
 0x566   : > { %4946 = vst [vmem:[%s10356_s21 + $0x3c0] sm:$0xff] %v4914_v2  ;;  %5214 = vst [vmem:[%s10356_s21 + $0x3d0] sm:$0xff] %v5182_v59  ;;  %v5075_v31 = vadd.f32 -2.0, %v5043_v36  ;;  %v5311_v17 = vadd.f32 %v7541_v37, %v10903_v40  ;;  %v5579_v3 = vadd.f32 %v7541_v37, %v5546_v9  ;;  %v5419_v44 = vmul.f32 %v10331_v11, %v4663_v6 }
 0x567   : > { %5482 = vst [vmem:[%s10356_s21 + $0x3e0] sm:$0xff] %v5450_v5  ;;  %5750 = vst [vmem:[%s10356_s21 + $0x3f0] sm:$0xff] %v5718_v60  ;;  %v4915_v1 = vadd.f32 %v4883_v63, %v4839_v48  ;;  %v5687_v41 = vmul.f32 %v10333_v18, %v4663_v6 }
 0x568   : > { %v5107_v12 = vmax.f32 %v5075_v31, 0.0  ;;  %v5343_v62 = vadd.f32 -2.0, %v5311_v17  ;;  %v5611_v45 = vadd.f32 -2.0, %v5579_v3 }
 0x569   : > { %4947 = vst [vmem:[%s10356_s21 + $0x3c8] sm:$0xff] %v4915_v1 }
 0x56a   : > { %v5183_v14 = vadd.f32 %v5151_v4, %v5107_v12  ;;  %v5375_v40 = vmax.f32 %v5343_v62, 0.0  ;;  %v5643_v38 = vmax.f32 %v5611_v45, 0.0 }
 0x56c   : > { %5215 = vst [vmem:[%s10356_s21 + $0x3d8] sm:$0xff] %v5183_v14  ;;  %v5451_v11 = vadd.f32 %v5419_v44, %v5375_v40  ;;  %v5719_v18 = vadd.f32 %v5687_v41, %v5643_v38 }
 0x56e   : > { %5483 = vst [vmem:[%s10356_s21 + $0x3e8] sm:$0xff] %v5451_v11  ;;  %5751 = vst [vmem:[%s10356_s21 + $0x3f8] sm:$0xff] %v5719_v18 }
 0x56f   : > { %7953 = shalt.err (!%p7950_p3)
}
 0x570   : > { %s7954_s16 = scalar_lea.hbm %s10984_s8, 16384  ;;  %s7958_s20 = scalar_lea.hbm %s11041_s7, 32768 }
 0x571   : > { %p7955_p4 = scmp.ne.s32.totalorder %s10984_s8, %s7954_s16  ;;  %p7959_p9 = scmp.lt.u32.totalorder %s10984_s8, %s11041_s7 }
 0x572   : > { %p7960_p10 = scmp.lt.u32.totalorder %s7958_s20, %s7954_s16  ;;  %p7962_p12 = scmp.lt.u32.totalorder %s7954_s16, %s10984_s8 }
 0x573   : > { %p7956_p7 = pnand %p7955_p4, %p8090_p5 }
 0x574   : > { %p7961_p11 = por %p7960_p10, %p7959_p9 }
 0x575   : > { %p7957_p8 = pneg %p7956_p7 }
 0x576   : > { %p7963_p13 = por %p7962_p12, %p7961_p11 }
 0x578   : > { %p7964_p0 = pnand %p7963_p13, %p7957_p8 }
 0x57a   : > { %7967 = shalt.err (!%p7964_p0)
}
 0x57b   : > { %s8010_s29 = smov 1024   ;;  %s8011_s19 = smov 64  }
 0x57c   : > { %7830 = dma.vmem_to_hbm [thread:$0]  (%p8090_p5), %s10986_s23, 16384, %s10984_s8, %s10993_s28, %s8010_s29, %s8010_s29, %s8011_s19  }
 0x57d PF: > { %p7836_p1 = scmp.ge.s32.totalorder %s8002_s27, 2  ;;  %s5782_s9 = sand.u32 1, %s7990_s24  }
 0x57e   : > { %s5783_s13 = scalar_lea.sflag [#allocation3], %s5782_s9 }
 0x57f   : > { %p7833_p2 = pnand %p7836_p1, %p8094_p6 }
 0x581   : > { %7985 = dma.done.wait (!%p7833_p2), %s5783_s13, 16384  }
 0x582   : > { %7987 = vsyncadd (!%p7833_p2), %s5783_s13, 4294950912  ;;  %p17_p3 = scmp.ge.s32.totalorder %s8077_s30, 4   ;;  %s11639_s24 = smov %s7994_s25 }
 0x583   : > { %s11640_s25 = smov %s7998_s26  ;;  %s11641_s26 = smov %s8088_s10 }
 0x584   : > { %s11642_s27 = smov %s8077_s30  ;;  %19 = sbr.rel (!%p17_p3) target bundleno = 3 (0x3), region = 83 }
 0x58b   :  { %5788 = vsyncpa [#allocation3], 1 }
 0x58c   :  { %5790 = vsyncpa [#allocation3 + $0x1], 1 }

</bundles_post_ra>
